<compile_context>
chip_gen: v7x
topology: tpu7x:2x2x1
jax: 0.10.0
libtpu: 0.0.40
codegen_flags: <defaults>
</compile_context>

<pallas_src>
import functools

import jax
import jax.numpy as jnp
from jax.experimental import pallas as pl
from jax.experimental.pallas import tpu as pltpu

K = 5     # kernel size
PAD = 2   # "same" padding


def _round_up(v, m):
    return ((v + m - 1) // m) * m


def _fused_kernel(Cin, Cmid, Cout, NB, W, RS, HRS, HALO,
                  w1_ref, b1_ref, w2_ref, b2_ref, x_ref, out_ref,
                  hp_ref, s1_ref, s2_ref):
    """conv1(5x5,same)+ReLU -> deconv2(as conv)+ReLU for NB images per step.

    Strided layout: pixel (y, x) lives at lane HALO + y*RS + x; lanes [W, RS)
    of each row, the HALO head and the tail are zero, so every (dy, dx) tap of
    a 5x5 "same" conv is a plain static lane-offset window slice (no masks).

    w1_ref: VMEM (Cmid, T1P) im2col weight matrix, col = (ky*K+kx)*Cin + ci
    b1_ref: VMEM (Cmid, 1)
    w2_ref: VMEM (Cout, T2P) deconv expressed as conv, col = (ky*K+kx)*Cmid + ci
    b2_ref: VMEM (Cout, 1)
    x_ref : VMEM (NB, Cin, XW)   strided, zero-gapped input images
    out   : VMEM (NB, Cout, HRS) strided output (gap lanes are don't-care)
    hp_ref: VMEM (Cmid, XW)      strided hidden activation + zero halos
    s1_ref: VMEM (T1P, HRS)      layer-1 tap slab (im2col)
    s2_ref: VMEM (T2P, HRS)      layer-2 tap slab (im2col)
    """
    NT1 = Cin * K * K
    NT2 = Cmid * K * K
    T1P = s1_ref.shape[0]
    T2P = s2_ref.shape[0]
    XW = hp_ref.shape[1]
    taps = [(dy, dx) for dy in range(-PAD, PAD + 1) for dx in range(-PAD, PAD + 1)]

    # Gap-lane validity mask (hoisted; the ONLY select in the kernel).
    col = jax.lax.broadcasted_iota(jnp.int32, (1, HRS), 1) % RS
    valid = col < W

    # Zero only the halo/tail/pad regions; interiors are rewritten every step.
    hp_ref[:, :HALO] = jnp.zeros((Cmid, HALO), jnp.float32)
    hp_ref[:, HALO + HRS:] = jnp.zeros((Cmid, XW - HALO - HRS), jnp.float32)
    if T1P > NT1:
        s1_ref[NT1:, :] = jnp.zeros((T1P - NT1, HRS), jnp.float32)
    if T2P > NT2:
        s2_ref[NT2:, :] = jnp.zeros((T2P - NT2, HRS), jnp.float32)

    w1 = w1_ref[...]
    b1 = b1_ref[...]
    w2 = w2_ref[...]
    b2 = b2_ref[...]

    for n in range(NB):
        # ---- layer 1: tap slab (one slice + one store per tap) + one matmul ----
        for t, (dy, dx) in enumerate(taps):
            s = HALO + dy * RS + dx
            s1_ref[t * Cin:(t + 1) * Cin, :] = x_ref[n, :, s:s + HRS]
        h = jnp.dot(w1, s1_ref[...],
                    precision=jax.lax.Precision.HIGHEST,
                    preferred_element_type=jnp.float32)
        h = jnp.maximum(h + b1, 0.0)
        # Re-zero the inter-row gap lanes: they are layer 2's horizontal padding.
        hp_ref[:, HALO:HALO + HRS] = jnp.where(valid, h, 0.0)

        # ---- layer 2 (ConvTranspose as conv): tap slab + one matmul ----
        for t, (dy, dx) in enumerate(taps):
            s = HALO + dy * RS + dx
            s2_ref[t * Cmid:(t + 1) * Cmid, :] = hp_ref[:, s:s + HRS]
        y = jnp.dot(w2, s2_ref[...],
                    precision=jax.lax.Precision.HIGHEST,
                    preferred_element_type=jnp.float32)
        out_ref[n, :, :] = jnp.maximum(y + b2, 0.0)


def autoencoder_forward(x, params):
    """Forward pass of AutoEncoder: conv1 -> ReLU -> deconv2 -> ReLU."""
    w1, b1, w2, b2 = params
    N, Cin, H, W = x.shape
    Cmid = w1.shape[0]
    # ConvTranspose2d (stride=1, pad=2, output_size=input) == conv with the
    # spatially flipped kernel and swapped channel axes.
    w2conv = jnp.transpose(jnp.flip(w2, axis=(2, 3)), (1, 0, 2, 3))
    Cout = w2conv.shape[0]

    RS = _round_up(W + PAD, 8)                   # strided row pitch (zero gap >= PAD)
    HRS = H * RS                                 # lanes per strided image (384)
    HALO = _round_up(PAD * RS + PAD, 128)        # zero halo before row 0
    TAIL = _round_up(PAD * RS + W + PAD, 128)    # zero halo after last row
    XW = HALO + HRS + TAIL

    # Wrapper-side layout plumbing: lane(y, x) = HALO + y*RS + x, zeros elsewhere.
    xs = jnp.pad(x.astype(jnp.float32), ((0, 0), (0, 0), (0, 0), (0, RS - W)))
    xs = xs.reshape(N, Cin, HRS)
    xs = jnp.pad(xs, ((0, 0), (0, 0), (HALO, TAIL)))

    # im2col weight matrices (zero-padded columns are matched by zeroed pad rows
    # of the slab scratch inside the kernel).
    NT1, NT2 = Cin * K * K, Cmid * K * K
    T1P, T2P = _round_up(NT1, 8), _round_up(NT2, 8)
    w1mat = jnp.transpose(w1, (0, 2, 3, 1)).reshape(Cmid, NT1).astype(jnp.float32)
    w1mat = jnp.pad(w1mat, ((0, 0), (0, T1P - NT1)))
    w2mat = jnp.transpose(w2conv, (0, 2, 3, 1)).reshape(Cout, NT2).astype(jnp.float32)
    w2mat = jnp.pad(w2mat, ((0, 0), (0, T2P - NT2)))
    b1c = b1.reshape(Cmid, 1).astype(jnp.float32)
    b2c = b2.reshape(Cout, 1).astype(jnp.float32)

    # 2-way "parallel" batch split keeps both v7x TensorCores busy; on v5e/v6e
    # (1 TC) it is just a short loop over fat per-step blocks.
    G = 2 if (N >= 2 and N % 2 == 0) else 1
    NB = N // G

    kernel = functools.partial(_fused_kernel,
                               Cin, Cmid, Cout, NB, W, RS, HRS, HALO)
    out = pl.pallas_call(
        kernel,
        out_shape=jax.ShapeDtypeStruct((N, Cout, HRS), jnp.float32),
        grid=(G,),
        in_specs=[
            pl.BlockSpec((Cmid, T1P), lambda g: (0, 0)),      # W1 im2col matrix
            pl.BlockSpec((Cmid, 1), lambda g: (0, 0)),        # b1
            pl.BlockSpec((Cout, T2P), lambda g: (0, 0)),      # W2 (as conv) matrix
            pl.BlockSpec((Cout, 1), lambda g: (0, 0)),        # b2
            pl.BlockSpec((NB, Cin, XW), lambda g: (g, 0, 0)),  # strided input
        ],
        out_specs=pl.BlockSpec((NB, Cout, HRS), lambda g: (g, 0, 0)),
        scratch_shapes=[
            pltpu.VMEM((Cmid, XW), jnp.float32),    # strided hidden activation
            pltpu.VMEM((T1P, HRS), jnp.float32),    # layer-1 tap slab
            pltpu.VMEM((T2P, HRS), jnp.float32),    # layer-2 tap slab
        ],
        compiler_params=pltpu.CompilerParams(
            dimension_semantics=("parallel",)),
    )(w1mat, b1c, w2mat, b2c, xs)

    # Strip the strided gap columns: (N, Cout, H*RS) -> (N, Cout, H, W).
    return out.reshape(N, Cout, H, RS)[..., :W]


def init_params(key):
    """Deterministic synthetic init mimicking kaiming_uniform + default bias."""
    k1, k2, k3, k4 = jax.random.split(key, 4)
    # conv1: Conv2d(1, 4, 5) -> weight (4, 1, 5, 5), bias (4,)
    fan_in1 = 1 * K * K
    bound1 = (6.0 / fan_in1) ** 0.5
    w1 = jax.random.uniform(k1, (4, 1, K, K), jnp.float32, -bound1, bound1)
    bb1 = 1.0 / fan_in1 ** 0.5
    b1 = jax.random.uniform(k2, (4,), jnp.float32, -bb1, bb1)
    # deconv2: ConvTranspose2d(4, 1, 5) -> weight (4, 1, 5, 5), bias (1,)
    fan_in2 = 1 * K * K
    bound2 = (6.0 / fan_in2) ** 0.5
    w2 = jax.random.uniform(k3, (4, 1, K, K), jnp.float32, -bound2, bound2)
    bb2 = 1.0 / (4 * K * K) ** 0.5
    b2 = jax.random.uniform(k4, (1,), jnp.float32, -bb2, bb2)
    return w1, b1, w2, b2


def _reference_forward(x, params):
    """Pure-JAX reference (lax conv) for a correctness sanity check."""
    w1, b1, w2, b2 = params
    dn = ("NCHW", "OIHW", "NCHW")
    prec = jax.lax.Precision.HIGHEST
    h = jax.lax.conv_general_dilated(
        x, w1, (1, 1), [(PAD, PAD), (PAD, PAD)], dimension_numbers=dn,
        precision=prec)
    h = jnp.maximum(h + b1[None, :, None, None], 0.0)
    w2conv = jnp.transpose(jnp.flip(w2, axis=(2, 3)), (1, 0, 2, 3))
    y = jax.lax.conv_general_dilated(
        h, w2conv, (1, 1), [(PAD, PAD), (PAD, PAD)], dimension_numbers=dn,
        precision=prec)
    return jnp.maximum(y + b2[None, :, None, None], 0.0)


if __name__ == "__main__":
    key = jax.random.PRNGKey(0)
    kx, kp = jax.random.split(key)
    # Conv2d(1, 4, ...) => single input channel.
    x = jax.random.normal(kx, (2, 1, 16, 16), jnp.float32)
    params = init_params(kp)

    y = jax.jit(autoencoder_forward)(x, params)
    y = jax.block_until_ready(y)
    assert y.shape == x.shape, y.shape

    y_ref = _reference_forward(x, params)
    assert jnp.allclose(y, y_ref, atol=2e-4, rtol=2e-4), float(
        jnp.max(jnp.abs(y - y_ref)))

    print("KERNEL_OK")
</pallas_src>

<mosaic_0001>
module attributes {stable_mosaic.version = 11 : i64} {
  func.func @_fused_kernel(%arg0: i32, %arg1: memref<4x32xf32, #tpu.memory_space<vmem>>, %arg2: memref<4x1xf32, #tpu.memory_space<vmem>>, %arg3: memref<1x104xf32, #tpu.memory_space<vmem>>, %arg4: memref<1x1xf32, #tpu.memory_space<vmem>>, %arg5: memref<1x1x640xf32, #tpu.memory_space<vmem>>, %arg6: memref<1x1x384xf32, #tpu.memory_space<vmem>>, %arg7: memref<4x640xf32, #tpu.memory_space<vmem>>, %arg8: memref<32x384xf32, #tpu.memory_space<vmem>>, %arg9: memref<104x384xf32, #tpu.memory_space<vmem>>) attributes {dimension_semantics = [#tpu.dimension_semantics<parallel>], iteration_bounds = array<i64: 2>, scalar_prefetch = 0 : i64, scratch_operands = 3 : i64, tpu.core_type = #tpu.core_type<tc>, window_params = [{pipeline_mode = #tpu.pipeline_mode<synchronous>, transform_indices = @transform_0, window_bounds = array<i64: 4, 32>}, {pipeline_mode = #tpu.pipeline_mode<synchronous>, transform_indices = @transform_1, window_bounds = array<i64: 4, 1>}, {pipeline_mode = #tpu.pipeline_mode<synchronous>, transform_indices = @transform_2, window_bounds = array<i64: 1, 104>}, {pipeline_mode = #tpu.pipeline_mode<synchronous>, transform_indices = @transform_3, window_bounds = array<i64: 1, 1>}, {transform_indices = @transform_4, window_bounds = array<i64: 1, 1, 640>}, {transform_indices = @transform_5, window_bounds = array<i64: 1, 1, 384>}]} {
    %0 = tpu.iota {dimensions = array<i32: 1>} : vector<1x384xi32>
    %c24_i32 = arith.constant 24 : i32
    %c0_i32 = arith.constant 0 : i32
    %1 = arith.cmpi eq, %c24_i32, %c0_i32 : i32
    %c1_i32 = arith.constant 1 : i32
    %2 = arith.select %1, %c1_i32, %c24_i32 : i32
    %3 = vector.broadcast %2 : i32 to vector<1x384xi32>
    %4 = arith.remsi %0, %3 : vector<1x384xi32>
    %c0_i32_0 = arith.constant 0 : i32
    %5 = vector.broadcast %c0_i32_0 : i32 to vector<1x384xi32>
    %6 = arith.cmpi ne, %4, %5 : vector<1x384xi32>
    %c0_i32_1 = arith.constant 0 : i32
    %7 = vector.broadcast %c0_i32_1 : i32 to vector<1x384xi32>
    %8 = arith.cmpi slt, %4, %7 : vector<1x384xi32>
    %c0_i32_2 = arith.constant 0 : i32
    %9 = arith.cmpi slt, %2, %c0_i32_2 : i32
    %10 = vector.broadcast %9 : i1 to vector<1x384xi1>
    %11 = vector.broadcast %10 : vector<1x384xi1> to vector<1x384xi1>
    %12 = arith.xori %8, %11 : vector<1x384xi1>
    %13 = arith.andi %12, %6 : vector<1x384xi1>
    %14 = vector.broadcast %2 : i32 to vector<1x384xi32>
    %15 = arith.addi %4, %14 : vector<1x384xi32>
    %16 = arith.select %13, %15, %4 : vector<1x384xi1>, vector<1x384xi32>
    %c16_i32 = arith.constant 16 : i32
    %17 = vector.broadcast %c16_i32 : i32 to vector<1x384xi32>
    %18 = arith.cmpi slt, %16, %17 : vector<1x384xi32>
    %cst = arith.constant 0.000000e+00 : f32
    %19 = vector.broadcast %cst : f32 to vector<4x128xf32>
    %c0 = arith.constant 0 : index
    %c0_3 = arith.constant 0 : index
    %20 = vector.load %arg7[%c0, %c0_3] : memref<4x640xf32, #tpu.memory_space<vmem>>, vector<4x128xf32>
    tpu.vector_store %arg7[%c0, %c0_3], %19 {strides = array<i32>} : memref<4x640xf32, #tpu.memory_space<vmem>>, vector<4x128xf32>,
    %cst_4 = arith.constant 0.000000e+00 : f32
    %21 = vector.broadcast %cst_4 : f32 to vector<4x128xf32>
    %c0_5 = arith.constant 0 : index
    %c512 = arith.constant 512 : index
    %22 = vector.load %arg7[%c0_5, %c512] : memref<4x640xf32, #tpu.memory_space<vmem>>, vector<4x128xf32>
    tpu.vector_store %arg7[%c0_5, %c512], %21 {strides = array<i32>} : memref<4x640xf32, #tpu.memory_space<vmem>>, vector<4x128xf32>,
    %cst_6 = arith.constant 0.000000e+00 : f32
    %23 = vector.broadcast %cst_6 : f32 to vector<7x384xf32>
    %c25 = arith.constant 25 : index
    %c0_7 = arith.constant 0 : index
    %24 = vector.load %arg8[%c25, %c0_7] : memref<32x384xf32, #tpu.memory_space<vmem>>, vector<7x384xf32>
    tpu.vector_store %arg8[%c25, %c0_7], %23 {strides = array<i32>} : memref<32x384xf32, #tpu.memory_space<vmem>>, vector<7x384xf32>,
    %cst_8 = arith.constant 0.000000e+00 : f32
    %25 = vector.broadcast %cst_8 : f32 to vector<4x384xf32>
    %c100 = arith.constant 100 : index
    %c0_9 = arith.constant 0 : index
    %26 = vector.load %arg9[%c100, %c0_9] : memref<104x384xf32, #tpu.memory_space<vmem>>, vector<4x384xf32>
    tpu.vector_store %arg9[%c100, %c0_9], %25 {strides = array<i32>} : memref<104x384xf32, #tpu.memory_space<vmem>>, vector<4x384xf32>,
    %c0_10 = arith.constant 0 : index
    %c0_11 = arith.constant 0 : index
    %27 = vector.load %arg1[%c0_10, %c0_11] : memref<4x32xf32, #tpu.memory_space<vmem>>, vector<4x32xf32>
    %c0_12 = arith.constant 0 : index
    %c0_13 = arith.constant 0 : index
    %28 = vector.load %arg2[%c0_12, %c0_13] : memref<4x1xf32, #tpu.memory_space<vmem>>, vector<4x1xf32>
    %c0_14 = arith.constant 0 : index
    %c0_15 = arith.constant 0 : index
    %29 = vector.load %arg3[%c0_14, %c0_15] : memref<1x104xf32, #tpu.memory_space<vmem>>, vector<1x104xf32>
    %c0_16 = arith.constant 0 : index
    %c0_17 = arith.constant 0 : index
    %30 = vector.load %arg4[%c0_16, %c0_17] : memref<1x1xf32, #tpu.memory_space<vmem>>, vector<1x1xf32>
    %c0_18 = arith.constant 0 : index
    %c0_19 = arith.constant 0 : index
    %c78 = arith.constant 78 : index
    %31 = vector.load %arg5[%c0_18, %c0_19, %c78] : memref<1x1x640xf32, #tpu.memory_space<vmem>>, vector<1x1x384xf32>
    %32 = vector.shape_cast %31 : vector<1x1x384xf32> to vector<1x384xf32>
    %c0_20 = arith.constant 0 : index
    %c0_21 = arith.constant 0 : index
    %33 = vector.load %arg8[%c0_20, %c0_21] : memref<32x384xf32, #tpu.memory_space<vmem>>, vector<1x384xf32>
    tpu.vector_store %arg8[%c0_20, %c0_21], %32 {strides = array<i32>} : memref<32x384xf32, #tpu.memory_space<vmem>>, vector<1x384xf32>,
    %c0_22 = arith.constant 0 : index
    %c0_23 = arith.constant 0 : index
    %c79 = arith.constant 79 : index
    %34 = vector.load %arg5[%c0_22, %c0_23, %c79] : memref<1x1x640xf32, #tpu.memory_space<vmem>>, vector<1x1x384xf32>
    %35 = vector.shape_cast %34 : vector<1x1x384xf32> to vector<1x384xf32>
    %c1 = arith.constant 1 : index
    %c0_24 = arith.constant 0 : index
    %36 = vector.load %arg8[%c1, %c0_24] : memref<32x384xf32, #tpu.memory_space<vmem>>, vector<1x384xf32>
    tpu.vector_store %arg8[%c1, %c0_24], %35 {strides = array<i32>} : memref<32x384xf32, #tpu.memory_space<vmem>>, vector<1x384xf32>,
    %c0_25 = arith.constant 0 : index
    %c0_26 = arith.constant 0 : index
    %c80 = arith.constant 80 : index
    %37 = vector.load %arg5[%c0_25, %c0_26, %c80] : memref<1x1x640xf32, #tpu.memory_space<vmem>>, vector<1x1x384xf32>
    %38 = vector.shape_cast %37 : vector<1x1x384xf32> to vector<1x384xf32>
    %c2 = arith.constant 2 : index
    %c0_27 = arith.constant 0 : index
    %39 = vector.load %arg8[%c2, %c0_27] : memref<32x384xf32, #tpu.memory_space<vmem>>, vector<1x384xf32>
    tpu.vector_store %arg8[%c2, %c0_27], %38 {strides = array<i32>} : memref<32x384xf32, #tpu.memory_space<vmem>>, vector<1x384xf32>,
    %c0_28 = arith.constant 0 : index
    %c0_29 = arith.constant 0 : index
    %c81 = arith.constant 81 : index
    %40 = vector.load %arg5[%c0_28, %c0_29, %c81] : memref<1x1x640xf32, #tpu.memory_space<vmem>>, vector<1x1x384xf32>
    %41 = vector.shape_cast %40 : vector<1x1x384xf32> to vector<1x384xf32>
    %c3 = arith.constant 3 : index
    %c0_30 = arith.constant 0 : index
    %42 = vector.load %arg8[%c3, %c0_30] : memref<32x384xf32, #tpu.memory_space<vmem>>, vector<1x384xf32>
    tpu.vector_store %arg8[%c3, %c0_30], %41 {strides = array<i32>} : memref<32x384xf32, #tpu.memory_space<vmem>>, vector<1x384xf32>,
    %c0_31 = arith.constant 0 : index
    %c0_32 = arith.constant 0 : index
    %c82 = arith.constant 82 : index
    %43 = vector.load %arg5[%c0_31, %c0_32, %c82] : memref<1x1x640xf32, #tpu.memory_space<vmem>>, vector<1x1x384xf32>
    %44 = vector.shape_cast %43 : vector<1x1x384xf32> to vector<1x384xf32>
    %c4 = arith.constant 4 : index
    %c0_33 = arith.constant 0 : index
    %45 = vector.load %arg8[%c4, %c0_33] : memref<32x384xf32, #tpu.memory_space<vmem>>, vector<1x384xf32>
    tpu.vector_store %arg8[%c4, %c0_33], %44 {strides = array<i32>} : memref<32x384xf32, #tpu.memory_space<vmem>>, vector<1x384xf32>,
    %c0_34 = arith.constant 0 : index
    %c0_35 = arith.constant 0 : index
    %c102 = arith.constant 102 : index
    %46 = vector.load %arg5[%c0_34, %c0_35, %c102] : memref<1x1x640xf32, #tpu.memory_space<vmem>>, vector<1x1x384xf32>
    %47 = vector.shape_cast %46 : vector<1x1x384xf32> to vector<1x384xf32>
    %c5 = arith.constant 5 : index
    %c0_36 = arith.constant 0 : index
    %48 = vector.load %arg8[%c5, %c0_36] : memref<32x384xf32, #tpu.memory_space<vmem>>, vector<1x384xf32>
    tpu.vector_store %arg8[%c5, %c0_36], %47 {strides = array<i32>} : memref<32x384xf32, #tpu.memory_space<vmem>>, vector<1x384xf32>,
    %c0_37 = arith.constant 0 : index
    %c0_38 = arith.constant 0 : index
    %c103 = arith.constant 103 : index
    %49 = vector.load %arg5[%c0_37, %c0_38, %c103] : memref<1x1x640xf32, #tpu.memory_space<vmem>>, vector<1x1x384xf32>
    %50 = vector.shape_cast %49 : vector<1x1x384xf32> to vector<1x384xf32>
    %c6 = arith.constant 6 : index
    %c0_39 = arith.constant 0 : index
    %51 = vector.load %arg8[%c6, %c0_39] : memref<32x384xf32, #tpu.memory_space<vmem>>, vector<1x384xf32>
    tpu.vector_store %arg8[%c6, %c0_39], %50 {strides = array<i32>} : memref<32x384xf32, #tpu.memory_space<vmem>>, vector<1x384xf32>,
    %c0_40 = arith.constant 0 : index
    %c0_41 = arith.constant 0 : index
    %c104 = arith.constant 104 : index
    %52 = vector.load %arg5[%c0_40, %c0_41, %c104] : memref<1x1x640xf32, #tpu.memory_space<vmem>>, vector<1x1x384xf32>
    %53 = vector.shape_cast %52 : vector<1x1x384xf32> to vector<1x384xf32>
    %c7 = arith.constant 7 : index
    %c0_42 = arith.constant 0 : index
    %54 = vector.load %arg8[%c7, %c0_42] : memref<32x384xf32, #tpu.memory_space<vmem>>, vector<1x384xf32>
    tpu.vector_store %arg8[%c7, %c0_42], %53 {strides = array<i32>} : memref<32x384xf32, #tpu.memory_space<vmem>>, vector<1x384xf32>,
    %c0_43 = arith.constant 0 : index
    %c0_44 = arith.constant 0 : index
    %c105 = arith.constant 105 : index
    %55 = vector.load %arg5[%c0_43, %c0_44, %c105] : memref<1x1x640xf32, #tpu.memory_space<vmem>>, vector<1x1x384xf32>
    %56 = vector.shape_cast %55 : vector<1x1x384xf32> to vector<1x384xf32>
    %c8 = arith.constant 8 : index
    %c0_45 = arith.constant 0 : index
    %57 = vector.load %arg8[%c8, %c0_45] : memref<32x384xf32, #tpu.memory_space<vmem>>, vector<1x384xf32>
    tpu.vector_store %arg8[%c8, %c0_45], %56 {strides = array<i32>} : memref<32x384xf32, #tpu.memory_space<vmem>>, vector<1x384xf32>,
    %c0_46 = arith.constant 0 : index
    %c0_47 = arith.constant 0 : index
    %c106 = arith.constant 106 : index
    %58 = vector.load %arg5[%c0_46, %c0_47, %c106] : memref<1x1x640xf32, #tpu.memory_space<vmem>>, vector<1x1x384xf32>
    %59 = vector.shape_cast %58 : vector<1x1x384xf32> to vector<1x384xf32>
    %c9 = arith.constant 9 : index
    %c0_48 = arith.constant 0 : index
    %60 = vector.load %arg8[%c9, %c0_48] : memref<32x384xf32, #tpu.memory_space<vmem>>, vector<1x384xf32>
    tpu.vector_store %arg8[%c9, %c0_48], %59 {strides = array<i32>} : memref<32x384xf32, #tpu.memory_space<vmem>>, vector<1x384xf32>,
    %c0_49 = arith.constant 0 : index
    %c0_50 = arith.constant 0 : index
    %c126 = arith.constant 126 : index
    %61 = vector.load %arg5[%c0_49, %c0_50, %c126] : memref<1x1x640xf32, #tpu.memory_space<vmem>>, vector<1x1x384xf32>
    %62 = vector.shape_cast %61 : vector<1x1x384xf32> to vector<1x384xf32>
    %c10 = arith.constant 10 : index
    %c0_51 = arith.constant 0 : index
    %63 = vector.load %arg8[%c10, %c0_51] : memref<32x384xf32, #tpu.memory_space<vmem>>, vector<1x384xf32>
    tpu.vector_store %arg8[%c10, %c0_51], %62 {strides = array<i32>} : memref<32x384xf32, #tpu.memory_space<vmem>>, vector<1x384xf32>,
    %c0_52 = arith.constant 0 : index
    %c0_53 = arith.constant 0 : index
    %c127 = arith.constant 127 : index
    %64 = vector.load %arg5[%c0_52, %c0_53, %c127] : memref<1x1x640xf32, #tpu.memory_space<vmem>>, vector<1x1x384xf32>
    %65 = vector.shape_cast %64 : vector<1x1x384xf32> to vector<1x384xf32>
    %c11 = arith.constant 11 : index
    %c0_54 = arith.constant 0 : index
    %66 = vector.load %arg8[%c11, %c0_54] : memref<32x384xf32, #tpu.memory_space<vmem>>, vector<1x384xf32>
    tpu.vector_store %arg8[%c11, %c0_54], %65 {strides = array<i32>} : memref<32x384xf32, #tpu.memory_space<vmem>>, vector<1x384xf32>,
    %c0_55 = arith.constant 0 : index
    %c0_56 = arith.constant 0 : index
    %c128 = arith.constant 128 : index
    %67 = vector.load %arg5[%c0_55, %c0_56, %c128] : memref<1x1x640xf32, #tpu.memory_space<vmem>>, vector<1x1x384xf32>
    %68 = vector.shape_cast %67 : vector<1x1x384xf32> to vector<1x384xf32>
    %c12 = arith.constant 12 : index
    %c0_57 = arith.constant 0 : index
    %69 = vector.load %arg8[%c12, %c0_57] : memref<32x384xf32, #tpu.memory_space<vmem>>, vector<1x384xf32>
    tpu.vector_store %arg8[%c12, %c0_57], %68 {strides = array<i32>} : memref<32x384xf32, #tpu.memory_space<vmem>>, vector<1x384xf32>,
    %c0_58 = arith.constant 0 : index
    %c0_59 = arith.constant 0 : index
    %c129 = arith.constant 129 : index
    %70 = vector.load %arg5[%c0_58, %c0_59, %c129] : memref<1x1x640xf32, #tpu.memory_space<vmem>>, vector<1x1x384xf32>
    %71 = vector.shape_cast %70 : vector<1x1x384xf32> to vector<1x384xf32>
    %c13 = arith.constant 13 : index
    %c0_60 = arith.constant 0 : index
    %72 = vector.load %arg8[%c13, %c0_60] : memref<32x384xf32, #tpu.memory_space<vmem>>, vector<1x384xf32>
    tpu.vector_store %arg8[%c13, %c0_60], %71 {strides = array<i32>} : memref<32x384xf32, #tpu.memory_space<vmem>>, vector<1x384xf32>,
    %c0_61 = arith.constant 0 : index
    %c0_62 = arith.constant 0 : index
    %c130 = arith.constant 130 : index
    %73 = vector.load %arg5[%c0_61, %c0_62, %c130] : memref<1x1x640xf32, #tpu.memory_space<vmem>>, vector<1x1x384xf32>
    %74 = vector.shape_cast %73 : vector<1x1x384xf32> to vector<1x384xf32>
    %c14 = arith.constant 14 : index
    %c0_63 = arith.constant 0 : index
    %75 = vector.load %arg8[%c14, %c0_63] : memref<32x384xf32, #tpu.memory_space<vmem>>, vector<1x384xf32>
    tpu.vector_store %arg8[%c14, %c0_63], %74 {strides = array<i32>} : memref<32x384xf32, #tpu.memory_space<vmem>>, vector<1x384xf32>,
    %c0_64 = arith.constant 0 : index
    %c0_65 = arith.constant 0 : index
    %c150 = arith.constant 150 : index
    %76 = vector.load %arg5[%c0_64, %c0_65, %c150] : memref<1x1x640xf32, #tpu.memory_space<vmem>>, vector<1x1x384xf32>
    %77 = vector.shape_cast %76 : vector<1x1x384xf32> to vector<1x384xf32>
    %c15 = arith.constant 15 : index
    %c0_66 = arith.constant 0 : index
    %78 = vector.load %arg8[%c15, %c0_66] : memref<32x384xf32, #tpu.memory_space<vmem>>, vector<1x384xf32>
    tpu.vector_store %arg8[%c15, %c0_66], %77 {strides = array<i32>} : memref<32x384xf32, #tpu.memory_space<vmem>>, vector<1x384xf32>,
    %c0_67 = arith.constant 0 : index
    %c0_68 = arith.constant 0 : index
    %c151 = arith.constant 151 : index
    %79 = vector.load %arg5[%c0_67, %c0_68, %c151] : memref<1x1x640xf32, #tpu.memory_space<vmem>>, vector<1x1x384xf32>
    %80 = vector.shape_cast %79 : vector<1x1x384xf32> to vector<1x384xf32>
    %c16 = arith.constant 16 : index
    %c0_69 = arith.constant 0 : index
    %81 = vector.load %arg8[%c16, %c0_69] : memref<32x384xf32, #tpu.memory_space<vmem>>, vector<1x384xf32>
    tpu.vector_store %arg8[%c16, %c0_69], %80 {strides = array<i32>} : memref<32x384xf32, #tpu.memory_space<vmem>>, vector<1x384xf32>,
    %c0_70 = arith.constant 0 : index
    %c0_71 = arith.constant 0 : index
    %c152 = arith.constant 152 : index
    %82 = vector.load %arg5[%c0_70, %c0_71, %c152] : memref<1x1x640xf32, #tpu.memory_space<vmem>>, vector<1x1x384xf32>
    %83 = vector.shape_cast %82 : vector<1x1x384xf32> to vector<1x384xf32>
    %c17 = arith.constant 17 : index
    %c0_72 = arith.constant 0 : index
    %84 = vector.load %arg8[%c17, %c0_72] : memref<32x384xf32, #tpu.memory_space<vmem>>, vector<1x384xf32>
    tpu.vector_store %arg8[%c17, %c0_72], %83 {strides = array<i32>} : memref<32x384xf32, #tpu.memory_space<vmem>>, vector<1x384xf32>,
    %c0_73 = arith.constant 0 : index
    %c0_74 = arith.constant 0 : index
    %c153 = arith.constant 153 : index
    %85 = vector.load %arg5[%c0_73, %c0_74, %c153] : memref<1x1x640xf32, #tpu.memory_space<vmem>>, vector<1x1x384xf32>
    %86 = vector.shape_cast %85 : vector<1x1x384xf32> to vector<1x384xf32>
    %c18 = arith.constant 18 : index
    %c0_75 = arith.constant 0 : index
    %87 = vector.load %arg8[%c18, %c0_75] : memref<32x384xf32, #tpu.memory_space<vmem>>, vector<1x384xf32>
    tpu.vector_store %arg8[%c18, %c0_75], %86 {strides = array<i32>} : memref<32x384xf32, #tpu.memory_space<vmem>>, vector<1x384xf32>,
    %c0_76 = arith.constant 0 : index
    %c0_77 = arith.constant 0 : index
    %c154 = arith.constant 154 : index
    %88 = vector.load %arg5[%c0_76, %c0_77, %c154] : memref<1x1x640xf32, #tpu.memory_space<vmem>>, vector<1x1x384xf32>
    %89 = vector.shape_cast %88 : vector<1x1x384xf32> to vector<1x384xf32>
    %c19 = arith.constant 19 : index
    %c0_78 = arith.constant 0 : index
    %90 = vector.load %arg8[%c19, %c0_78] : memref<32x384xf32, #tpu.memory_space<vmem>>, vector<1x384xf32>
    tpu.vector_store %arg8[%c19, %c0_78], %89 {strides = array<i32>} : memref<32x384xf32, #tpu.memory_space<vmem>>, vector<1x384xf32>,
    %c0_79 = arith.constant 0 : index
    %c0_80 = arith.constant 0 : index
    %c174 = arith.constant 174 : index
    %91 = vector.load %arg5[%c0_79, %c0_80, %c174] : memref<1x1x640xf32, #tpu.memory_space<vmem>>, vector<1x1x384xf32>
    %92 = vector.shape_cast %91 : vector<1x1x384xf32> to vector<1x384xf32>
    %c20 = arith.constant 20 : index
    %c0_81 = arith.constant 0 : index
    %93 = vector.load %arg8[%c20, %c0_81] : memref<32x384xf32, #tpu.memory_space<vmem>>, vector<1x384xf32>
    tpu.vector_store %arg8[%c20, %c0_81], %92 {strides = array<i32>} : memref<32x384xf32, #tpu.memory_space<vmem>>, vector<1x384xf32>,
    %c0_82 = arith.constant 0 : index
    %c0_83 = arith.constant 0 : index
    %c175 = arith.constant 175 : index
    %94 = vector.load %arg5[%c0_82, %c0_83, %c175] : memref<1x1x640xf32, #tpu.memory_space<vmem>>, vector<1x1x384xf32>
    %95 = vector.shape_cast %94 : vector<1x1x384xf32> to vector<1x384xf32>
    %c21 = arith.constant 21 : index
    %c0_84 = arith.constant 0 : index
    %96 = vector.load %arg8[%c21, %c0_84] : memref<32x384xf32, #tpu.memory_space<vmem>>, vector<1x384xf32>
    tpu.vector_store %arg8[%c21, %c0_84], %95 {strides = array<i32>} : memref<32x384xf32, #tpu.memory_space<vmem>>, vector<1x384xf32>,
    %c0_85 = arith.constant 0 : index
    %c0_86 = arith.constant 0 : index
    %c176 = arith.constant 176 : index
    %97 = vector.load %arg5[%c0_85, %c0_86, %c176] : memref<1x1x640xf32, #tpu.memory_space<vmem>>, vector<1x1x384xf32>
    %98 = vector.shape_cast %97 : vector<1x1x384xf32> to vector<1x384xf32>
    %c22 = arith.constant 22 : index
    %c0_87 = arith.constant 0 : index
    %99 = vector.load %arg8[%c22, %c0_87] : memref<32x384xf32, #tpu.memory_space<vmem>>, vector<1x384xf32>
    tpu.vector_store %arg8[%c22, %c0_87], %98 {strides = array<i32>} : memref<32x384xf32, #tpu.memory_space<vmem>>, vector<1x384xf32>,
    %c0_88 = arith.constant 0 : index
    %c0_89 = arith.constant 0 : index
    %c177 = arith.constant 177 : index
    %100 = vector.load %arg5[%c0_88, %c0_89, %c177] : memref<1x1x640xf32, #tpu.memory_space<vmem>>, vector<1x1x384xf32>
    %101 = vector.shape_cast %100 : vector<1x1x384xf32> to vector<1x384xf32>
    %c23 = arith.constant 23 : index
    %c0_90 = arith.constant 0 : index
    %102 = vector.load %arg8[%c23, %c0_90] : memref<32x384xf32, #tpu.memory_space<vmem>>, vector<1x384xf32>
    tpu.vector_store %arg8[%c23, %c0_90], %101 {strides = array<i32>} : memref<32x384xf32, #tpu.memory_space<vmem>>, vector<1x384xf32>,
    %c0_91 = arith.constant 0 : index
    %c0_92 = arith.constant 0 : index
    %c178 = arith.constant 178 : index
    %103 = vector.load %arg5[%c0_91, %c0_92, %c178] : memref<1x1x640xf32, #tpu.memory_space<vmem>>, vector<1x1x384xf32>
    %104 = vector.shape_cast %103 : vector<1x1x384xf32> to vector<1x384xf32>
    %c24 = arith.constant 24 : index
    %c0_93 = arith.constant 0 : index
    %105 = vector.load %arg8[%c24, %c0_93] : memref<32x384xf32, #tpu.memory_space<vmem>>, vector<1x384xf32>
    tpu.vector_store %arg8[%c24, %c0_93], %104 {strides = array<i32>} : memref<32x384xf32, #tpu.memory_space<vmem>>, vector<1x384xf32>,
    %c0_94 = arith.constant 0 : index
    %c0_95 = arith.constant 0 : index
    %106 = vector.load %arg8[%c0_94, %c0_95] : memref<32x384xf32, #tpu.memory_space<vmem>>, vector<32x384xf32>
    %cst_96 = arith.constant dense<0.000000e+00> : vector<4x384xf32>
    %107 = tpu.matmul %27, %106, %cst_96 {dimension_numbers = #tpu.dot_dimension_numbers<[1], [0], [0], [1], [0, 0, 1, 1], [], []>, precision = #tpu.contract_precision<fp32>} : vector<4x32xf32>, vector<32x384xf32>, vector<4x384xf32> -> vector<4x384xf32>
    %108 = vector.broadcast %28 : vector<4x1xf32> to vector<4x384xf32>
    %109 = arith.addf %107, %108 : vector<4x384xf32>
    %cst_97 = arith.constant 0.000000e+00 : f32
    %110 = vector.broadcast %cst_97 : f32 to vector<4x384xf32>
    %111 = arith.maximumf %109, %110 : vector<4x384xf32>
    %cst_98 = arith.constant 0.000000e+00 : f32
    %112 = vector.shape_cast %18 : vector<1x384xi1> to vector<1x384xi1>
    %113 = vector.broadcast %112 : vector<1x384xi1> to vector<4x384xi1>
    %114 = vector.broadcast %cst_98 : f32 to vector<4x384xf32>
    %115 = arith.select %113, %111, %114 : vector<4x384xi1>, vector<4x384xf32>
    %c0_99 = arith.constant 0 : index
    %c128_100 = arith.constant 128 : index
    %116 = vector.load %arg7[%c0_99, %c128_100] : memref<4x640xf32, #tpu.memory_space<vmem>>, vector<4x384xf32>
    tpu.vector_store %arg7[%c0_99, %c128_100], %115 {strides = array<i32>} : memref<4x640xf32, #tpu.memory_space<vmem>>, vector<4x384xf32>,
    %c0_101 = arith.constant 0 : index
    %c78_102 = arith.constant 78 : index
    %117 = vector.load %arg7[%c0_101, %c78_102] : memref<4x640xf32, #tpu.memory_space<vmem>>, vector<4x384xf32>
    %c0_103 = arith.constant 0 : index
    %c0_104 = arith.constant 0 : index
    %118 = vector.load %arg9[%c0_103, %c0_104] : memref<104x384xf32, #tpu.memory_space<vmem>>, vector<4x384xf32>
    tpu.vector_store %arg9[%c0_103, %c0_104], %117 {strides = array<i32>} : memref<104x384xf32, #tpu.memory_space<vmem>>, vector<4x384xf32>,
    %c0_105 = arith.constant 0 : index
    %c79_106 = arith.constant 79 : index
    %119 = vector.load %arg7[%c0_105, %c79_106] : memref<4x640xf32, #tpu.memory_space<vmem>>, vector<4x384xf32>
    %c4_107 = arith.constant 4 : index
    %c0_108 = arith.constant 0 : index
    %120 = vector.load %arg9[%c4_107, %c0_108] : memref<104x384xf32, #tpu.memory_space<vmem>>, vector<4x384xf32>
    tpu.vector_store %arg9[%c4_107, %c0_108], %119 {strides = array<i32>} : memref<104x384xf32, #tpu.memory_space<vmem>>, vector<4x384xf32>,
    %c0_109 = arith.constant 0 : index
    %c80_110 = arith.constant 80 : index
    %121 = vector.load %arg7[%c0_109, %c80_110] : memref<4x640xf32, #tpu.memory_space<vmem>>, vector<4x384xf32>
    %c8_111 = arith.constant 8 : index
    %c0_112 = arith.constant 0 : index
    %122 = vector.load %arg9[%c8_111, %c0_112] : memref<104x384xf32, #tpu.memory_space<vmem>>, vector<4x384xf32>
    tpu.vector_store %arg9[%c8_111, %c0_112], %121 {strides = array<i32>} : memref<104x384xf32, #tpu.memory_space<vmem>>, vector<4x384xf32>,
    %c0_113 = arith.constant 0 : index
    %c81_114 = arith.constant 81 : index
    %123 = vector.load %arg7[%c0_113, %c81_114] : memref<4x640xf32, #tpu.memory_space<vmem>>, vector<4x384xf32>
    %c12_115 = arith.constant 12 : index
    %c0_116 = arith.constant 0 : index
    %124 = vector.load %arg9[%c12_115, %c0_116] : memref<104x384xf32, #tpu.memory_space<vmem>>, vector<4x384xf32>
    tpu.vector_store %arg9[%c12_115, %c0_116], %123 {strides = array<i32>} : memref<104x384xf32, #tpu.memory_space<vmem>>, vector<4x384xf32>,
    %c0_117 = arith.constant 0 : index
    %c82_118 = arith.constant 82 : index
    %125 = vector.load %arg7[%c0_117, %c82_118] : memref<4x640xf32, #tpu.memory_space<vmem>>, vector<4x384xf32>
    %c16_119 = arith.constant 16 : index
    %c0_120 = arith.constant 0 : index
    %126 = vector.load %arg9[%c16_119, %c0_120] : memref<104x384xf32, #tpu.memory_space<vmem>>, vector<4x384xf32>
    tpu.vector_store %arg9[%c16_119, %c0_120], %125 {strides = array<i32>} : memref<104x384xf32, #tpu.memory_space<vmem>>, vector<4x384xf32>,
    %c0_121 = arith.constant 0 : index
    %c102_122 = arith.constant 102 : index
    %127 = vector.load %arg7[%c0_121, %c102_122] : memref<4x640xf32, #tpu.memory_space<vmem>>, vector<4x384xf32>
    %c20_123 = arith.constant 20 : index
    %c0_124 = arith.constant 0 : index
    %128 = vector.load %arg9[%c20_123, %c0_124] : memref<104x384xf32, #tpu.memory_space<vmem>>, vector<4x384xf32>
    tpu.vector_store %arg9[%c20_123, %c0_124], %127 {strides = array<i32>} : memref<104x384xf32, #tpu.memory_space<vmem>>, vector<4x384xf32>,
    %c0_125 = arith.constant 0 : index
    %c103_126 = arith.constant 103 : index
    %129 = vector.load %arg7[%c0_125, %c103_126] : memref<4x640xf32, #tpu.memory_space<vmem>>, vector<4x384xf32>
    %c24_127 = arith.constant 24 : index
    %c0_128 = arith.constant 0 : index
    %130 = vector.load %arg9[%c24_127, %c0_128] : memref<104x384xf32, #tpu.memory_space<vmem>>, vector<4x384xf32>
    tpu.vector_store %arg9[%c24_127, %c0_128], %129 {strides = array<i32>} : memref<104x384xf32, #tpu.memory_space<vmem>>, vector<4x384xf32>,
    %c0_129 = arith.constant 0 : index
    %c104_130 = arith.constant 104 : index
    %131 = vector.load %arg7[%c0_129, %c104_130] : memref<4x640xf32, #tpu.memory_space<vmem>>, vector<4x384xf32>
    %c28 = arith.constant 28 : index
    %c0_131 = arith.constant 0 : index
    %132 = vector.load %arg9[%c28, %c0_131] : memref<104x384xf32, #tpu.memory_space<vmem>>, vector<4x384xf32>
    tpu.vector_store %arg9[%c28, %c0_131], %131 {strides = array<i32>} : memref<104x384xf32, #tpu.memory_space<vmem>>, vector<4x384xf32>,
    %c0_132 = arith.constant 0 : index
    %c105_133 = arith.constant 105 : index
    %133 = vector.load %arg7[%c0_132, %c105_133] : memref<4x640xf32, #tpu.memory_space<vmem>>, vector<4x384xf32>
    %c32 = arith.constant 32 : index
    %c0_134 = arith.constant 0 : index
    %134 = vector.load %arg9[%c32, %c0_134] : memref<104x384xf32, #tpu.memory_space<vmem>>, vector<4x384xf32>
    tpu.vector_store %arg9[%c32, %c0_134], %133 {strides = array<i32>} : memref<104x384xf32, #tpu.memory_space<vmem>>, vector<4x384xf32>,
    %c0_135 = arith.constant 0 : index
    %c106_136 = arith.constant 106 : index
    %135 = vector.load %arg7[%c0_135, %c106_136] : memref<4x640xf32, #tpu.memory_space<vmem>>, vector<4x384xf32>
    %c36 = arith.constant 36 : index
    %c0_137 = arith.constant 0 : index
    %136 = vector.load %arg9[%c36, %c0_137] : memref<104x384xf32, #tpu.memory_space<vmem>>, vector<4x384xf32>
    tpu.vector_store %arg9[%c36, %c0_137], %135 {strides = array<i32>} : memref<104x384xf32, #tpu.memory_space<vmem>>, vector<4x384xf32>,
    %c0_138 = arith.constant 0 : index
    %c126_139 = arith.constant 126 : index
    %137 = vector.load %arg7[%c0_138, %c126_139] : memref<4x640xf32, #tpu.memory_space<vmem>>, vector<4x384xf32>
    %c40 = arith.constant 40 : index
    %c0_140 = arith.constant 0 : index
    %138 = vector.load %arg9[%c40, %c0_140] : memref<104x384xf32, #tpu.memory_space<vmem>>, vector<4x384xf32>
    tpu.vector_store %arg9[%c40, %c0_140], %137 {strides = array<i32>} : memref<104x384xf32, #tpu.memory_space<vmem>>, vector<4x384xf32>,
    %c0_141 = arith.constant 0 : index
    %c127_142 = arith.constant 127 : index
    %139 = vector.load %arg7[%c0_141, %c127_142] : memref<4x640xf32, #tpu.memory_space<vmem>>, vector<4x384xf32>
    %c44 = arith.constant 44 : index
    %c0_143 = arith.constant 0 : index
    %140 = vector.load %arg9[%c44, %c0_143] : memref<104x384xf32, #tpu.memory_space<vmem>>, vector<4x384xf32>
    tpu.vector_store %arg9[%c44, %c0_143], %139 {strides = array<i32>} : memref<104x384xf32, #tpu.memory_space<vmem>>, vector<4x384xf32>,
    %c0_144 = arith.constant 0 : index
    %c128_145 = arith.constant 128 : index
    %141 = vector.load %arg7[%c0_144, %c128_145] : memref<4x640xf32, #tpu.memory_space<vmem>>, vector<4x384xf32>
    %c48 = arith.constant 48 : index
    %c0_146 = arith.constant 0 : index
    %142 = vector.load %arg9[%c48, %c0_146] : memref<104x384xf32, #tpu.memory_space<vmem>>, vector<4x384xf32>
    tpu.vector_store %arg9[%c48, %c0_146], %141 {strides = array<i32>} : memref<104x384xf32, #tpu.memory_space<vmem>>, vector<4x384xf32>,
    %c0_147 = arith.constant 0 : index
    %c129_148 = arith.constant 129 : index
    %143 = vector.load %arg7[%c0_147, %c129_148] : memref<4x640xf32, #tpu.memory_space<vmem>>, vector<4x384xf32>
    %c52 = arith.constant 52 : index
    %c0_149 = arith.constant 0 : index
    %144 = vector.load %arg9[%c52, %c0_149] : memref<104x384xf32, #tpu.memory_space<vmem>>, vector<4x384xf32>
    tpu.vector_store %arg9[%c52, %c0_149], %143 {strides = array<i32>} : memref<104x384xf32, #tpu.memory_space<vmem>>, vector<4x384xf32>,
    %c0_150 = arith.constant 0 : index
    %c130_151 = arith.constant 130 : index
    %145 = vector.load %arg7[%c0_150, %c130_151] : memref<4x640xf32, #tpu.memory_space<vmem>>, vector<4x384xf32>
    %c56 = arith.constant 56 : index
    %c0_152 = arith.constant 0 : index
    %146 = vector.load %arg9[%c56, %c0_152] : memref<104x384xf32, #tpu.memory_space<vmem>>, vector<4x384xf32>
    tpu.vector_store %arg9[%c56, %c0_152], %145 {strides = array<i32>} : memref<104x384xf32, #tpu.memory_space<vmem>>, vector<4x384xf32>,
    %c0_153 = arith.constant 0 : index
    %c150_154 = arith.constant 150 : index
    %147 = vector.load %arg7[%c0_153, %c150_154] : memref<4x640xf32, #tpu.memory_space<vmem>>, vector<4x384xf32>
    %c60 = arith.constant 60 : index
    %c0_155 = arith.constant 0 : index
    %148 = vector.load %arg9[%c60, %c0_155] : memref<104x384xf32, #tpu.memory_space<vmem>>, vector<4x384xf32>
    tpu.vector_store %arg9[%c60, %c0_155], %147 {strides = array<i32>} : memref<104x384xf32, #tpu.memory_space<vmem>>, vector<4x384xf32>,
    %c0_156 = arith.constant 0 : index
    %c151_157 = arith.constant 151 : index
    %149 = vector.load %arg7[%c0_156, %c151_157] : memref<4x640xf32, #tpu.memory_space<vmem>>, vector<4x384xf32>
    %c64 = arith.constant 64 : index
    %c0_158 = arith.constant 0 : index
    %150 = vector.load %arg9[%c64, %c0_158] : memref<104x384xf32, #tpu.memory_space<vmem>>, vector<4x384xf32>
    tpu.vector_store %arg9[%c64, %c0_158], %149 {strides = array<i32>} : memref<104x384xf32, #tpu.memory_space<vmem>>, vector<4x384xf32>,
    %c0_159 = arith.constant 0 : index
    %c152_160 = arith.constant 152 : index
    %151 = vector.load %arg7[%c0_159, %c152_160] : memref<4x640xf32, #tpu.memory_space<vmem>>, vector<4x384xf32>
    %c68 = arith.constant 68 : index
    %c0_161 = arith.constant 0 : index
    %152 = vector.load %arg9[%c68, %c0_161] : memref<104x384xf32, #tpu.memory_space<vmem>>, vector<4x384xf32>
    tpu.vector_store %arg9[%c68, %c0_161], %151 {strides = array<i32>} : memref<104x384xf32, #tpu.memory_space<vmem>>, vector<4x384xf32>,
    %c0_162 = arith.constant 0 : index
    %c153_163 = arith.constant 153 : index
    %153 = vector.load %arg7[%c0_162, %c153_163] : memref<4x640xf32, #tpu.memory_space<vmem>>, vector<4x384xf32>
    %c72 = arith.constant 72 : index
    %c0_164 = arith.constant 0 : index
    %154 = vector.load %arg9[%c72, %c0_164] : memref<104x384xf32, #tpu.memory_space<vmem>>, vector<4x384xf32>
    tpu.vector_store %arg9[%c72, %c0_164], %153 {strides = array<i32>} : memref<104x384xf32, #tpu.memory_space<vmem>>, vector<4x384xf32>,
    %c0_165 = arith.constant 0 : index
    %c154_166 = arith.constant 154 : index
    %155 = vector.load %arg7[%c0_165, %c154_166] : memref<4x640xf32, #tpu.memory_space<vmem>>, vector<4x384xf32>
    %c76 = arith.constant 76 : index
    %c0_167 = arith.constant 0 : index
    %156 = vector.load %arg9[%c76, %c0_167] : memref<104x384xf32, #tpu.memory_space<vmem>>, vector<4x384xf32>
    tpu.vector_store %arg9[%c76, %c0_167], %155 {strides = array<i32>} : memref<104x384xf32, #tpu.memory_space<vmem>>, vector<4x384xf32>,
    %c0_168 = arith.constant 0 : index
    %c174_169 = arith.constant 174 : index
    %157 = vector.load %arg7[%c0_168, %c174_169] : memref<4x640xf32, #tpu.memory_space<vmem>>, vector<4x384xf32>
    %c80_170 = arith.constant 80 : index
    %c0_171 = arith.constant 0 : index
    %158 = vector.load %arg9[%c80_170, %c0_171] : memref<104x384xf32, #tpu.memory_space<vmem>>, vector<4x384xf32>
    tpu.vector_store %arg9[%c80_170, %c0_171], %157 {strides = array<i32>} : memref<104x384xf32, #tpu.memory_space<vmem>>, vector<4x384xf32>,
    %c0_172 = arith.constant 0 : index
    %c175_173 = arith.constant 175 : index
    %159 = vector.load %arg7[%c0_172, %c175_173] : memref<4x640xf32, #tpu.memory_space<vmem>>, vector<4x384xf32>
    %c84 = arith.constant 84 : index
    %c0_174 = arith.constant 0 : index
    %160 = vector.load %arg9[%c84, %c0_174] : memref<104x384xf32, #tpu.memory_space<vmem>>, vector<4x384xf32>
    tpu.vector_store %arg9[%c84, %c0_174], %159 {strides = array<i32>} : memref<104x384xf32, #tpu.memory_space<vmem>>, vector<4x384xf32>,
    %c0_175 = arith.constant 0 : index
    %c176_176 = arith.constant 176 : index
    %161 = vector.load %arg7[%c0_175, %c176_176] : memref<4x640xf32, #tpu.memory_space<vmem>>, vector<4x384xf32>
    %c88 = arith.constant 88 : index
    %c0_177 = arith.constant 0 : index
    %162 = vector.load %arg9[%c88, %c0_177] : memref<104x384xf32, #tpu.memory_space<vmem>>, vector<4x384xf32>
    tpu.vector_store %arg9[%c88, %c0_177], %161 {strides = array<i32>} : memref<104x384xf32, #tpu.memory_space<vmem>>, vector<4x384xf32>,
    %c0_178 = arith.constant 0 : index
    %c177_179 = arith.constant 177 : index
    %163 = vector.load %arg7[%c0_178, %c177_179] : memref<4x640xf32, #tpu.memory_space<vmem>>, vector<4x384xf32>
    %c92 = arith.constant 92 : index
    %c0_180 = arith.constant 0 : index
    %164 = vector.load %arg9[%c92, %c0_180] : memref<104x384xf32, #tpu.memory_space<vmem>>, vector<4x384xf32>
    tpu.vector_store %arg9[%c92, %c0_180], %163 {strides = array<i32>} : memref<104x384xf32, #tpu.memory_space<vmem>>, vector<4x384xf32>,
    %c0_181 = arith.constant 0 : index
    %c178_182 = arith.constant 178 : index
    %165 = vector.load %arg7[%c0_181, %c178_182] : memref<4x640xf32, #tpu.memory_space<vmem>>, vector<4x384xf32>
    %c96 = arith.constant 96 : index
    %c0_183 = arith.constant 0 : index
    %166 = vector.load %arg9[%c96, %c0_183] : memref<104x384xf32, #tpu.memory_space<vmem>>, vector<4x384xf32>
    tpu.vector_store %arg9[%c96, %c0_183], %165 {strides = array<i32>} : memref<104x384xf32, #tpu.memory_space<vmem>>, vector<4x384xf32>,
    %c0_184 = arith.constant 0 : index
    %c0_185 = arith.constant 0 : index
    %167 = vector.load %arg9[%c0_184, %c0_185] : memref<104x384xf32, #tpu.memory_space<vmem>>, vector<104x384xf32>
    %cst_186 = arith.constant dense<0.000000e+00> : vector<1x384xf32>
    %168 = tpu.matmul %29, %167, %cst_186 {dimension_numbers = #tpu.dot_dimension_numbers<[1], [0], [0], [1], [0, 0, 1, 1], [], []>, precision = #tpu.contract_precision<fp32>} : vector<1x104xf32>, vector<104x384xf32>, vector<1x384xf32> -> vector<1x384xf32>
    %169 = vector.broadcast %30 : vector<1x1xf32> to vector<1x384xf32>
    %170 = arith.addf %168, %169 : vector<1x384xf32>
    %cst_187 = arith.constant 0.000000e+00 : f32
    %171 = vector.broadcast %cst_187 : f32 to vector<1x384xf32>
    %172 = arith.maximumf %170, %171 : vector<1x384xf32>
    %c0_188 = arith.constant 0 : index
    %c0_189 = arith.constant 0 : index
    %c0_190 = arith.constant 0 : index
    %173 = vector.load %arg6[%c0_188, %c0_189, %c0_190] : memref<1x1x384xf32, #tpu.memory_space<vmem>>, vector<1x1x384xf32>
    %174 = vector.shape_cast %173 : vector<1x1x384xf32> to vector<1x384xf32>
    %175 = vector.shape_cast %172 : vector<1x384xf32> to vector<1x1x384xf32>
    tpu.vector_store %arg6[%c0_188, %c0_189, %c0_190], %175 {strides = array<i32>} : memref<1x1x384xf32, #tpu.memory_space<vmem>>, vector<1x1x384xf32>,
    return
  }
  func.func @transform_0(%arg0: i32) -> (i32, i32) {
    %c0_i32 = arith.constant 0 : i32
    %c0_i32_0 = arith.constant 0 : i32
    %c0_i32_1 = arith.constant 0 : i32
    return %c0_i32, %c0_i32_0 : i32, i32
  }
  func.func @transform_1(%arg0: i32) -> (i32, i32) {
    %c0_i32 = arith.constant 0 : i32
    %c0_i32_0 = arith.constant 0 : i32
    %c0_i32_1 = arith.constant 0 : i32
    return %c0_i32, %c0_i32_0 : i32, i32
  }
  func.func @transform_2(%arg0: i32) -> (i32, i32) {
    %c0_i32 = arith.constant 0 : i32
    %c0_i32_0 = arith.constant 0 : i32
    %c0_i32_1 = arith.constant 0 : i32
    return %c0_i32, %c0_i32_0 : i32, i32
  }
  func.func @transform_3(%arg0: i32) -> (i32, i32) {
    %c0_i32 = arith.constant 0 : i32
    %c0_i32_0 = arith.constant 0 : i32
    %c0_i32_1 = arith.constant 0 : i32
    return %c0_i32, %c0_i32_0 : i32, i32
  }
  func.func @transform_4(%arg0: i32) -> (i32, i32, i32) {
    %c0_i32 = arith.constant 0 : i32
    %c0_i32_0 = arith.constant 0 : i32
    %c0_i32_1 = arith.constant 0 : i32
    return %arg0, %c0_i32, %c0_i32_0 : i32, i32, i32
  }
  func.func @transform_5(%arg0: i32) -> (i32, i32, i32) {
    %c0_i32 = arith.constant 0 : i32
    %c0_i32_0 = arith.constant 0 : i32
    %c0_i32_1 = arith.constant 0 : i32
    return %arg0, %c0_i32, %c0_i32_0 : i32, i32, i32
  }
}

</mosaic_0001>

<bundles_post_ra>
// kernel: autoencoder_forward.1
= control target key start
LH: loop header
LB: loop body
LE: loop exit
PB: predicated region body
PF: predicated region fallthrough
CT: control target
= control target key end

     0   :  { %s4568_s20 = smov 0   ;;  %s6074_s0 = inlined_call_operand.vmem [shape: f32[4,32], index: 0, kind: input, shape index: {}]   ;;  %s6075_s1 = inlined_call_operand.vmem [shape: f32[4,1], index: 1, kind: input, shape index: {}]   ;;  %s6076_s2 = inlined_call_operand.vmem [shape: f32[1,104], index: 2, kind: input, shape index: {}]   ;;  %s6077_s3 = inlined_call_operand.<no memory space> [shape: f32[1,1], index: 3, kind: input, shape index: {}]   ;;  %s6078_s4 = inlined_call_operand.vmem [shape: f32[2,1,640], index: 4, kind: input, shape index: {}]   ;;  %s6079_s5 = inlined_call_operand.vmem [shape: f32[2,1,384], index: 5, kind: output, shape index: {}]  }
   0x1   :  { %v10_v0 = vstv %s6077_s3 }
   0x2   :  { %11 = vst [vmem:[#allocation5] sm:$0x1] %v10_v0 }
   0x3 LB: > { %s3701_s21 = sadd.s32 4294967295, %s4504_s20   ;;  %p3705_p0 = scmp.ge.s32.totalorder %s4504_s20, 1  ;;  %s4504_s20 = sphi %s4568_s20, %s17_s20  }
   0x4   : > { %p188_p1 = scmp.lt.s32.totalorder %s4504_s20, 3 }
   0x6   : > { %p189_p2 = pnand %p3705_p0, %p188_p1 }
   0x8   : > { %192 = sbr.rel (%p189_p2) target bundleno = 1149 (0x47d), region = 40 }
   0xf   : > { %p214_p3 = scmp.lt.s32.totalorder %s3701_s21, 1  ;;  %s4506_s25 = smov 48   ;;  %v6108_v9 = vlaneseq  ;;  %v6196_v13 = vmov 0  ;;  %v6125_v22 = vmov 0.0|0.0   ;;  %v6111_v25 = vmov 0.0  }
  0x10   : > { %s4507_s26 = smov 50   ;;  %s4508_s27 = smov 47   ;;  %4110 = vmatprep.subr.bf16.mxu1 %v6125_v22  ;;  %280 = vst [vmem:[#allocation3 + $0x50] sm:$0xfe] %v6111_v25  ;;  %277 = vst [vmem:[#allocation2] sm:$0xf] %v6111_v25  ;;  %653 = vmatprep.mubr.f32.mxu0 %v6111_v25 }
  0x11   : > { %s6429_s21 = smov (!%p214_p3, %s3701_s21), 1  ;;  %s4509_s28 = smov 49   ;;  %vm4606_vm0 = vcmp.lt.s32.totalorder %v6108_v9, 384  ;;  %278 = vst [vmem:[#allocation2 + $0x10] sm:$0xf] %v6111_v25  ;;  %vm6096_vm1 = vmmov 0  }
  0x12   : > { %s4444_s3 = smul.u32 5, %s6429_s21  ;;  %s4510_s29 = smov 26   ;;  %v6197_v13 = vsel %vm4606_vm0, 4294967295, %v6196_v13  ;;  %279 = vst [vmem:[#allocation3 + $0x48] sm:$0xfe] %v6111_v25  ;;  %3830 = vmatprep.mubr.msk.f32.mxu1 %vm6096_vm1, %v6111_v25  ;;  %v4533_v31 = vmov 0  }
  0x13   : > { %s4511_s30 = smov 46   ;;  %s4512_s6 = smov 24   ;;  %6198 = vst [vmem:[#allocation6_spill] sm:$0xff] %v6197_v13  ;;  %281 = vst [vmem:[#allocation3 + $0x58] sm:$0xfe] %v6111_v25  ;;  %4489 = vset.pattern.permute.xlu0 %v4533_v31  ;;  %vm6100_vm2 = vcmask 392192  }
  0x14   : > { %s4582_s24 = scalar_lea.vmem %s6078_s4, %s4444_s3  ;;  %s4513_s7 = smov 25   ;;  %282 = vst [vmem:[#allocation4 + $0x120] sm:$0xf0] %v6111_v25  ;;  %283 = vst [vmem:[#allocation4 + $0x128] sm:$0xf0] %v6111_v25  ;;  %vm6099_vm3 = vcmask 408576  }
  0x15   : > { %v314_v1 = vld [vmem:[%s4582_s24] sm:$0xf]  ;;  %s4514_s8 = smov 22   ;;  %s6082_s9 = smov 23   ;;  %284 = vst [vmem:[#allocation4 + $0x130] sm:$0xf0] %v6111_v25 }
  0x16   : > { %v289_v2 = vld [vmem:[%s4582_s24] sm:$0xf]  ;;  %316 = vrot.lane.b32.xlu1 %v314_v1, %s4506_s25  ;;  %s6084_s10 = smov 1   ;;  %s6080_s11 = smov 2   ;;  %vm6093_vm4 = vcmask 384000   ;;  %vm6095_vm5 = vcmask 400384  }
  0x17   : > { %291 = vrot.lane.b32.xlu0 %v289_v2, %s4507_s26  ;;  %v325_v3 = vld [vmem:[%s4582_s24] sm:$0xf]  ;;  %s4518_s12 = smov 126   ;;  %s4519_s13 = smov 127   ;;  %vm6091_vm6 = vcmask 211968   ;;  %vm6094_vm7 = vcmask 375808  }
  0x18   : > { %v303_v4 = vld [vmem:[%s4582_s24] sm:$0xf]  ;;  %s4520_s14 = smov 105   ;;  %s4521_s15 = smov 106   ;;  %vm6089_vm8 = vcmask 195584   ;;  %vm6092_vm9 = vcmask 203776  }
  0x19   : > { %v347_v5 = vld [vmem:[%s4582_s24] sm:$0xf]  ;;  %s4523_s16 = smov 103   ;;  %s4524_s17 = smov 104   ;;  %vm6087_vm10 = vcmask 179200   ;;  %vm6090_vm11 = vcmask 187392  }
  0x1a   : > { %327 = vrot.lane.b32.xlu1 %v325_v3, %s4508_s27  ;;  %v336_v6 = vld [vmem:[%s4582_s24] sm:$0xf]  ;;  %s4526_s18 = smov 82   ;;  %s4527_s19 = smov 102   ;;  %vm6086_vm12 = vcmask 7168   ;;  %vm6088_vm13 = vcmask 15360  }
  0x1b   : > { %305 = vrot.lane.b32.xlu0 %v303_v4, %s4509_s28  ;;  %v369_v7 = vld [vmem:[%s4582_s24] sm:$0xf]  ;;  %s4528_s3 = smov 80   ;;  %s4529_s22 = smov 81   ;;  %vm444_vm14 = vcmask 1031168   ;;  %vm6106_vm15 = vcmask 1039360  }
  0x1c   : > { %v358_v8 = vld [vmem:[%s4582_s24] sm:$0xf]  ;;  %s4530_s23 = smov 78  }
  0x1d   : > { %v391_v10 = vld [vmem:[%s4582_s24] sm:$0xf] }
  0x1e   : > { %349 = vrot.lane.b32.xlu1 %v347_v5, %s4510_s29  ;;  %v380_v11 = vld [vmem:[%s4582_s24] sm:$0xf] }
  0x1f   : > { %338 = vrot.lane.b32.xlu0 %v336_v6, %s4511_s30  ;;  %v413_v12 = vld [vmem:[%s4582_s24] sm:$0xf] }
  0x20   : > { %v402_v14 = vld [vmem:[%s4582_s24] sm:$0xf] }
  0x21   : > { %v424_v15 = vld [vmem:[%s4582_s24 + $0x1] sm:$0x7] }
  0x22   : > { %371 = vrot.lane.b32.xlu1 %v369_v7, %s4512_s6  ;;  %426 = vst.msk [vmem:[#allocation3 + $0x1c] ss:$8 sm:$0x7] %vm4606_vm0, %v424_v15  ;;  %v439_v16 = vld [vmem:[%s4582_s24 + $0x1] sm:$0xf] }
  0x23   : > { %360 = vrot.lane.b32.xlu0 %v358_v8, %s4513_s7  ;;  %v428_v17 = vld [vmem:[%s4582_s24 + $0x1] sm:$0xf] }
  0x24   : > { %v461_v18 = vld [vmem:[%s4582_s24 + $0x1] sm:$0xf] }
  0x25   : > { %v450_v19 = vld [vmem:[%s4582_s24 + $0x1] sm:$0xf] }
  0x26   : > { %393 = vrot.lane.b32.xlu1 %v391_v10, %s4514_s8  ;;  %v483_v20 = vld [vmem:[%s4582_s24 + $0x1] sm:$0xf] }
  0x27   : > { %382 = vrot.lane.b32.xlu0 %v380_v11, %s6082_s9  ;;  %v472_v21 = vld [vmem:[%s4582_s24 + $0x1] sm:$0xf]  ;;  %s6201_s9 = smov 2  }
  0x28   : > { %v505_v23 = vld [vmem:[%s4582_s24 + $0x1] sm:$0xf] }
  0x29   : > { %v494_v24 = vld [vmem:[%s4582_s24 + $0x1] sm:$0xf] }
  0x2a   : > { %415 = vrot.lane.b32.xlu1 %v413_v12, %s6084_s10  ;;  %v527_v26 = vld [vmem:[%s4582_s24 + $0x1] sm:$0xf]  ;;  %s6199_s10 = smov 1  }
  0x2b   : > { %404 = vrot.lane.b32.xlu0 %v402_v14, %s6080_s11  ;;  %v516_v27 = vld [vmem:[%s4582_s24 + $0x1] sm:$0xf]  ;;  %s4531_s11 = smov 79  }
  0x2c   : > { %v549_v28 = vld [vmem:[%s4582_s24 + $0x1] sm:$0xf] }
  0x2d   : > { %v538_v29 = vld [vmem:[%s4582_s24 + $0x1] sm:$0xf]  ;;  %s6200_s24 = smov 23  }
  0x2e   : > { %441 = vrot.lane.b32.xlu1 %v439_v16, %s4518_s12  ;;  %v286_v30 = vld [vmem:[%s6075_s1] sm:$0xf] }
  0x2f   : > { %430 = vrot.lane.b32.xlu0 %v428_v17, %s4519_s13  ;;  %v285_v16 = vld [vmem:[%s6074_s0] sm:$0xf] }
  0x32   : > { %463 = vrot.lane.b32.xlu1 %v461_v18, %s4520_s14 }
  0x33   : > { %452 = vrot.lane.b32.xlu0 %v450_v19, %s4521_s15 }
  0x36   : > { %485 = vrot.lane.b32.xlu1 %v483_v20, %s4523_s16 }
  0x37   : > { %474 = vrot.lane.b32.xlu0 %v472_v21, %s4524_s17 }
  0x3a   : > { %507 = vrot.lane.b32.xlu1 %v505_v23, %s4526_s18 }
  0x3b   : > { %496 = vrot.lane.b32.xlu0 %v494_v24, %s4527_s19 }
  0x3e   : > { %529 = vrot.lane.b32.xlu1 %v527_v26, %s4528_s3 }
  0x3f   : > { %518 = vrot.lane.b32.xlu0 %v516_v27, %s4529_s22 }
  0x42   : > { %551 = vrot.lane.b32.xlu1 %v549_v28, %s4530_s23 }
  0x43   : > { %540 = vrot.lane.b32.xlu0 %v538_v29, %s4531_s11 }
  0x47   : > { %574 = vperm.xlu0 %4489, %v286_v30  }
  0x88   : > { %v317_v32 = vpop.permute.xlu1 %316 }
  0x89   : > { %v292_v33 = vpop.permute.xlu0 %291  ;;  %v318_v34 = vrot.slane %v317_v32, 1 }
  0x8a   : > { %v293_v35 = vrot.slane %v292_v33, 1 }
  0x8b   : > { %v320_v36 = vsel %vm6100_vm2, %v317_v32, %v318_v34 }
  0x8c   : > { %v295_v37 = vsel %vm6099_vm3, %v292_v33, %v293_v35  ;;  %323 = vst.msk [vmem:[#allocation3 + $0x2] ss:$8 sm:$0x7] %vm4606_vm0, %v320_v36  ;;  %v328_v38 = vpop.permute.xlu1 %327 }
  0x8d   : > { %301 = vst.msk [vmem:[#allocation3] ss:$8 sm:$0x7] %vm4606_vm0, %v295_v37  ;;  %v306_v39 = vpop.permute.xlu0 %305  ;;  %v329_v40 = vrot.slane %v328_v38, 1 }
  0x8e   : > { %v307_v41 = vrot.slane %v306_v39, 1 }
  0x8f   : > { %v331_v42 = vsel %vm6093_vm4, %v328_v38, %v329_v40  ;;  %vm6102_vm4 = vcmask 662528  }
  0x90   : > { %v309_v43 = vsel %vm6095_vm5, %v306_v39, %v307_v41  ;;  %334 = vst.msk [vmem:[#allocation3 + $0x3] ss:$8 sm:$0x7] %vm4606_vm0, %v331_v42  ;;  %v350_v44 = vpop.permute.xlu1 %349  ;;  %vm6101_vm5 = vcmask 646144  }
  0x91   : > { %312 = vst.msk [vmem:[#allocation3 + $0x1] ss:$8 sm:$0x7] %vm4606_vm0, %v309_v43  ;;  %v339_v45 = vpop.permute.xlu0 %338  ;;  %v351_v46 = vrot.slane %v350_v44, 1 }
  0x92   : > { %v340_v47 = vrot.slane %v339_v45, 1 }
  0x93   : > { %v353_v48 = vsel %vm6091_vm6, %v350_v44, %v351_v46  ;;  %vm510_vm6 = vcmask 670720  }
  0x94   : > { %v342_v49 = vsel %vm6094_vm7, %v339_v45, %v340_v47  ;;  %356 = vst.msk [vmem:[#allocation3 + $0x5] ss:$8 sm:$0x7] %vm4606_vm0, %v353_v48  ;;  %v372_v50 = vpop.permute.xlu1 %371  ;;  %vm6098_vm7 = vcmask 637952  }
  0x95   : > { %345 = vst.msk [vmem:[#allocation3 + $0x4] ss:$8 sm:$0x7] %vm4606_vm0, %v342_v49  ;;  %v361_v51 = vpop.permute.xlu0 %360  ;;  %v373_v52 = vrot.slane %v372_v50, 1 }
  0x96   : > { %v362_v53 = vrot.slane %v361_v51, 1 }
  0x97   : > { %v375_v54 = vsel %vm6089_vm8, %v372_v50, %v373_v52  ;;  %vm488_vm8 = vcmask 842752  }
  0x98   : > { %v364_v55 = vsel %vm6092_vm9, %v361_v51, %v362_v53  ;;  %378 = vst.msk [vmem:[#allocation3 + $0x7] ss:$8 sm:$0x7] %vm4606_vm0, %v375_v54  ;;  %v394_v56 = vpop.permute.xlu1 %393  ;;  %vm6103_vm9 = vcmask 834560  }
  0x99   : > { %367 = vst.msk [vmem:[#allocation3 + $0x6] ss:$8 sm:$0x7] %vm4606_vm0, %v364_v55  ;;  %v383_v57 = vpop.permute.xlu0 %382  ;;  %v395_v58 = vrot.slane %v394_v56, 1 }
  0x9a   : > { %v384_v59 = vrot.slane %v383_v57, 1 }
  0x9b   : > { %v397_v60 = vsel %vm6087_vm10, %v394_v56, %v395_v58  ;;  %vm6105_vm10 = vcmask 867328  }
  0x9c   : > { %v386_v61 = vsel %vm6090_vm11, %v383_v57, %v384_v59  ;;  %400 = vst.msk [vmem:[#allocation3 + $0x19] ss:$8 sm:$0x7] %vm4606_vm0, %v397_v60  ;;  %v416_v62 = vpop.permute.xlu1 %415  ;;  %vm6104_vm11 = vcmask 850944  }
  0x9d   : > { %389 = vst.msk [vmem:[#allocation3 + $0x18] ss:$8 sm:$0x7] %vm4606_vm0, %v386_v61  ;;  %v405_v63 = vpop.permute.xlu0 %404  ;;  %v417_v0 = vrot.slane %v416_v62, 1 }
  0x9e   : > { %v406_v1 = vrot.slane %v405_v63, 1 }
  0x9f   : > { %v419_v2 = vsel %vm6086_vm12, %v416_v62, %v417_v0  ;;  %vm466_vm12 = vcmask 859136  }
  0xa0   : > { %v408_v3 = vsel %vm6088_vm13, %v405_v63, %v406_v1  ;;  %422 = vst.msk [vmem:[#allocation3 + $0x1b] ss:$8 sm:$0x7] %vm4606_vm0, %v419_v2  ;;  %v442_v4 = vpop.permute.xlu1 %441  ;;  %vm577_vm13 = vcmask 261120   ;;  %v561_v26 = vld [vmem:[#allocation3 + $0x8] sm:$0xff]  ;;  %v562_v35 = vld [vmem:[#allocation3 + $0x10] sm:$0xff] }
  0xa1   : > { %411 = vst.msk [vmem:[#allocation3 + $0x1a] ss:$8 sm:$0x7] %vm4606_vm0, %v408_v3  ;;  %v431_v5 = vpop.permute.xlu0 %430  ;;  %v443_v6 = vrot.slane %v442_v4, 1  ;;  %v579_v21 = vsel %vm577_vm13, %v285_v16, 0  ;;  %v581_v34 = vand.u32 4294901760, %v561_v26 }
  0xa2   : > { %v432_v7 = vrot.slane %v431_v5, 1  ;;  %v4708_v29 = vand.u32 4294901760, %v579_v21  ;;  %vm6107_vm13 = vcmask 654336   ;;  %v560_v36 = vld [vmem:[#allocation3] sm:$0xff]  ;;  %v1125_v46 = vand.u32 4294901760, %v562_v35 }
  0xa3   : > { %v445_v8 = vsel %vm444_vm14, %v442_v4, %v443_v6  ;;  %v4723_v51 = vsub.f32 %v561_v26, %v581_v34  ;;  %v583_v52 = vand.u32 4294901760, %v560_v36 }
  0xa4   : > { %v434_v10 = vsel %vm6106_vm15, %v431_v5, %v432_v7  ;;  %448 = vst.msk [vmem:[#allocation3 + $0x1e] ss:$8 sm:$0x7] %vm4606_vm0, %v445_v8  ;;  %v464_v11 = vpop.permute.xlu1 %463  ;;  %v4717_v42 = vsub.f32 %v579_v21, %v4708_v29  ;;  %v4748_v2 = vsub.f32 %v562_v35, %v1125_v46 }
  0xa5   : > { %437 = vst.msk [vmem:[#allocation3 + $0x1d] ss:$8 sm:$0x7] %vm4606_vm0, %v434_v10  ;;  %v453_v12 = vpop.permute.xlu0 %452  ;;  %v465_v14 = vrot.slane %v464_v11, 1  ;;  %v667_v3 = vand.u32 4294901760, %v4723_v51  ;;  %v4762_v10 = vsub.f32 %v560_v36, %v583_v52 }
  0xa6   : > { %v454_v15 = vrot.slane %v453_v12, 1  ;;  %v4752_v4 = vand.u32 4294901760, %v4717_v42 }
  0xa7   : > { %v467_v17 = vsel %vm466_vm12, %v464_v11, %v465_v14  ;;  %v668_v14 = vsub.f32 %v4723_v51, %v667_v3 }
  0xa8   : > { %v456_v18 = vsel %vm6105_vm10, %v453_v12, %v454_v15  ;;  %470 = vst.msk [vmem:[#allocation3 + $0x30] ss:$8 sm:$0x7] %vm4606_vm0, %v467_v17  ;;  %v486_v19 = vpop.permute.xlu1 %485  ;;  %v657_v12 = vsub.f32 %v4717_v42, %v4752_v4  ;;  %v1206_v15 = vand.u32 4294901760, %v4748_v2 }
  0xa9   : > { %459 = vst.msk [vmem:[#allocation3 + $0x1f] ss:$8 sm:$0x7] %vm4606_vm0, %v456_v18  ;;  %v475_v20 = vpop.permute.xlu0 %474  ;;  %v487_v23 = vrot.slane %v486_v19, 1  ;;  %v673_v18 = vand.u32 4294901760, %v4762_v10  ;;  %v669_v26 = vand.u32 4294901760, %v668_v14 }
  0xaa   : > { %v476_v24 = vrot.slane %v475_v20, 1 }
  0xab   : > { %v489_v27 = vsel %vm488_vm8, %v486_v19, %v487_v23 }
  0xac   : > { %v478_v28 = vsel %vm6104_vm11, %v475_v20, %v476_v24  ;;  %492 = vst.msk [vmem:[#allocation3 + $0x32] ss:$8 sm:$0x7] %vm4606_vm0, %v489_v27  ;;  %v508_v30 = vpop.permute.xlu1 %507  ;;  %v658_v20 = vand.u32 4294901760, %v657_v12  ;;  %v1207_v27 = vsub.f32 %v4748_v2, %v1206_v15 }
  0xad   : > { %481 = vst.msk [vmem:[#allocation3 + $0x31] ss:$8 sm:$0x7] %vm4606_vm0, %v478_v28  ;;  %v497_v31 = vpop.permute.xlu0 %496  ;;  %v509_v32 = vrot.slane %v508_v30, 1 }
  0xae   : > { %v498_v33 = vrot.slane %v497_v31, 1 }
  0xaf   : > { %v511_v37 = vsel %vm510_vm6, %v508_v30, %v509_v32 }
  0xb0   : > { %v500_v38 = vsel %vm6103_vm9, %v497_v31, %v498_v33  ;;  %v564_v39 = vld [vmem:[#allocation3 + $0x20] sm:$0xff]  ;;  %v565_v40 = vld [vmem:[#allocation3 + $0x28] sm:$0xff]  ;;  %v563_v41 = vld [vmem:[#allocation3 + $0x18] sm:$0xff]  ;;  %514 = vst.msk [vmem:[#allocation3 + $0x34] ss:$8 sm:$0x7] %vm4606_vm0, %v511_v37  ;;  %v530_v43 = vpop.permute.xlu1 %529  ;;  %v674_v37 = vsub.f32 %v4762_v10, %v673_v18 }
  0xb1   : > { %503 = vst.msk [vmem:[#allocation3 + $0x33] ss:$8 sm:$0x7] %vm4606_vm0, %v500_v38  ;;  %v519_v44 = vpop.permute.xlu0 %518  ;;  %v585_v45 = vand.u32 4294901760, %v564_v39  ;;  %v1128_v47 = vand.u32 4294901760, %v565_v40  ;;  %v587_v48 = vand.u32 4294901760, %v563_v41 }
  0xb2   : > { %v531_v49 = vrot.slane %v530_v43, 1  ;;  %v520_v50 = vrot.slane %v519_v44, 1 }
  0xb3   : > { %v4725_v53 = vpack.c.bf16 %v585_v45, %v581_v34  ;;  %v4727_v54 = vsub.f32 %v564_v39, %v585_v45  ;;  %v4729_v55 = vpack.c.bf16 %v1128_v47, %v1125_v46  ;;  %v4731_v56 = vsub.f32 %v565_v40, %v1128_v47 }
  0xb4   : > { %v533_v57 = vsel %vm6107_vm13, %v530_v43, %v531_v49  ;;  %v522_v58 = vsel %vm6102_vm4, %v519_v44, %v520_v50  ;;  %v4735_v59 = vpack.c.bf16 %v587_v48, %v583_v52  ;;  %v4737_v60 = vsub.f32 %v563_v41, %v587_v48  ;;  %v552_v61 = vpop.permute.xlu1 %551 }
  0xb5   : > { %536 = vst.msk [vmem:[#allocation3 + $0x36] ss:$8 sm:$0x7] %vm4606_vm0, %v533_v57  ;;  %525 = vst.msk [vmem:[#allocation3 + $0x35] ss:$8 sm:$0x7] %vm4606_vm0, %v522_v58  ;;  %4063 = vmatprep.subr.bf16.mxu0 %v4725_v53  ;;  %4112 = vmatpush3.bf16.msra.mxu1 %v4729_v55  ;;  %v541_v62 = vpop.permute.xlu0 %540 }
  0xb6   : > { %v553_v63 = vrot.slane %v552_v61, 1  ;;  %v542_v0 = vrot.slane %v541_v62, 1  ;;  %4065 = vmatpush1.bf16.msra.mxu0 %v4735_v59  ;;  %4113 = vmatprep.subr.bf16.mxu1 %v6125_v22  ;;  %v679_v1 = vand.u32 4294901760, %v4727_v54  ;;  %v1213_v7 = vand.u32 4294901760, %v4731_v56 }
  0xb7   : > { %v685_v8 = vand.u32 4294901760, %v4737_v60 }
  0xb8   : > { %v555_v5 = vsel %vm6098_vm7, %v552_v61, %v553_v63  ;;  %v544_v6 = vsel %vm6101_vm5, %v541_v62, %v542_v0  ;;  %v680_v11 = vsub.f32 %v4727_v54, %v679_v1  ;;  %v1214_v16 = vsub.f32 %v4731_v56, %v1213_v7 }
  0xb9   : > { %558 = vst.msk [vmem:[#allocation3 + $0x48] ss:$8 sm:$0x7] %vm4606_vm0, %v555_v5  ;;  %547 = vst.msk [vmem:[#allocation3 + $0x37] ss:$8 sm:$0x7] %vm4606_vm0, %v544_v6  ;;  %v686_v17 = vsub.f32 %v4737_v60, %v685_v8 }
  0xba   : > { %v681_v19 = vand.u32 4294901760, %v680_v11  ;;  %v1215_v28 = vand.u32 4294901760, %v1214_v16  ;;  %v1208_v62 = vand.u32 4294901760, %v1207_v27  ;;  %v675_v63 = vand.u32 4294901760, %v674_v37 }
  0xbb   : > { %v687_v30 = vand.u32 4294901760, %v686_v17 }
  0xbc   : > { %v4070_v41 = vpack.c.bf16 %v681_v19, %v669_v26  ;;  %v4117_v16 = vpack.c.bf16 %v1215_v28, %v1208_v62 }
  0xbd   : > { %v4072_v17 = vpack.c.bf16 %v687_v30, %v675_v63 }
  0xc0   : > { %v567_v21 = vld [vmem:[#allocation3 + $0x38] sm:$0xff]  ;;  %v570_v23 = vld [vmem:[#allocation3 + $0x50] sm:$0xff]  ;;  %v568_v24 = vld [vmem:[#allocation3 + $0x40] sm:$0xff] }
  0xc1   : > { %v589_v31 = vand.u32 4294901760, %v567_v21  ;;  %v593_v32 = vand.u32 4294901760, %v570_v23  ;;  %v571_v33 = vld [vmem:[#allocation3 + $0x58] sm:$0xff]  ;;  %v1131_v34 = vand.u32 4294901760, %v568_v24  ;;  %v566_v35 = vld [vmem:[#allocation3 + $0x30] sm:$0xff]  ;;  %v569_v36 = vld [vmem:[#allocation3 + $0x48] sm:$0xff] }
  0xc2   : > { %v1134_v38 = vand.u32 4294901760, %v571_v33  ;;  %v591_v39 = vand.u32 4294901760, %v566_v35  ;;  %v595_v40 = vand.u32 4294901760, %v569_v36 }
  0xc3   : > { %v4786_v43 = vpack.c.bf16 %v593_v32, %v589_v31  ;;  %v4788_v44 = vsub.f32 %v567_v21, %v589_v31  ;;  %v4790_v45 = vsub.f32 %v570_v23, %v593_v32  ;;  %v4792_v46 = vsub.f32 %v568_v24, %v1131_v34 }
  0xc4   : > { %v4794_v47 = vpack.c.bf16 %v1134_v38, %v1131_v34  ;;  %v4796_v48 = vsub.f32 %v571_v33, %v1134_v38  ;;  %v4798_v49 = vpack.c.bf16 %v595_v40, %v591_v39  ;;  %v4800_v50 = vsub.f32 %v566_v35, %v591_v39 }
  0xc5   : > { %4067 = vmatprep.subr.bf16.mxu0 %v4786_v43  ;;  %v4803_v52 = vsub.f32 %v569_v36, %v595_v40  ;;  %v691_v57 = vand.u32 4294901760, %v4788_v44  ;;  %v703_v58 = vand.u32 4294901760, %v4790_v45  ;;  %v1220_v61 = vand.u32 4294901760, %v4792_v46 }
  0xc6   : > { %4115 = vmatpush3.bf16.msra.mxu1 %v4794_v47  ;;  %4069 = vmatpush1.bf16.msra.mxu0 %v4798_v49  ;;  %v1227_v0 = vand.u32 4294901760, %v4796_v48  ;;  %v697_v5 = vand.u32 4294901760, %v4800_v50  ;;  %v4078_v34 = vpack.c.bf16 %v4727_v54, %v4723_v51  ;;  %v4123_v35 = vpack.c.bf16 %v4731_v56, %v4748_v2 }
  0xc7   : > { %4071 = vmatprep.subr.bf16.mxu0 %v4070_v41  ;;  %4116 = vmatprep.subr.bf16.mxu1 %v6125_v22  ;;  %v692_v6 = vsub.f32 %v4788_v44, %v691_v57  ;;  %v704_v11 = vsub.f32 %v4790_v45, %v703_v58  ;;  %v1221_v12 = vsub.f32 %v4792_v46, %v1220_v61  ;;  %v709_v14 = vand.u32 4294901760, %v4803_v52 }
  0xc8   : > { %v1228_v19 = vsub.f32 %v4796_v48, %v1227_v0  ;;  %v698_v21 = vsub.f32 %v4800_v50, %v697_v5  ;;  %v4080_v36 = vpack.c.bf16 %v4737_v60, %v4762_v10  ;;  %v4082_v37 = vpack.c.bf16 %v4790_v45, %v4788_v44 }
  0xc9   : > { %3831 = vmatmul.mubr.f32.vlgmr.msra.gmra.mrb[0].mxu1 %v658_v20  ;;  %659 = vmatmul.mubr.f32.vlgmr.msra.gmra.mrb[0].mxu0 %v658_v20  ;;  %v693_v23 = vand.u32 4294901760, %v692_v6  ;;  %v705_v24 = vand.u32 4294901760, %v704_v11  ;;  %v1222_v26 = vand.u32 4294901760, %v1221_v12  ;;  %v710_v27 = vsub.f32 %v4803_v52, %v709_v14 }
  0xca   : > { %4118 = vmatpush3.bf16.msra.mxu1 %v4117_v16  ;;  %4073 = vmatpush1.bf16.msra.mxu0 %v4072_v17  ;;  %v1229_v28 = vand.u32 4294901760, %v1228_v19  ;;  %v699_v30 = vand.u32 4294901760, %v698_v21  ;;  %v4126_v38 = vpack.c.bf16 %v4796_v48, %v4792_v46  ;;  %v4084_v39 = vpack.c.bf16 %v4803_v52, %v4800_v50  ;;  %v575_v50 = vpop.permute.xlu0 %574 }
  0xcb   : > { %4119 = vmatprep.subr.bf16.mxu1 %v6125_v22  ;;  %v4074_v31 = vpack.c.bf16 %v705_v24, %v693_v23  ;;  %v711_v32 = vand.u32 4294901760, %v710_v27  ;;  %3841 = vmatprep.mubr.msk.f32.mxu1 %vm6096_vm1, %v6111_v25  ;;  %v4135_v40 = vpack.c.bf16 %v1213_v7, %v1206_v15  ;;  %v4096_v51 = vpack.c.bf16 %v685_v8, %v673_v18 }
  0xcc   : > { %v4120_v33 = vpack.c.bf16 %v1229_v28, %v1222_v26  ;;  %769 = vmatprep.mubr.f32.mxu0 %v6111_v25  ;;  %v4098_v54 = vpack.c.bf16 %v703_v58, %v691_v57  ;;  %v4138_v56 = vpack.c.bf16 %v1227_v0, %v1220_v61  ;;  %v4100_v60 = vpack.c.bf16 %v709_v14, %v697_v5 }
  0xcd   : > { %4075 = vmatprep.subr.bf16.mxu0 %v4074_v31  ;;  %v4076_v20 = vpack.c.bf16 %v711_v32, %v699_v30 }
  0xce   : > { %4121 = vmatpush3.bf16.msra.mxu1 %v4120_v33 }
  0xcf   : > { %4077 = vmatpush1.bf16.msra.mxu0 %v4076_v20  ;;  %4122 = vmatprep.subr.bf16.mxu1 %v6125_v22 }
  0xd0   : > { %4079 = vmatprep.subr.bf16.mxu0 %v4078_v34 }
  0xd1   : > { %3842 = vmatmul.mubr.f32.vlgmr.msra.gmra.mrb[0].mxu1 %v4708_v29 }
  0xd2   : > { %771 = vmatmul.mubr.f32.vlgmr.msra.gmra.mrb[0].mxu0 %v4708_v29  ;;  %4124 = vmatpush3.bf16.msra.mxu1 %v4123_v35 }
  0xd3   : > { %4081 = vmatpush1.bf16.msra.mxu0 %v4080_v36  ;;  %4125 = vmatprep.subr.bf16.mxu1 %v6125_v22 }
  0xd4   : > { %4083 = vmatprep.subr.bf16.mxu0 %v4082_v37  ;;  %3852 = vmatprep.mubr.msk.f32.mxu1 %vm6096_vm1, %v6111_v25 }
  0xd5   : > { %857 = vmatprep.mubr.f32.mxu0 %v6111_v25 }
  0xd6   : > { %4127 = vmatpush3.bf16.msra.mxu1 %v4126_v38 }
  0xd7   : > { %4085 = vmatpush1.bf16.msra.mxu0 %v4084_v39  ;;  %4128 = vmatprep.subr.bf16.mxu1 %v6125_v22 }
  0xd8   : > { %4087 = vmatprep.subr.bf16.mxu0 %v4725_v53 }
  0xd9   : > { %3853 = vmatmul.mubr.f32.vlgmr.msra.gmra.mrb[0].mxu1 %v4717_v42 }
  0xda   : > { %860 = vmatmul.mubr.f32.vlgmr.msra.gmra.mrb[0].mxu0 %v4717_v42  ;;  %4130 = vmatpush3.bf16.msra.mxu1 %v4729_v55  ;;  %v4094_v42 = vpack.c.bf16 %v679_v1, %v667_v3 }
  0xdb   : > { %4089 = vmatpush1.bf16.msra.mxu0 %v4735_v59  ;;  %4131 = vmatprep.subr.bf16.mxu1 %v6125_v22 }
  0xdc   : > { %4091 = vmatprep.subr.bf16.mxu0 %v4786_v43  ;;  %3863 = vmatprep.mubr.msk.f32.mxu1 %vm6096_vm1, %v6111_v25 }
  0xdd   : > { %938 = vmatprep.mubr.f32.mxu0 %v6111_v25 }
  0xde   : > { %4133 = vmatpush3.bf16.msra.mxu1 %v4794_v47 }
  0xdf   : > { %4093 = vmatpush1.bf16.msra.mxu0 %v4798_v49  ;;  %4134 = vmatprep.subr.bf16.mxu1 %v6125_v22 }
  0xe0   : > { %4095 = vmatprep.subr.bf16.mxu0 %v4094_v42 }
  0xe1   : > { %3864 = vmatmul.mubr.f32.vlgmr.msra.gmra.mrb[0].mxu1 %v4752_v4 }
  0xe2   : > { %942 = vmatmul.mubr.f32.vlgmr.msra.gmra.mrb[0].mxu0 %v4752_v4  ;;  %4136 = vmatpush3.bf16.msra.mxu1 %v4135_v40 }
  0xe3   : > { %4097 = vmatpush1.bf16.msra.mxu0 %v4096_v51  ;;  %4137 = vmatprep.subr.bf16.mxu1 %v6125_v22 }
  0xe4   : > { %4099 = vmatprep.subr.bf16.mxu0 %v4098_v54  ;;  %3874 = vmatprep.mubr.msk.f32.mxu1 %vm6096_vm1, %v6111_v25 }
  0xe5   : > { %1036 = vmatprep.mubr.f32.mxu0 %v6111_v25 }
  0xe6   : > { %4139 = vmatpush3.bf16.msra.mxu1 %v4138_v56 }
  0xe7   : > { %4101 = vmatpush1.bf16.msra.mxu0 %v4100_v60  ;;  %4140 = vmatprep.subr.bf16.mxu1 %v6125_v22 }
  0xe8   : > { %4103 = vmatprep.subr.bf16.mxu0 %v4725_v53  ;;  %v223_v53 = vand.u32 127, %v6108_v9 }
  0xe9   : > { %3875 = vmatmul.mubr.f32.vlgmr.msra.gmra.mrb[0].mxu1 %v4708_v29 }
  0xea   : > { %1038 = vmatmul.mubr.f32.vlgmr.msra.gmra.mrb[0].mxu0 %v4708_v29  ;;  %4142 = vmatpush3.bf16.msra.mxu1 %v4729_v55  ;;  %v225_v55 = vadd.s32 256, %v223_v53  ;;  %v4922_v3 = vmul.u32.u64.low 2863311531, %v223_v53  ;;  %v4923_v4 = vmul.u32.u64.high 2863311531, %v223_v53, %v4922_v3 }
  0xeb   : > { %4105 = vmatpush1.bf16.msra.mxu0 %v4735_v59  ;;  %4143 = vmatprep.subr.bf16.mxu1 %v6125_v22  ;;  %v224_v59 = vadd.s32 128, %v223_v53 }
  0xec   : > { %4107 = vmatprep.subr.bf16.mxu0 %v4786_v43  ;;  %3885 = vmatprep.mubr.msk.f32.mxu1 %vm6096_vm1, %v6111_v25  ;;  %v4919_v1 = vmul.u32.u64.low 2863311531, %v225_v55  ;;  %v4920_v2 = vmul.u32.u64.high 2863311531, %v225_v55, %v4919_v1  ;;  %v232_v10 = vshrl.u32 %v4923_v4, 4 }
  0xed   : > { %1116 = vmatprep.mubr.f32.mxu0 %v6111_v25  ;;  %v4925_v7 = vmul.u32.u64.low 2863311531, %v224_v59  ;;  %v4926_v8 = vmul.u32.u64.high 2863311531, %v224_v59, %v4925_v7 }
  0xee   : > { %4145 = vmatpush3.bf16.msra.mxu1 %v4794_v47  ;;  %v233_v41 = vmul.u32 24, %v232_v10 }
  0xef   : > { %4109 = vmatpush1.bf16.msra.mxu0 %v4798_v49  ;;  %4290 = vmatprep.subr.bf16.mxu1 %v6125_v22  ;;  %v243_v15 = vshrl.u32 %v4926_v8, 4 }
  0xf0   : > { %v234_v45 = vsub.s32 %v223_v53, %v233_v41 }
  0xf1   : > { %3886 = vmatmul.mubr.f32.vlgmr.msra.gmra.mrb[0].mxu1 %v4708_v29  ;;  %v244_v43 = vmul.u32 24, %v243_v15 }
  0xf2   : > { %1118 = vmatmul.mubr.f32.vlgmr.msra.gmra.mrb[0].mxu0 %v4708_v29  ;;  %3914 = vmatprep.mubr.msk.f32.mxu1 %vm6096_vm1, %v6111_v25  ;;  %v254_v29 = vshrl.u32 %v4920_v2, 4  ;;  %vm259_vm3 = vcmp.ne.s32.totalorder %v234_v45, 0  ;;  %vm262_vm2 = vcmp.lt.s32.totalorder %v234_v45, 0  ;;  %v268_v48 = vadd.s32 24, %v234_v45 }
  0xf3   : > { %2328 = vmatprep.mubr.f32.mxu0 %v6111_v25  ;;  %v245_v46 = vsub.s32 %v224_v59, %v244_v43  ;;  %vm265_vm11 = vmand %vm262_vm2, %vm259_vm3  ;;  %vm6202_vm2 = vcmask 654336   ;;  %vm6203_vm3 = vcmask 1039360  }
  0xf4   : > { %v255_v18 = vmul.u32 24, %v254_v29  ;;  %v271_v58 = vsel %vm265_vm11, %v268_v48, %v234_v45 }
  0xf5   : > { %vm260_vm5 = vcmp.ne.s32.totalorder %v245_v46, 0  ;;  %vm263_vm4 = vcmp.lt.s32.totalorder %v245_v46, 0  ;;  %v269_v49 = vadd.s32 24, %v245_v46  ;;  %vm274_vm13 = vcmp.lt.s32.totalorder %v271_v58, 16 }
  0xf6   : > { %v256_v44 = vsub.s32 %v225_v55, %v255_v18  ;;  %vm266_vm10 = vmand %vm263_vm4, %vm260_vm5  ;;  %vm6204_vm4 = vcmask 867328   ;;  %vm6205_vm5 = vcmask 850944  }
  0xf7   : > { %v272_v0 = vsel %vm266_vm10, %v269_v49, %v245_v46  ;;  %vm6212_vm10 = vmmov %vm6203_vm3 }
  0xf8   : > { %vm261_vm1 = vcmp.ne.s32.totalorder %v256_v44, 0  ;;  %vm264_vm7 = vcmp.lt.s32.totalorder %v256_v44, 0  ;;  %v270_v47 = vadd.s32 24, %v256_v44  ;;  %vm6213_vm11 = vmmov %vm6204_vm4 }
  0xf9   : > { %vm267_vm9 = vmand %vm264_vm7, %vm261_vm1  ;;  %vm275_vm1 = vcmp.lt.s32.totalorder %v272_v0, 16  ;;  %vm6206_vm7 = vcmask 834560  }
  0xfa   : > { %v273_v52 = vsel %vm267_vm9, %v270_v47, %v256_v44  ;;  %vm6209_vm9 = vcmask 662528  }
  0xfb   : > { %vm276_vm15 = vcmp.lt.s32.totalorder %v273_v52, 16 }
 0x1c4   : > { %v1605_v57 = vpop.f32.mrb[0].mxu1 }
 0x1c5   : > { %v4400_v61 = vadd.f32 %v1605_v57, %v575_v50  ;;  %v1119_v62 = vpop.f32.mrb[0].mxu0  ;;  %v3887_v63 = vpop.f32.mrb[1].mxu1 }
 0x1c6   : > { %v4398_v5 = vadd.f32 %v1119_v62, %v575_v50  ;;  %v1121_v6 = vpop.f32.mrb[1].mxu0 }
 0x1c7   : > { %v1611_v11 = vmax.f32 %v4400_v61, 0.0  ;;  %v4399_v12 = vadd.f32 %v1121_v6, %v575_v50 }
 0x1c8   : > { %v1609_v14 = vmax.f32 %v4398_v5, 0.0 }
 0x1c9   : > { %v1620_v16 = vsel %vm276_vm15, %v1611_v11, 0.0  ;;  %v1610_v17 = vmax.f32 %v4399_v12, 0.0  ;;  %vm6214_vm15 = vmmov %vm6205_vm5 }
 0x1ca   : > { %1626 = vst [vmem:[#allocation2 + $0xc] sm:$0xf] %v1620_v16  ;;  %v4931_v19 = vsel %vm274_vm13, %v1609_v14, 0.0  ;;  %vm6215_vm13 = vmmov %vm6206_vm7 }
 0x1cb   : > { %v1619_v21 = vsel %vm275_vm1, %v1610_v17, 0.0  ;;  %v4497_v46 = vcombine.low %v4931_v19, %v4931_v19  ;;  %vm6216_vm1 = vmmov %vm6209_vm9 }
 0x1cc   : > { %v4934_v23 = vcombine.low %v4931_v19, %v1619_v21  ;;  %v4937_v24 = vcombine.low %v1619_v21, %v1619_v21 }
 0x1ce   : > { %1625 = vst [vmem:[#allocation2 + $0x4] sm:$0xff] %v4934_v23  ;;  %1908 = vst [vmem:[#allocation4 + $0x90] sm:$0xf] %v4934_v23 }
 0x1cf   : > { %1909 = vst [vmem:[#allocation4 + $0x98] sm:$0xf] %v4937_v24 }
 0x1d1   : > { %v1904_v26 = vld [vmem:[#allocation2 + $0xc] sm:$0xf] }
 0x1d2   : > { %v4941_v27 = vld [vmem:[#allocation2 + $0xc] sm:$0xff]  ;;  %1910 = vst [vmem:[#allocation4 + $0xa0] sm:$0xf] %v1904_v26 }
 0x1d3   : > { %1944 = vrot.lane.b32.xlu1 %v4941_v27, %s4518_s12  ;;  %v4947_v28 = vcombine.high %v4941_v27, %v4941_v27  ;;  %v1916_v31 = vcombine.low %v4941_v27, %v4941_v27 }
 0x1d5   : > { %1946 = vrot.lane.b32.xlu0 %v4947_v28, %s4518_s12  ;;  %v4969_v30 = vld [vmem:[#allocation2] sm:$0xff]  ;;  %v1628_v32 = vld [vmem:[#allocation2 + $0x8] sm:$0xff] }
 0x1d6   : > { %v1631_v33 = vcombine.high %v4969_v30, %v4969_v30  ;;  %v1632_v20 = vcombine.high %v1628_v32, %v1628_v32  ;;  %v1655_v37 = vcombine.low %v1628_v32, %v1628_v32  ;;  %v1654_v51 = vcombine.low %v4969_v30, %v4969_v30 }
 0x1d7   : > { %1923 = vrot.lane.b32.xlu1 %v4941_v27, %s4519_s13 }
 0x1d9   : > { %1992 = vrot.lane.b32.xlu0 %v4947_v28, %s4520_s14 }
 0x1db   : > { %1969 = vrot.lane.b32.xlu1 %v4941_v27, %s4521_s15 }
 0x1dd   : > { %2038 = vrot.lane.b32.xlu0 %v4947_v28, %s4523_s16 }
 0x1df   : > { %1990 = vrot.lane.b32.xlu1 %v4941_v27, %s4520_s14 }
 0x1e1   : > { %2084 = vrot.lane.b32.xlu0 %v4947_v28, %s4526_s18 }
 0x1e3   : > { %2036 = vrot.lane.b32.xlu1 %v4941_v27, %s4523_s16 }
 0x1e5   : > { %2130 = vrot.lane.b32.xlu0 %v4947_v28, %s4528_s3 }
 0x1e7   : > { %2015 = vrot.lane.b32.xlu1 %v4941_v27, %s4524_s17 }
 0x1e9   : > { %1658 = vrot.lane.b32.xlu0 %v4969_v30, %s4509_s28 }
 0x1eb   : > { %2061 = vrot.lane.b32.xlu1 %v4941_v27, %s4527_s19 }
 0x1ed   : > { %1704 = vrot.lane.b32.xlu0 %v4969_v30, %s4508_s27 }
 0x1ef   : > { %2082 = vrot.lane.b32.xlu1 %v4941_v27, %s4526_s18 }
 0x1f1   : > { %1633 = vrot.lane.b32.xlu0 %v4969_v30, %s4507_s26 }
 0x1f3   : > { %2128 = vrot.lane.b32.xlu1 %v4941_v27, %s4528_s3 }
 0x1f5   : > { %1679 = vrot.lane.b32.xlu0 %v4969_v30, %s4506_s25 }
 0x1f7   : > { %2107 = vrot.lane.b32.xlu1 %v4941_v27, %s4529_s22 }
 0x1f9   : > { %1750 = vrot.lane.b32.xlu0 %v4969_v30, %s4510_s29 }
 0x1fb   : > { %1921 = vrot.lane.b32.xlu1 %v1916_v31, %s4519_s13 }
 0x1fd   : > { %1796 = vrot.lane.b32.xlu0 %v4969_v30, %s4512_s6 }
 0x1ff   : > { %1967 = vrot.lane.b32.xlu1 %v1916_v31, %s4521_s15 }
 0x201   : > { %1725 = vrot.lane.b32.xlu0 %v4969_v30, %s4511_s30 }
 0x203   : > { %2013 = vrot.lane.b32.xlu1 %v1916_v31, %s4524_s17 }
 0x205   : > { %1771 = vrot.lane.b32.xlu0 %v4969_v30, %s4513_s7 }
 0x207   : > { %2059 = vrot.lane.b32.xlu1 %v1916_v31, %s4527_s19 }
 0x209   : > { %1842 = vrot.lane.b32.xlu0 %v4969_v30, %s4514_s8 }
 0x20b   : > { %2105 = vrot.lane.b32.xlu1 %v1916_v31, %s4529_s22 }
 0x20d   : > { %1888 = vrot.lane.b32.xlu0 %v4969_v30, %s6199_s10 }
 0x20f   : > { %2151 = vrot.lane.b32.xlu1 %v1916_v31, %s4531_s11 }
 0x211   : > { %1817 = vrot.lane.b32.xlu0 %v4969_v30, %s6200_s24 }
 0x213   : > { %1637 = vrot.lane.b32.xlu1 %v1628_v32, %s4507_s26 }
 0x215   : > { %1863 = vrot.lane.b32.xlu0 %v4969_v30, %s6201_s9 }
 0x217   : > { %1683 = vrot.lane.b32.xlu1 %v1628_v32, %s4506_s25 }
 0x219   : > { %1919 = vrot.lane.b32.xlu0 %v4934_v23, %s4519_s13 }
 0x21b   : > { %1662 = vrot.lane.b32.xlu1 %v1628_v32, %s4509_s28 }
 0x21d   : > { %1965 = vrot.lane.b32.xlu0 %v4934_v23, %s4521_s15 }
 0x21f   : > { %1708 = vrot.lane.b32.xlu1 %v1628_v32, %s4508_s27 }
 0x221   : > { %2011 = vrot.lane.b32.xlu0 %v4934_v23, %s4524_s17 }
 0x223   : > { %1729 = vrot.lane.b32.xlu1 %v1628_v32, %s4511_s30 }
 0x225   : > { %2057 = vrot.lane.b32.xlu0 %v4934_v23, %s4527_s19 }
 0x227   : > { %1775 = vrot.lane.b32.xlu1 %v1628_v32, %s4513_s7 }
 0x229   : > { %1986 = vrot.lane.b32.xlu0 %v4934_v23, %s4520_s14 }
 0x22b   : > { %1754 = vrot.lane.b32.xlu1 %v1628_v32, %s4510_s29 }
 0x22d   : > { %2032 = vrot.lane.b32.xlu0 %v4934_v23, %s4523_s16 }
 0x22f   : > { %1800 = vrot.lane.b32.xlu1 %v1628_v32, %s4512_s6 }
 0x231   : > { %2103 = vrot.lane.b32.xlu0 %v4934_v23, %s4529_s22 }
 0x233   : > { %1821 = vrot.lane.b32.xlu1 %v1628_v32, %s6200_s24 }
 0x235   : > { %2149 = vrot.lane.b32.xlu0 %v4934_v23, %s4531_s11 }
 0x237   : > { %1867 = vrot.lane.b32.xlu1 %v1628_v32, %s6201_s9 }
 0x239   : > { %2078 = vrot.lane.b32.xlu0 %v4934_v23, %s4526_s18 }
 0x23b   : > { %1846 = vrot.lane.b32.xlu1 %v1628_v32, %s4514_s8 }
 0x23d   : > { %2124 = vrot.lane.b32.xlu0 %v4934_v23, %s4528_s3 }
 0x23f   : > { %1892 = vrot.lane.b32.xlu1 %v1628_v32, %s6199_s10 }
 0x241   : > { %1681 = vrot.lane.b32.xlu0 %v1631_v33, %s4506_s25 }
 0x243   : > { %1940 = vrot.lane.b32.xlu1 %v4934_v23, %s4518_s12 }
 0x245   : > { %v5048_v34 = vpop.permute.xlu1 %1944  ;;  %1639 = vrot.lane.b32.xlu0 %v1632_v20, %s4507_s26 }
 0x247   : > { %v1947_v35 = vpop.permute.xlu0 %1946  ;;  %1635 = vrot.lane.b32.xlu1 %v1631_v33, %s4507_s26 }
 0x248   : > { %v1950_v36 = vsel %vm444_vm14, %v5048_v34, %v1947_v35 }
 0x249   : > { %1956 = vst [vmem:[#allocation4 + $0xb8] sm:$0xf] %v1950_v36  ;;  %v1924_v38 = vpop.permute.xlu1 %1923  ;;  %1685 = vrot.lane.b32.xlu0 %v1632_v20, %s4506_s25 }
 0x24b   : > { %v1993_v39 = vpop.permute.xlu0 %1992  ;;  %1660 = vrot.lane.b32.xlu1 %v1655_v37, %s4509_s28 }
 0x24d   : > { %v1970_v42 = vpop.permute.xlu1 %1969  ;;  %1727 = vrot.lane.b32.xlu0 %v1631_v33, %s4511_s30 }
 0x24f   : > { %v2039_v40 = vpop.permute.xlu0 %2038  ;;  %1706 = vrot.lane.b32.xlu1 %v1655_v37, %s4508_s27 }
 0x251   : > { %v5060_v54 = vpop.permute.xlu1 %1990  ;;  %1773 = vrot.lane.b32.xlu0 %v1631_v33, %s4513_s7 }
 0x252   : > { %v1996_v56 = vsel %vm466_vm12, %v5060_v54, %v1993_v39 }
 0x253   : > { %2002 = vst [vmem:[#allocation4 + $0xd0] sm:$0xf] %v1996_v56  ;;  %v2085_v60 = vpop.permute.xlu0 %2084  ;;  %1656 = vrot.lane.b32.xlu1 %v1654_v51, %s4509_s28 }
 0x255   : > { %v5066_v53 = vpop.permute.xlu1 %2036  ;;  %1731 = vrot.lane.b32.xlu0 %v1632_v20, %s4511_s30 }
 0x256   : > { %v2042_v55 = vsel %vm488_vm8, %v5066_v53, %v2039_v40 }
 0x257   : > { %2048 = vst [vmem:[#allocation4 + $0xe8] sm:$0xf] %v2042_v55  ;;  %v2131_v59 = vpop.permute.xlu0 %2130  ;;  %1702 = vrot.lane.b32.xlu1 %v1654_v51, %s4508_s27  ;;  %s4445_s27 = smul.u32 3, %s6429_s21 }
 0x259   : > { %v2016_v1 = vpop.permute.xlu1 %2015  ;;  %1777 = vrot.lane.b32.xlu0 %v1632_v20, %s4513_s7  ;;  %s221_s30 = scalar_lea.vmem %s6079_s5, %s4445_s27 }
 0x25b   : > { %v5073_v2 = vpop.permute.xlu0 %1658  ;;  %1752 = vrot.lane.b32.xlu1 %v1655_v37, %s4510_s29 }
 0x25d   : > { %v2062_v3 = vpop.permute.xlu1 %2061  ;;  %1819 = vrot.lane.b32.xlu0 %v1631_v33, %s6200_s24 }
 0x25f   : > { %v5077_v4 = vpop.permute.xlu0 %1704  ;;  %1798 = vrot.lane.b32.xlu1 %v1655_v37, %s4512_s6 }
 0x261   : > { %v5080_v7 = vpop.permute.xlu1 %2082  ;;  %1865 = vrot.lane.b32.xlu0 %v1631_v33, %s6201_s9 }
 0x262   : > { %v2088_v8 = vsel %vm510_vm6, %v5080_v7, %v2085_v60 }
 0x263   : > { %2094 = vst [vmem:[#allocation4 + $0x100] sm:$0xf] %v2088_v8  ;;  %v5085_v29 = vpop.permute.xlu0 %1633  ;;  %1748 = vrot.lane.b32.xlu1 %v1654_v51, %s4510_s29 }
 0x265   : > { %v5088_v10 = vpop.permute.xlu1 %2128  ;;  %1823 = vrot.lane.b32.xlu0 %v1632_v20, %s6200_s24 }
 0x266   : > { %v2134_v15 = vsel %vm6202_vm2, %v5088_v10, %v2131_v59  ;;  %vm6217_vm2 = vcmask 646144  }
 0x267   : > { %2140 = vst [vmem:[#allocation4 + $0x118] sm:$0xf] %v2134_v15  ;;  %v5093_v18 = vpop.permute.xlu0 %1679  ;;  %1794 = vrot.lane.b32.xlu1 %v1654_v51, %s4512_s6 }
 0x269   : > { %v2108_v41 = vpop.permute.xlu1 %2107  ;;  %1869 = vrot.lane.b32.xlu0 %v1632_v20, %s6201_s9 }
 0x26b   : > { %v5097_v43 = vpop.permute.xlu0 %1750  ;;  %1844 = vrot.lane.b32.xlu1 %v1655_v37, %s4514_s8 }
 0x26d   : > { %v1922_v44 = vpop.permute.xlu1 %1921  ;;  %1942 = vrot.lane.b32.xlu0 %v4937_v24, %s4518_s12 }
 0x26e   : > { %v1927_v45 = vsel %vm6203_vm3, %v1922_v44, %v1924_v38  ;;  %vm6218_vm3 = vcmask 392192  }
 0x26f   : > { %1933 = vst [vmem:[#allocation4 + $0xa0] sm:$0xf0] %v1927_v45  ;;  %v5105_v47 = vpop.permute.xlu0 %1796  ;;  %1890 = vrot.lane.b32.xlu1 %v1655_v37, %s6199_s10 }
 0x271   : > { %v1968_v48 = vpop.permute.xlu1 %1967  ;;  %1917 = vrot.lane.b32.xlu0 %v4497_v46, %s4519_s13 }
 0x272   : > { %v1973_v49 = vsel %vm6204_vm4, %v1968_v48, %v1970_v42  ;;  %vm6219_vm4 = vmmov %vm6218_vm3 }
 0x273   : > { %1979 = vst [vmem:[#allocation4 + $0xb8] sm:$0xf0] %v1973_v49  ;;  %v5110_v50 = vpop.permute.xlu0 %1725  ;;  %1840 = vrot.lane.b32.xlu1 %v1654_v51, %s4514_s8 }
 0x275   : > { %v2014_v52 = vpop.permute.xlu1 %2013  ;;  %1963 = vrot.lane.b32.xlu0 %v4497_v46, %s4521_s15 }
 0x276   : > { %v2019_v57 = vsel %vm6205_vm5, %v2014_v52, %v2016_v1  ;;  %v5115_v58 = vld [vmem:[#allocation4 + $0xa0] sm:$0xff]  ;;  %vm6220_vm5 = vcmask 408576  }
 0x277   : > { %2025 = vst [vmem:[#allocation4 + $0xd0] sm:$0xf0] %v2019_v57  ;;  %v5117_v61 = vpop.permute.xlu0 %1771  ;;  %1886 = vrot.lane.b32.xlu1 %v1654_v51, %s6199_s10  ;;  %v6122_v62 = vand.u32 4294901760, %v5115_v58 }
 0x279   : > { %v2060_v63 = vpop.permute.xlu1 %2059  ;;  %1988 = vrot.lane.b32.xlu0 %v4937_v24, %s4520_s14  ;;  %v5133_v12 = vsub.f32 %v5115_v58, %v6122_v62 }
 0x27a   : > { %v2065_v0 = vsel %vm6206_vm7, %v2060_v63, %v2062_v3  ;;  %v5124_v5 = vld [vmem:[#allocation4 + $0xb8] sm:$0xff]  ;;  %vm6221_vm7 = vmmov %vm6220_vm5 }
 0x27b   : > { %2071 = vst [vmem:[#allocation4 + $0xe8] sm:$0xf0] %v2065_v0  ;;  %v5126_v6 = vpop.permute.xlu0 %1842  ;;  %2009 = vrot.lane.b32.xlu1 %v4497_v46, %s4524_s17  ;;  %v6121_v11 = vand.u32 4294901760, %v5124_v5  ;;  %6207 = vst [vmem:[#allocation7_spill] sm:$0xff] %v5133_v12  ;;  %v6116_v30 = vand.u32 4294901760, %v5133_v12 }
 0x27d   : > { %v2106_v14 = vpop.permute.xlu1 %2105  ;;  %2034 = vrot.lane.b32.xlu0 %v4937_v24, %s4523_s16  ;;  %v5140_v16 = vsub.f32 %v5124_v5, %v6121_v11 }
 0x27e   : > { %v2111_v17 = vsel %vm6209_vm9, %v2106_v14, %v2108_v41  ;;  %v5143_v19 = vld [vmem:[#allocation4 + $0xd0] sm:$0xff]  ;;  %vm6222_vm9 = vmmov %vm6220_vm5 }
 0x27f   : > { %6208 = vst [vmem:[#allocation8_spill] sm:$0xff] %v5140_v16  ;;  %2117 = vst [vmem:[#allocation4 + $0x100] sm:$0xf0] %v2111_v17  ;;  %v5145_v21 = vpop.permute.xlu0 %1888  ;;  %2055 = vrot.lane.b32.xlu1 %v4497_v46, %s4527_s19  ;;  %v6114_v26 = vand.u32 4294901760, %v5143_v19  ;;  %v6115_v31 = vand.u32 4294901760, %v5140_v16 }
 0x281   : > { %v5151_v32 = vpop.permute.xlu1 %2151  ;;  %2080 = vrot.lane.b32.xlu0 %v4937_v24, %s4526_s18  ;;  %v5159_v33 = vpack.c.bf16 %v6115_v31, %v6116_v30  ;;  %v5170_v37 = vsub.f32 %v5143_v19, %v6114_v26 }
 0x282   : > { %v5161_v20 = vld [vmem:[#allocation4 + $0xe8] sm:$0xff] }
 0x283   : > { %6210 = vst [vmem:[#allocation9_spill] sm:$0xff] %v5159_v33  ;;  %v5163_v35 = vpop.permute.xlu0 %1817  ;;  %2101 = vrot.lane.b32.xlu1 %v4497_v46, %s4529_s22  ;;  %v6113_v36 = vand.u32 4294901760, %v5161_v20  ;;  %v6110_v40 = vand.u32 4294901760, %v5170_v37 }
 0x285   : > { %v1638_v38 = vpop.permute.xlu1 %1637  ;;  %2126 = vrot.lane.b32.xlu0 %v4937_v24, %s4528_s3  ;;  %v5177_v39 = vsub.f32 %v5161_v20, %v6113_v36 }
 0x287   : > { %v5179_v42 = vpop.permute.xlu0 %1863  ;;  %2147 = vrot.lane.b32.xlu1 %v4497_v46, %s4531_s11  ;;  %v6109_v51 = vand.u32 4294901760, %v5177_v39 }
 0x289   : > { %v1684_v56 = vpop.permute.xlu1 %1683  ;;  %2172 = vrot.lane.b32.xlu0 %v4937_v24, %s4530_s23  ;;  %v5190_v60 = vpack.c.bf16 %v6109_v51, %v6110_v40  ;;  %v288_v24 = vld [vmem:[#allocation5] sm:$0x1] }
 0x28b   : > { %6211 = vst [vmem:[#allocation10_spill] sm:$0xff] %v5190_v60  ;;  %v5192_v55 = vpop.permute.xlu0 %1919  ;;  %2153 = vrot.lane.b32.xlu1 %v4941_v27, %s4531_s11 }
 0x28c   : > { %v1926_v59 = vsel %vm6212_vm10, %v5192_v55, %v1922_v44  ;;  %vm6223_vm10 = vmmov %vm6218_vm3 }
 0x28d   : > { %1932 = vst [vmem:[#allocation4 + $0x98] sm:$0xf0] %v1926_v59  ;;  %v1663_v1 = vpop.permute.xlu1 %1662  ;;  %2170 = vrot.lane.b32.xlu0 %v4934_v23, %s4530_s23 }
 0x28f   : > { %v5200_v3 = vpop.permute.xlu0 %1965  ;;  %2174 = vrot.lane.b32.xlu1 %v4941_v27, %s4530_s23 }
 0x290   : > { %v1972_v8 = vsel %vm6213_vm11, %v5200_v3, %v1968_v48  ;;  %vm6224_vm11 = vcmask 400384  }
 0x291   : > { %1978 = vst [vmem:[#allocation4 + $0xb0] sm:$0xf0] %v1972_v8  ;;  %v1709_v15 = vpop.permute.xlu1 %1708  ;;  %2228 = vperm.xlu0 %4489, %v288_v24  }
 0x293   : > { %v5206_v41 = vpop.permute.xlu0 %2011  ;;  %2176 = vrot.lane.b32.xlu1 %v4947_v28, %s4530_s23 }
 0x294   : > { %v2018_v23 = vsel %vm6214_vm15, %v5206_v41, %v2014_v52  ;;  %vm6225_vm15 = vmmov %vm6224_vm11 }
 0x295   : > { %2024 = vst [vmem:[#allocation4 + $0xc8] sm:$0xf0] %v2018_v23  ;;  %v5212_v44 = vpop.permute.xlu1 %1729 }
 0x297   : > { %v5214_v45 = vpop.permute.xlu0 %2057 }
 0x298   : > { %v2064_v27 = vsel %vm6215_vm13, %v5214_v45, %v2060_v63  ;;  %vm6226_vm13 = vcmask 375808  }
 0x299   : > { %2070 = vst [vmem:[#allocation4 + $0xe0] sm:$0xf0] %v2064_v27  ;;  %v5218_v46 = vpop.permute.xlu1 %1775 }
 0x29b   : > { %v5220_v48 = vpop.permute.xlu0 %1986 }
 0x29d   : > { %v5222_v49 = vpop.permute.xlu1 %1754 }
 0x29f   : > { %v5224_v57 = vpop.permute.xlu0 %2032 }
 0x2a1   : > { %v5226_v28 = vpop.permute.xlu1 %1800 }
 0x2a3   : > { %v5228_v52 = vpop.permute.xlu0 %2103 }
 0x2a4   : > { %v2110_v0 = vsel %vm6216_vm1, %v5228_v52, %v2106_v14  ;;  %vm6227_vm1 = vmmov %vm6226_vm13 }
 0x2a5   : > { %2116 = vst [vmem:[#allocation4 + $0xf8] sm:$0xf0] %v2110_v0  ;;  %v5232_v17 = vpop.permute.xlu1 %1821 }
 0x2a7   : > { %v5234_v63 = vpop.permute.xlu0 %2149 }
 0x2a8   : > { %v2156_v59 = vsel %vm6217_vm2, %v5234_v63, %v5151_v32  ;;  %vm6228_vm2 = vcmask 384000  }
 0x2a9   : > { %2162 = vst [vmem:[#allocation4 + $0x110] sm:$0xf0] %v2156_v59  ;;  %v5239_v24 = vpop.permute.xlu1 %1867 }
 0x2ab   : > { %v5241_v8 = vpop.permute.xlu0 %2078 }
 0x2ad   : > { %v5243_v23 = vpop.permute.xlu1 %1846 }
 0x2af   : > { %v5245_v27 = vpop.permute.xlu0 %2124 }
 0x2b1   : > { %v5247_v9 = vpop.permute.xlu1 %1892 }
 0x2b3   : > { %v1682_v14 = vpop.permute.xlu0 %1681 }
 0x2b4   : > { %v1687_v0 = vsel %vm6218_vm3, %v5093_v18, %v1682_v14  ;;  %v1688_v51 = vsel %vm6219_vm4, %v1682_v14, %v1684_v56  ;;  %vm6229_vm3 = vmmov %vm6228_vm2  ;;  %vm6230_vm4 = vcmask 203776  }
 0x2b5   : > { %1693 = vst [vmem:[#allocation4 + $0x18] sm:$0xf] %v1687_v0  ;;  %1694 = vst [vmem:[#allocation4 + $0x20] sm:$0xf] %v1688_v51  ;;  %v5252_v40 = vpop.permute.xlu1 %1940 }
 0x2b7   : > { %v1640_v59 = vpop.permute.xlu0 %1639 }
 0x2b8   : > { %v1643_v25 = vsel %vm6220_vm5, %v1638_v38, %v1640_v59  ;;  %vm6231_vm5 = vmmov %vm6230_vm4 }
 0x2b9   : > { %1649 = vst [vmem:[#allocation4 + $0x10] sm:$0xf] %v1643_v25  ;;  %v1636_v36 = vpop.permute.xlu1 %1635 }
 0x2ba   : > { %v1641_v26 = vsel %vm6221_vm7, %v5085_v29, %v1636_v36  ;;  %v1642_v31 = vsel %vm6222_vm9, %v1636_v36, %v1638_v38  ;;  %vm6232_vm7 = vmmov %vm6224_vm11 }
 0x2bb   : > { %1647 = vst [vmem:[#allocation4] sm:$0xf] %v1641_v26  ;;  %1648 = vst [vmem:[#allocation4 + $0x8] sm:$0xf] %v1642_v31  ;;  %v1686_v30 = vpop.permute.xlu0 %1685 }
 0x2bc   : > { %v1689_v18 = vsel %vm6223_vm10, %v1684_v56, %v1686_v30  ;;  %vm6233_vm9 = vmmov %vm6227_vm1 }
 0x2bd   : > { %1695 = vst [vmem:[#allocation4 + $0x28] sm:$0xf] %v1689_v18  ;;  %v1661_v14 = vpop.permute.xlu1 %1660  ;;  %vm6234_vm10 = vmmov %vm6228_vm2 }
 0x2be   : > { %v1665_v51 = vsel %vm6224_vm11, %v5073_v2, %v1661_v14  ;;  %v1666_v0 = vsel %vm6225_vm15, %v1661_v14, %v1663_v1  ;;  %vm6235_vm11 = vmmov %vm6230_vm4  ;;  %vm6240_vm15 = vcmask 211968  }
 0x2bf   : > { %1671 = vst [vmem:[#allocation4 + $0x8] sm:$0xf0] %v1665_v51  ;;  %1672 = vst [vmem:[#allocation4 + $0x10] sm:$0xf0] %v1666_v0  ;;  %v1728_v25 = vpop.permute.xlu0 %1727 }
 0x2c0   : > { %v1733_v29 = vsel %vm6226_vm13, %v5110_v50, %v1728_v25  ;;  %v1734_v26 = vsel %vm6227_vm1, %v1728_v25, %v5212_v44  ;;  %vm6241_vm13 = vmmov %vm6240_vm15  ;;  %vm6242_vm1 = vcmask 187392  }
 0x2c1   : > { %1739 = vst [vmem:[#allocation4 + $0x30] sm:$0xf] %v1733_v29  ;;  %1740 = vst [vmem:[#allocation4 + $0x38] sm:$0xf] %v1734_v26  ;;  %v1707_v31 = vpop.permute.xlu1 %1706 }
 0x2c2   : > { %v1711_v30 = vsel %vm6228_vm2, %v5077_v4, %v1707_v31  ;;  %v1712_v36 = vsel %vm6229_vm3, %v1707_v31, %v1709_v15  ;;  %vm6243_vm2 = vmmov %vm6242_vm1  ;;  %vm6244_vm3 = vcmask 195584  }
 0x2c3   : > { %1717 = vst [vmem:[#allocation4 + $0x20] sm:$0xf0] %v1711_v30  ;;  %1718 = vst [vmem:[#allocation4 + $0x28] sm:$0xf0] %v1712_v36  ;;  %v1774_v38 = vpop.permute.xlu0 %1773 }
 0x2c4   : > { %v1779_v56 = vsel %vm6230_vm4, %v5117_v61, %v1774_v38  ;;  %v1780_v50 = vsel %vm6231_vm5, %v1774_v38, %v5218_v46  ;;  %vm6245_vm4 = vmmov %vm6244_vm3  ;;  %vm6248_vm5 = vcmask 15360  }
 0x2c5   : > { %1785 = vst [vmem:[#allocation4 + $0x48] sm:$0xf] %v1779_v56  ;;  %1786 = vst [vmem:[#allocation4 + $0x50] sm:$0xf] %v1780_v50  ;;  %v1657_v1 = vpop.permute.xlu1 %1656 }
 0x2c6   : > { %v1664_v59 = vsel %vm6232_vm7, %v1657_v1, %v5073_v2  ;;  %v2188_v18 = vld [vmem:[#allocation4 + $0x8] sm:$0xff]  ;;  %v2189_v14 = vld [vmem:[#allocation4 + $0x10] sm:$0xff]  ;;  %vm6249_vm7 = vmmov %vm6248_vm5 }
 0x2c7   : > { %1670 = vst [vmem:[#allocation4] sm:$0xf0] %v1664_v59  ;;  %v1732_v51 = vpop.permute.xlu0 %1731  ;;  %v2238_v0 = vand.u32 4294901760, %v2188_v18  ;;  %v3016_v25 = vand.u32 4294901760, %v2189_v14 }
 0x2c8   : > { %v1735_v15 = vsel %vm6233_vm9, %v5212_v44, %v1732_v51  ;;  %vm6251_vm9 = vmmov %vm6241_vm13 }
 0x2c9   : > { %1741 = vst [vmem:[#allocation4 + $0x40] sm:$0xf] %v1735_v15  ;;  %v1703_v61 = vpop.permute.xlu1 %1702  ;;  %v5281_v56 = vsub.f32 %v2188_v18, %v2238_v0  ;;  %v5283_v50 = vsub.f32 %v2189_v14, %v3016_v25 }
 0x2ca   : > { %v1710_v29 = vsel %vm6234_vm10, %v1703_v61, %v5077_v4  ;;  %v2191_v26 = vld [vmem:[#allocation4 + $0x20] sm:$0xff]  ;;  %v2192_v31 = vld [vmem:[#allocation4 + $0x28] sm:$0xff]  ;;  %vm6252_vm10 = vmmov %vm6242_vm1 }
 0x2cb   : > { %1716 = vst [vmem:[#allocation4 + $0x18] sm:$0xf0] %v1710_v29  ;;  %v1778_v30 = vpop.permute.xlu0 %1777  ;;  %v2242_v36 = vand.u32 4294901760, %v2191_v26  ;;  %v3019_v2 = vand.u32 4294901760, %v2192_v31  ;;  %6236 = vst [vmem:[#allocation11_spill] sm:$0xff] %v5283_v50 }
 0x2cc   : > { %v1781_v38 = vsel %vm6235_vm11, %v5218_v46, %v1778_v30  ;;  %vm6254_vm11 = vmmov %vm6244_vm3 }
 0x2cd   : > { %1787 = vst [vmem:[#allocation4 + $0x58] sm:$0xf] %v1781_v38  ;;  %v1753_v44 = vpop.permute.xlu1 %1752  ;;  %v5285_v1 = vpack.c.bf16 %v2242_v36, %v2238_v0  ;;  %v5287_v59 = vsub.f32 %v2191_v26, %v2242_v36  ;;  %v5289_v4 = vpack.c.bf16 %v3019_v2, %v3016_v25  ;;  %v5291_v51 = vsub.f32 %v2192_v31, %v3019_v2 }
 0x2ce   : > { %v1757_v15 = vsel %vm6240_vm15, %v5097_v43, %v1753_v44  ;;  %v1758_v46 = vsel %vm6241_vm13, %v1753_v44, %v5222_v49  ;;  %v2187_v18 = vld [vmem:[#allocation4] sm:$0xff]  ;;  %v6117_v49 = vand.u32 4294901760, %v5281_v56  ;;  %v6119_v31 = vand.u32 4294901760, %v5283_v50  ;;  %vm6255_vm15 = vmmov %vm6248_vm5 }
 0x2cf   : > { %6237 = vst [vmem:[#allocation12_spill] sm:$0xff] %v5285_v1  ;;  %6238 = vst [vmem:[#allocation13_spill] sm:$0xff] %v5289_v4  ;;  %v1820_v14 = vpop.permute.xlu0 %1819  ;;  %4147 = vmatprep.subr.bf16.mxu0 %v5285_v1  ;;  %4292 = vmatpush3.bf16.msra.mxu1 %v5289_v4  ;;  %v2240_v0 = vand.u32 4294901760, %v2187_v18  ;;  %v6120_v25 = vand.u32 4294901760, %v5287_v59  ;;  %v6118_v61 = vand.u32 4294901760, %v5291_v51  ;;  %vm6260_vm13 = vcmask 179200  }
 0x2d0   : > { %6239 = vst [vmem:[#allocation14_spill] sm:$0xff] %v5291_v51  ;;  %1763 = vst [vmem:[#allocation4 + $0x38] sm:$0xf0] %v1757_v15  ;;  %v1825_v29 = vsel %vm6242_vm1, %v5163_v35, %v1820_v14  ;;  %v1826_v26 = vsel %vm6243_vm2, %v1820_v14, %v5232_v17  ;;  %4293 = vmatprep.subr.bf16.mxu1 %v6125_v22  ;;  %vm6263_vm2 = vcmask 7168  }
 0x2d1   : > { %1764 = vst [vmem:[#allocation4 + $0x40] sm:$0xf0] %v1758_v46  ;;  %1831 = vst [vmem:[#allocation4 + $0x60] sm:$0xf] %v1825_v29  ;;  %v1799_v30 = vpop.permute.xlu1 %1798  ;;  %v5316_v35 = vpack.c.bf16 %v6120_v25, %v6117_v49  ;;  %v5322_v44 = vpack.c.bf16 %v6118_v61, %v6119_v31  ;;  %v5324_v14 = vsub.f32 %v2187_v18, %v2240_v0 }
 0x2d2   : > { %1832 = vst [vmem:[#allocation4 + $0x68] sm:$0xf] %v1826_v26  ;;  %v1803_v36 = vsel %vm6244_vm3, %v5105_v47, %v1799_v30  ;;  %v1804_v2 = vsel %vm6245_vm4, %v1799_v30, %v5226_v28  ;;  %v2190_v38 = vld [vmem:[#allocation4 + $0x18] sm:$0xff]  ;;  %vm6261_vm1 = vmmov %vm6260_vm13 }
 0x2d3   : > { %6246 = vst [vmem:[#allocation15_spill] sm:$0xff] %v5316_v35  ;;  %6247 = vst [vmem:[#allocation16_spill] sm:$0xff] %v5322_v44  ;;  %v1866_v15 = vpop.permute.xlu0 %1865  ;;  %v2244_v46 = vand.u32 4294901760, %v2190_v38  ;;  %v6123_v31 = vand.u32 4294901760, %v5324_v14  ;;  %v5565_v35 = vld [vmem:[#allocation4 + $0x100] sm:$0xff] }
 0x2d4   : > { %1809 = vst [vmem:[#allocation4 + $0x50] sm:$0xf0] %v1803_v36  ;;  %1810 = vst [vmem:[#allocation4 + $0x58] sm:$0xf0] %v1804_v2  ;;  %v1871_v28 = vsel %vm6248_vm5, %v5179_v42, %v1866_v15  ;;  %v1872_v29 = vsel %vm6249_vm7, %v1866_v15, %v5239_v24  ;;  %vm6272_vm5 = vcmask 850944   ;;  %vm6273_vm7 = vcmask 867328  }
 0x2d5   : > { %1877 = vst [vmem:[#allocation4 + $0x78] sm:$0xf] %v1871_v28  ;;  %1878 = vst [vmem:[#allocation4 + $0x80] sm:$0xf] %v1872_v29  ;;  %v1749_v26 = vpop.permute.xlu1 %1748  ;;  %v5330_v30 = vpack.c.bf16 %v2244_v46, %v2240_v0  ;;  %v5332_v49 = vsub.f32 %v2190_v38, %v2244_v46 }
 0x2d6   : > { %v1756_v36 = vsel %vm6251_vm9, %v1749_v26, %v5097_v43  ;;  %vm6264_vm3 = vmmov %vm6263_vm2 }
 0x2d7   : > { %6250 = vst [vmem:[#allocation17_spill] sm:$0xff] %v5330_v30  ;;  %v2194_v2 = vld [vmem:[#allocation4 + $0x38] sm:$0xff]  ;;  %1762 = vst [vmem:[#allocation4 + $0x30] sm:$0xf0] %v1756_v36  ;;  %v1824_v18 = vpop.permute.xlu0 %1823  ;;  %4149 = vmatpush1.bf16.msra.mxu0 %v5330_v30  ;;  %v6124_v15 = vand.u32 4294901760, %v5332_v49 }
 0x2d8   : > { %v2246_v61 = vand.u32 4294901760, %v2194_v2  ;;  %v2195_v42 = vld [vmem:[#allocation4 + $0x40] sm:$0xff]  ;;  %v1827_v0 = vsel %vm6252_vm10, %v5232_v17, %v1824_v18  ;;  %vm6271_vm4 = vmmov %vm6261_vm1 }
 0x2d9   : > { %1833 = vst [vmem:[#allocation4 + $0x70] sm:$0xf] %v1827_v0  ;;  %v1795_v38 = vpop.permute.xlu1 %1794  ;;  %v5345_v43 = vpack.c.bf16 %v6124_v15, %v6123_v31  ;;  %v3022_v26 = vand.u32 4294901760, %v2195_v42  ;;  %vm6274_vm9 = vmmov %vm6263_vm2 }
 0x2da   : > { %v1802_v46 = vsel %vm6254_vm11, %v1795_v38, %v5105_v47  ;;  %v5349_v11 = vsub.f32 %v2194_v2, %v2246_v61  ;;  %vm6278_vm10 = vmmov %vm6272_vm5 }
 0x2db   : > { %6253 = vst [vmem:[#allocation18_spill] sm:$0xff] %v5345_v43  ;;  %v2197_v28 = vld [vmem:[#allocation4 + $0x50] sm:$0xff]  ;;  %v2198_v29 = vld [vmem:[#allocation4 + $0x58] sm:$0xff]  ;;  %1808 = vst [vmem:[#allocation4 + $0x48] sm:$0xf0] %v1802_v46  ;;  %v1870_v36 = vpop.permute.xlu0 %1869  ;;  %v5365_v46 = vsub.f32 %v2195_v42, %v3022_v26 }
 0x2dc   : > { %v2250_v25 = vand.u32 4294901760, %v2197_v28  ;;  %v3025_v17 = vand.u32 4294901760, %v2198_v29  ;;  %v1873_v18 = vsel %vm6255_vm15, %v5239_v24, %v1870_v36  ;;  %vm6305_vm15 = vcmask 646144  }
 0x2dd   : > { %1879 = vst [vmem:[#allocation4 + $0x88] sm:$0xf] %v1873_v18  ;;  %v1845_v0 = vpop.permute.xlu1 %1844 }
 0x2de   : > { %v5353_v62 = vpack.c.bf16 %v2250_v25, %v2246_v61  ;;  %v5355_v31 = vsub.f32 %v2197_v28, %v2250_v25  ;;  %v5357_v15 = vpack.c.bf16 %v3025_v17, %v3022_v26  ;;  %v5359_v47 = vsub.f32 %v2198_v29, %v3025_v17  ;;  %v2193_v22 = vld [vmem:[#allocation4 + $0x30] sm:$0xff] }
 0x2df   : > { %v1849_v38 = vsel %vm6260_vm13, %v5126_v6, %v1845_v0  ;;  %v1850_v2 = vsel %vm6261_vm1, %v1845_v0, %v5243_v23  ;;  %v1943_v24 = vpop.permute.xlu0 %1942  ;;  %v6128_v25 = vand.u32 4294901760, %v5349_v11  ;;  %v2248_v42 = vand.u32 4294901760, %v2193_v22  ;;  %vm6313_vm13 = vmmov %vm6305_vm15 }
 0x2e0   : > { %6256 = vst [vmem:[#allocation19_spill] sm:$0xff] %v5353_v62  ;;  %6257 = vst [vmem:[#allocation20_spill] sm:$0xff] %v5355_v31  ;;  %4151 = vmatprep.subr.bf16.mxu0 %v5353_v62  ;;  %4295 = vmatpush3.bf16.msra.mxu1 %v5357_v15  ;;  %v6127_v61 = vand.u32 4294901760, %v5355_v31  ;;  %v1948_v28 = vsel %vm444_vm14, %v5252_v40, %v1943_v24  ;;  %v1949_v23 = vsel %vm444_vm14, %v1943_v24, %v5048_v34  ;;  %v6262_v29 = vmov 0.0|0.0   ;;  %v287_v24 = vld [vmem:[%s6076_s2] sm:$0x1] }
 0x2e1   : > { %6258 = vst [vmem:[#allocation21_spill] sm:$0xff] %v5357_v15  ;;  %6259 = vst [vmem:[#allocation22_spill] sm:$0xff] %v5359_v47  ;;  %4296 = vmatprep.subr.bf16.mxu1 %v6262_v29  ;;  %v6130_v26 = vand.u32 4294901760, %v5359_v47  ;;  %v1891_v36 = vpop.permute.xlu1 %1890  ;;  %v6129_v40 = vand.u32 4294901760, %v5365_v46  ;;  %vm6266_vm14 = vcmask 1039360   ;;  %v6310_v15 = vand.u32 4294901760, %v5355_v31 }
 0x2e2   : > { %1855 = vst [vmem:[#allocation4 + $0x68] sm:$0xf0] %v1849_v38  ;;  %1856 = vst [vmem:[#allocation4 + $0x70] sm:$0xf0] %v1850_v2  ;;  %v1895_v17 = vsel %vm6263_vm2, %v5145_v21, %v1891_v36  ;;  %v1896_v18 = vsel %vm6264_vm3, %v1891_v36, %v5247_v9  ;;  %v2196_v0 = vld [vmem:[#allocation4 + $0x48] sm:$0xff]  ;;  %v5386_v34 = vpack.c.bf16 %v6127_v61, %v6128_v25  ;;  %v2236_v25 = vsel %vm6272_vm5, %v287_v24, 0 }
 0x2e3   : > { %1954 = vst [vmem:[#allocation4 + $0xa8] sm:$0xf] %v1948_v28  ;;  %1955 = vst [vmem:[#allocation4 + $0xb0] sm:$0xf] %v1949_v23  ;;  %v1918_v38 = vpop.permute.xlu0 %1917  ;;  %v2252_v2 = vand.u32 4294901760, %v2196_v0  ;;  %v5393_v28 = vsub.f32 %v2193_v22, %v2248_v42  ;;  %v5399_v23 = vpack.c.bf16 %v6130_v26, %v6129_v40  ;;  %vm6320_vm1 = vcmask 637952  }
 0x2e4   : > { %6265 = vst [vmem:[#allocation23_spill] sm:$0xff] %v5386_v34  ;;  %1901 = vst [vmem:[#allocation4 + $0x80] sm:$0xf0] %v1895_v17  ;;  %v1925_v9 = vsel %vm6266_vm14, %v1918_v38, %v5192_v55  ;;  %vm6363_vm14 = vmmov 0  }
 0x2e5   : > { %1902 = vst [vmem:[#allocation4 + $0x88] sm:$0xf0] %v1896_v18  ;;  %6267 = vst [vmem:[#allocation24_spill] sm:$0xff] %v5393_v28  ;;  %v1841_v36 = vpop.permute.xlu1 %1840  ;;  %v5401_v17 = vpack.c.bf16 %v2252_v2, %v2248_v42  ;;  %v5403_v18 = vsub.f32 %v2196_v0, %v2252_v2  ;;  %v6132_v0 = vand.u32 4294901760, %v5393_v28 }
 0x2e6   : > { %6268 = vst [vmem:[#allocation25_spill] sm:$0xff] %v5399_v23  ;;  %1931 = vst [vmem:[#allocation4 + $0x90] sm:$0xf0] %v1925_v9  ;;  %v1848_v61 = vsel %vm6271_vm4, %v1841_v36, %v5126_v6  ;;  %v5417_v6 = vand.u32 4294901760, %v2236_v25 }
 0x2e7   : > { %6269 = vst [vmem:[#allocation26_spill] sm:$0xff] %v5401_v17  ;;  %6270 = vst [vmem:[#allocation27_spill] sm:$0xff] %v5403_v18  ;;  %v1964_v22 = vpop.permute.xlu0 %1963  ;;  %4153 = vmatpush1.bf16.msra.mxu0 %v5401_v17  ;;  %v6133_v55 = vand.u32 4294901760, %v5403_v18 }
 0x2e8   : > { %1854 = vst [vmem:[#allocation4 + $0x60] sm:$0xf0] %v1848_v61  ;;  %v1971_v38 = vsel %vm6273_vm7, %v1964_v22, %v5200_v3  ;;  %vm6325_vm2 = vmmov %vm6320_vm1 }
 0x2e9   : > { %v5412_v9 = vld [vmem:[#allocation4 + $0x68] sm:$0xff]  ;;  %v5414_v42 = vld [vmem:[#allocation4 + $0x70] sm:$0xff]  ;;  %1977 = vst [vmem:[#allocation4 + $0xa8] sm:$0xf0] %v1971_v38  ;;  %v1887_v2 = vpop.permute.xlu1 %1886  ;;  %v5429_v3 = vpack.c.bf16 %v6133_v55, %v6132_v0  ;;  %vm6333_vm3 = vmmov %vm6320_vm1 }
 0x2ea   : > { %v1894_v61 = vsel %vm6274_vm9, %v1887_v2, %v5145_v21  ;;  %v6137_v38 = vand.u32 4294901760, %v5412_v9  ;;  %v6135_v26 = vand.u32 4294901760, %v5414_v42 }
 0x2eb   : > { %v5421_v24 = vld [vmem:[#allocation4 + $0x80] sm:$0xff]  ;;  %6275 = vst [vmem:[#allocation28_spill] sm:$0xff] %v5429_v3  ;;  %1900 = vst [vmem:[#allocation4 + $0x78] sm:$0xf0] %v1894_v61  ;;  %v1989_v22 = vpop.permute.xlu0 %1988 }
 0x2ec   : > { %v5423_v36 = vld [vmem:[#allocation4 + $0x88] sm:$0xff]  ;;  %v6136_v40 = vand.u32 4294901760, %v5421_v24  ;;  %v1994_v2 = vsel %vm466_vm12, %v5220_v48, %v1989_v22  ;;  %v1995_v13 = vsel %vm466_vm12, %v1989_v22, %v5060_v54  ;;  %v5458_v22 = vsub.f32 %v2236_v25, %v5417_v6 }
 0x2ed   : > { %v6134_v21 = vand.u32 4294901760, %v5423_v36  ;;  %2000 = vst [vmem:[#allocation4 + $0xc0] sm:$0xf] %v1994_v2  ;;  %2001 = vst [vmem:[#allocation4 + $0xc8] sm:$0xf] %v1995_v13  ;;  %v2010_v0 = vpop.permute.xlu1 %2009  ;;  %v5455_v13 = vld [vmem:[#allocation4 + $0xb0] sm:$0xff] }
 0x2ee   : > { %v5443_v61 = vpack.c.bf16 %v6136_v40, %v6137_v38  ;;  %v2017_v48 = vsel %vm6278_vm10, %v2010_v0, %v5206_v41  ;;  %6279 = vst [vmem:[#allocation31_spill] sm:$0xff] %v5458_v22  ;;  %v2206_v0 = vld [vmem:[#allocation4 + $0x98] sm:$0xff]  ;;  %v6281_v40 = vand.u32 4294901760, %v5124_v5  ;;  %v6283_v38 = vand.u32 4294901760, %v5133_v12 }
 0x2ef   : > { %v5449_v55 = vpack.c.bf16 %v6134_v21, %v6135_v26  ;;  %2023 = vst [vmem:[#allocation4 + $0xc0] sm:$0xf0] %v2017_v48  ;;  %v2035_v54 = vpop.permute.xlu0 %2034  ;;  %v5465_v41 = vld [vmem:[#allocation4 + $0x60] sm:$0xff]  ;;  %v6280_v26 = vand.u32 4294901760, %v5115_v58  ;;  %vm6299_vm12 = vcmask 654336   ;;  %v6327_v1 = vand.u32 4294901760, %v5423_v36 }
 0x2f0   : > { %6276 = vst [vmem:[#allocation29_spill] sm:$0xff] %v5443_v61  ;;  %4155 = vmatprep.subr.bf16.mxu0 %v5443_v61  ;;  %v2040_v2 = vsel %vm488_vm8, %v5224_v57, %v2035_v54  ;;  %v2041_v21 = vsel %vm488_vm8, %v2035_v54, %v5066_v53  ;;  %v5476_v57 = vsub.f32 %v5133_v12, %v6283_v38  ;;  %vm6284_vm8 = vcmask 834560   ;;  %vm6300_vm11 = vmmov %vm6299_vm12 }
 0x2f1   : > { %6277 = vst [vmem:[#allocation30_spill] sm:$0xff] %v5449_v55  ;;  %4298 = vmatpush3.bf16.msra.mxu1 %v5449_v55  ;;  %2046 = vst [vmem:[#allocation4 + $0xd8] sm:$0xf] %v2040_v2  ;;  %v2056_v48 = vpop.permute.xlu1 %2055  ;;  %v5471_v25 = vpack.c.bf16 %v6281_v40, %v6280_v26  ;;  %v2262_v40 = vand.u32 4294901760, %v2206_v0  ;;  %v5489_v38 = vand.u32 4294901760, %v5458_v22  ;;  %v6286_v2 = vand.u32 4294901760, %v5140_v16 }
 0x2f2   : > { %4299 = vmatprep.subr.bf16.mxu1 %v6262_v29  ;;  %2047 = vst [vmem:[#allocation4 + $0xe0] sm:$0xf] %v2041_v21  ;;  %v2063_v53 = vsel %vm6284_vm8, %v2056_v48, %v5214_v45  ;;  %v5480_v54 = vld [vmem:[#allocation4 + $0x78] sm:$0xff]  ;;  %v5483_v21 = vld [vmem:[#allocation4 + $0xa8] sm:$0xff]  ;;  %v6287_v60 = vand.u32 4294901760, %v5465_v41  ;;  %v6306_v55 = vand.u32 4294901760, %v5291_v51 }
 0x2f3   : > { %6282 = vst [vmem:[#allocation32_spill] sm:$0xff] %v5471_v25  ;;  %2069 = vst [vmem:[#allocation4 + $0xd8] sm:$0xf0] %v2063_v53  ;;  %v2081_v58 = vpop.permute.xlu0 %2080  ;;  %v5496_v53 = vld [vmem:[#allocation4 + $0x90] sm:$0xff]  ;;  %v5501_v5 = vsub.f32 %v5140_v16, %v6286_v2  ;;  %v6288_v33 = vand.u32 4294901760, %v5480_v54  ;;  %v5665_v16 = vsub.f32 %v5423_v36, %v6327_v1 }
 0x2f4   : > { %6285 = vst [vmem:[#allocation33_spill] sm:$0xff] %v5489_v38  ;;  %v2086_v45 = vsel %vm510_vm6, %v5241_v8, %v2081_v58  ;;  %v2087_v48 = vsel %vm510_vm6, %v2081_v58, %v5080_v7  ;;  %v6290_v7 = vand.u32 4294901760, %v5143_v19  ;;  %v6291_v58 = vand.u32 4294901760, %v5161_v20  ;;  %v5523_v34 = vld [vmem:[#allocation4 + $0xc8] sm:$0xff] }
 0x2f5   : > { %4301 = vmatpush3.bf16.msra.mxu1 %v5471_v25  ;;  %2092 = vst [vmem:[#allocation4 + $0xf0] sm:$0xf] %v2086_v45  ;;  %2093 = vst [vmem:[#allocation4 + $0xf8] sm:$0xf] %v2087_v48  ;;  %v2102_v26 = vpop.permute.xlu1 %2101  ;;  %v5507_v8 = vpack.c.bf16 %v6288_v33, %v6287_v60  ;;  %vm6293_vm6 = vcmask 662528   ;;  %v6294_v48 = vand.u32 4294901760, %v5455_v13 }
 0x2f6   : > { %4302 = vmatprep.subr.bf16.mxu1 %v6262_v29  ;;  %v5513_v23 = vpack.c.bf16 %v6291_v58, %v6290_v7  ;;  %v2109_v45 = vsel %vm6293_vm6, %v2102_v26, %v5228_v52  ;;  %v6296_v33 = vand.u32 4294901760, %v5287_v59  ;;  %v6297_v20 = vand.u32 4294901760, %v5332_v49 }
 0x2f7   : > { %6289 = vst [vmem:[#allocation34_spill] sm:$0xff] %v5507_v8  ;;  %v5521_v44 = vpack.c.bf16 %v6294_v48, %v2262_v40  ;;  %2115 = vst [vmem:[#allocation4 + $0xf0] sm:$0xf0] %v2109_v45  ;;  %v2127_v7 = vpop.permute.xlu0 %2126  ;;  %4157 = vmatpush1.bf16.msra.mxu0 %v5507_v8  ;;  %v5533_v52 = vsub.f32 %v2206_v0, %v2262_v40  ;;  %v6146_v26 = vand.u32 4294901760, %v5496_v53  ;;  %v6298_v58 = vand.u32 4294901760, %v5281_v56  ;;  %v5548_v0 = vld [vmem:[#allocation4 + $0xc0] sm:$0xff] }
 0x2f8   : > { %6292 = vst [vmem:[#allocation35_spill] sm:$0xff] %v5513_v23  ;;  %v2355_v19 = vsub.f32 %v5287_v59, %v6296_v33  ;;  %v2361_v60 = vsub.f32 %v5332_v49, %v6297_v20  ;;  %v2332_v33 = vsub.f32 %v5458_v22, %v5489_v38  ;;  %v2132_v20 = vsel %vm6299_vm12, %v5245_v27, %v2127_v7 }
 0x2f9   : > { %6295 = vst [vmem:[#allocation36_spill] sm:$0xff] %v5521_v44  ;;  %4304 = vmatpush3.bf16.msra.mxu1 %v5513_v23  ;;  %v2343_v48 = vsub.f32 %v5281_v56, %v6298_v58  ;;  %v2133_v45 = vsel %vm6300_vm11, %v2127_v7, %v5088_v10  ;;  %4159 = vmatprep.subr.bf16.mxu0 %v5521_v44  ;;  %v5546_v2 = vld [vmem:[#allocation4 + $0xe0] sm:$0xff]  ;;  %v6301_v40 = vand.u32 4294901760, %v5283_v50  ;;  %2138 = vst [vmem:[#allocation4 + $0x108] sm:$0xf] %v2132_v20  ;;  %v2148_v27 = vpop.permute.xlu1 %2147 }
 0x2fa   : > { %4305 = vmatprep.subr.bf16.mxu1 %v6262_v29  ;;  %2139 = vst [vmem:[#allocation4 + $0x110] sm:$0xf] %v2133_v45  ;;  %v6302_v10 = vand.u32 4294901760, %v5483_v21  ;;  %v6153_v43 = vand.u32 4294901760, %v5523_v34  ;;  %v6154_v38 = vand.u32 4294901760, %v5546_v2  ;;  %v2155_v20 = vsel %vm6305_vm15, %v2148_v27, %v5234_v63  ;;  %v2214_v45 = vld [vmem:[#allocation4 + $0xd8] sm:$0xff] }
 0x2fb   : > { %v5554_v58 = vsub.f32 %v5283_v50, %v6301_v40  ;;  %v6304_v40 = vand.u32 4294901760, %v5324_v14  ;;  %v2356_v3 = vand.u32 4294901760, %v2355_v19  ;;  %v2362_v25 = vand.u32 4294901760, %v2361_v60  ;;  %2161 = vst [vmem:[#allocation4 + $0x108] sm:$0xf0] %v2155_v20 }
 0x2fc   : > { %v5561_v7 = vpack.c.bf16 %v6302_v10, %v6146_v26  ;;  %v5575_v10 = vsub.f32 %v5291_v51, %v6306_v55  ;;  %v2173_v26 = vpop.permute.xlu0 %2172  ;;  %v6159_v63 = vand.u32 4294901760, %v5548_v0  ;;  %v2276_v27 = vand.u32 4294901760, %v2214_v45 }
 0x2fd   : > { %v2349_v23 = vsub.f32 %v5324_v14, %v6304_v40  ;;  %v5582_v40 = vpack.c.bf16 %v6154_v38, %v6153_v43  ;;  %v6308_v19 = vand.u32 4294901760, %v5349_v11  ;;  %v2344_v20 = vand.u32 4294901760, %v2343_v48  ;;  %v2154_v8 = vpop.permute.xlu1 %2153 }
 0x2fe   : > { %6303 = vst [vmem:[#allocation37_spill] sm:$0xff] %v5561_v7  ;;  %4161 = vmatpush1.bf16.msra.mxu0 %v5561_v7  ;;  %v5591_v44 = vand.u32 4294901760, %v2332_v33  ;;  %v5597_v43 = vpack.c.bf16 %v2276_v27, %v6159_v63  ;;  %v6311_v48 = vand.u32 4294901760, %v5412_v9  ;;  %v2157_v7 = vsel %vm6313_vm13, %v5151_v32, %v2154_v8 }
 0x2ff   : > { %6307 = vst [vmem:[#allocation38_spill] sm:$0xff] %v5582_v40  ;;  %v5588_v60 = vsub.f32 %v5349_v11, %v6308_v19  ;;  %4163 = vmatprep.subr.bf16.mxu0 %v5582_v40  ;;  %v2350_v38 = vand.u32 4294901760, %v2349_v23  ;;  %v5602_v19 = vsub.f32 %v5355_v31, %v6310_v15  ;;  %v2218_v40 = vld [vmem:[#allocation4 + $0xf8] sm:$0xff]  ;;  %v6314_v23 = vand.u32 4294901760, %v5403_v18  ;;  %2163 = vst [vmem:[#allocation4 + $0x118] sm:$0xf0] %v2157_v7 }
 0x300   : > { %6309 = vst [vmem:[#allocation39_spill] sm:$0xff] %v5597_v43  ;;  %v5608_v33 = vsub.f32 %v5412_v9, %v6311_v48  ;;  %v6315_v15 = vand.u32 4294901760, %v5421_v24  ;;  %v2171_v17 = vpop.permute.xlu0 %2170  ;;  %v5624_v9 = vpack.c.bf16 %v2356_v3, %v2344_v20  ;;  %v6317_v48 = vand.u32 4294901760, %v5414_v42 }
 0x301   : > { %v5616_v61 = vsub.f32 %v5403_v18, %v6314_v23  ;;  %v5626_v32 = vpack.c.bf16 %v2362_v25, %v2350_v38  ;;  %v6318_v63 = vand.u32 4294901760, %v5455_v13  ;;  %v2178_v7 = vsel %vm6320_vm1, %v2171_v17, %v2173_v26  ;;  %v2175_v38 = vpop.permute.xlu1 %2174 }
 0x302   : > { %6312 = vst [vmem:[#allocation40_spill] sm:$0xff] %v5608_v33  ;;  %v5621_v55 = vsub.f32 %v5421_v24, %v6315_v15  ;;  %4165 = vmatpush1.bf16.msra.mxu0 %v5597_v43  ;;  %v5632_v23 = vsub.f32 %v5414_v42, %v6317_v48  ;;  %v2221_v15 = vld [vmem:[#allocation4 + $0x110] sm:$0xff]  ;;  %v6321_v3 = vand.u32 4294901760, %v5359_v47  ;;  %2184 = vst [vmem:[#allocation4 + $0x120] sm:$0xf] %v2178_v7  ;;  %v2278_v20 = vand.u32 4294901760, %v2218_v40 }
 0x303   : > { %v5637_v24 = vsub.f32 %v5455_v13, %v6318_v63  ;;  %v2217_v43 = vld [vmem:[#allocation4 + $0xf0] sm:$0xff]  ;;  %v2282_v8 = vand.u32 4294901760, %v2221_v15  ;;  %v6322_v48 = vand.u32 4294901760, %v5393_v28  ;;  %v6323_v17 = vand.u32 4294901760, %v5480_v54 }
 0x304   : > { %6316 = vst [vmem:[#allocation41_spill] sm:$0xff] %v5621_v55  ;;  %v5643_v25 = vsub.f32 %v5359_v47, %v6321_v3  ;;  %v2179_v4 = vsel %vm6325_vm2, %v2173_v26, %v2175_v38  ;;  %v2220_v3 = vld [vmem:[#allocation4 + $0x108] sm:$0xff]  ;;  %v2390_v62 = vand.u32 4294901760, %v5608_v33  ;;  %v2280_v42 = vand.u32 4294901760, %v2217_v43 }
 0x305   : > { %6319 = vst [vmem:[#allocation42_spill] sm:$0xff] %v5637_v24  ;;  %v5649_v13 = vsub.f32 %v5393_v28, %v6322_v48  ;;  %v5654_v63 = vsub.f32 %v5480_v54, %v6323_v17  ;;  %2185 = vst [vmem:[#allocation4 + $0x128] sm:$0xf] %v2179_v4  ;;  %v5659_v30 = vpack.c.bf16 %v2282_v8, %v2278_v20  ;;  %v2284_v22 = vand.u32 4294901760, %v2220_v3  ;;  %v2177_v36 = vpop.permute.xlu1 %2176 }
 0x306   : > { %v2402_v48 = vand.u32 4294901760, %v5621_v55  ;;  %v6328_v54 = vand.u32 4294901760, %v5465_v41  ;;  %v6329_v7 = vand.u32 4294901760, %v5483_v21  ;;  %v6330_v47 = vand.u32 4294901760, %v5546_v2 }
 0x307   : > { %6324 = vst [vmem:[#allocation43_spill] sm:$0xff] %v5654_v63  ;;  %6326 = vst [vmem:[#allocation44_spill] sm:$0xff] %v5659_v30  ;;  %v5684_v1 = vsub.f32 %v2214_v45, %v2276_v27  ;;  %4167 = vmatprep.subr.bf16.mxu0 %v5659_v30  ;;  %v5694_v4 = vsub.f32 %v2221_v15, %v2282_v8  ;;  %v6335_v27 = vand.u32 4294901760, %v5548_v0 }
 0x308   : > { %v5670_v26 = vsub.f32 %v5465_v41, %v6328_v54  ;;  %v5677_v12 = vsub.f32 %v5483_v21, %v6329_v7  ;;  %v5682_v18 = vsub.f32 %v5546_v2, %v6330_v47  ;;  %v5687_v41 = vpack.c.bf16 %v2284_v22, %v2280_v42  ;;  %v5697_v7 = vld [vmem:[#allocation4 + $0x118] sm:$0xff] }
 0x309   : > { %v6332_v54 = vand.u32 4294901760, %v5496_v53  ;;  %v2180_v21 = vsel %vm6333_vm3, %v2175_v38, %v2177_v36  ;;  %v2408_v47 = vand.u32 4294901760, %v5654_v63  ;;  %v6334_v2 = vand.u32 4294901760, %v5523_v34 }
 0x30a   : > { %6331 = vst [vmem:[#allocation45_spill] sm:$0xff] %v5687_v41  ;;  %v5708_v30 = vsub.f32 %v5548_v0, %v6335_v27  ;;  %2186 = vst [vmem:[#allocation4 + $0x130] sm:$0xf] %v2180_v21  ;;  %4169 = vmatpush1.bf16.msra.mxu0 %v5687_v41  ;;  %v2403_v8 = vsub.f32 %v5621_v55, %v2402_v48  ;;  %v5713_v15 = vsub.f32 %v2218_v40, %v2278_v20  ;;  %v5725_v21 = vld [vmem:[#allocation4 + $0x120] sm:$0xff]  ;;  %v6340_v40 = vmov 0.0  }
 0x30b   : > { %v5692_v17 = vsub.f32 %v5496_v53, %v6332_v54  ;;  %v5703_v45 = vsub.f32 %v5523_v34, %v6334_v2  ;;  %v6185_v53 = vand.u32 4294901760, %v5697_v7  ;;  %v5715_v38 = vsub.f32 %v2220_v3, %v2284_v22 }
 0x30c   : > { %v2396_v36 = vand.u32 4294901760, %v5670_v26  ;;  %v3141_v34 = vand.u32 4294901760, %v5665_v16  ;;  %v6336_v54 = vand.u32 4294901760, %v5565_v35  ;;  %v2432_v2 = vand.u32 4294901760, %v5677_v12  ;;  %v5732_v20 = vld [vmem:[#allocation4 + $0x128] sm:$0xff] }
 0x30d   : > { %v2450_v27 = vand.u32 4294901760, %v5682_v18  ;;  %v5730_v22 = vsub.f32 %v2217_v43, %v2280_v42  ;;  %v5735_v41 = vpack.c.bf16 %v2402_v48, %v2390_v62  ;;  %v2438_v28 = vand.u32 4294901760, %v5703_v45 }
 0x30e   : > { %v5723_v0 = vpack.c.bf16 %v6185_v53, %v6336_v54  ;;  %v5737_v55 = vpack.c.bf16 %v2408_v47, %v2396_v36  ;;  %v5741_v54 = vand.u32 4294901760, %v5732_v20  ;;  %v2420_v53 = vand.u32 4294901760, %v5692_v17 }
 0x30f   : > { %6338 = vst [vmem:[#allocation47_spill] sm:$0xff] %v5735_v41  ;;  %v5747_v42 = vand.u32 4294901760, %v5725_v21  ;;  %v2409_v51 = vsub.f32 %v5654_v63, %v2408_v47  ;;  %v6343_v43 = vand.u32 4294901760, %v5637_v24  ;;  %v6349_v47 = vand.u32 4294901760, %v5713_v15 }
 0x310   : > { %6337 = vst [vmem:[#allocation46_spill] sm:$0xff] %v5723_v0  ;;  %6339 = vst [vmem:[#allocation48_spill] sm:$0xff] %v5737_v55  ;;  %4307 = vmatpush3.bf16.msra.mxu1 %v5723_v0  ;;  %v6341_v55 = vand.u32 4294901760, %v5632_v23  ;;  %2287 = vmatprep.subr.mxu0 %v5741_v54  ;;  %v2391_v0 = vsub.f32 %v5608_v33, %v2390_v62  ;;  %v5762_v31 = vpack.c.bf16 %v2432_v2, %v2420_v53 }
 0x311   : > { %3912 = vmatprep.subr.mxu1 %v6340_v40  ;;  %v2427_v50 = vsub.f32 %v5637_v24, %v6343_v43  ;;  %2289 = vmatpush1.msra.mxu0 %v5747_v42  ;;  %v5765_v48 = vld [vmem:[#allocation4 + $0x130] sm:$0xff]  ;;  %v6347_v62 = vand.u32 4294901760, %v5684_v1  ;;  %v6350_v43 = vand.u32 4294901760, %v5694_v4  ;;  %v6352_v3 = vand.u32 4294901760, %v5588_v60 }
 0x312   : > { %v5754_v41 = vpack.c.bf16 %v3141_v34, %v6341_v55  ;;  %6344 = vst [vmem:[#allocation50_spill] sm:$0xff] %v5762_v31  ;;  %v5768_v55 = vpack.c.bf16 %v2450_v27, %v2438_v28  ;;  %4171 = vmatprep.subr.bf16.mxu0 %v5624_v9  ;;  %2334 = vmatmul.mubr.f32.vlgmr.msra.gmra.mrb[2].mxu0 %v5591_v44  ;;  %v5789_v63 = vand.u32 4294901760, %v5765_v48 }
 0x313   : > { %v5780_v24 = vpack.c.bf16 %v6350_v43, %v6349_v47  ;;  %4173 = vmatpush1.bf16.msra.mxu0 %v5626_v32  ;;  %v2374_v47 = vand.u32 4294901760, %v5649_v13  ;;  %v2397_v9 = vsub.f32 %v5670_v26, %v2396_v36  ;;  %v6355_v43 = vand.u32 4294901760, %v5533_v52  ;;  %2534 = vmatprep.mubr.f32.mxu0 %v6340_v40 }
 0x314   : > { %6342 = vst [vmem:[#allocation49_spill] sm:$0xff] %v5754_v41  ;;  %6345 = vst [vmem:[#allocation51_spill] sm:$0xff] %v5768_v55  ;;  %v6346_v41 = vand.u32 4294901760, %v5708_v30  ;;  %v6353_v55 = vand.u32 4294901760, %v5602_v19  ;;  %v6356_v19 = vand.u32 4294901760, %v5730_v22  ;;  %3913 = vmatpush3.msra.mxu1 %v5789_v63  ;;  %v6359_v32 = vand.u32 4294901760, %v5554_v58 }
 0x315   : > { %6351 = vst [vmem:[#allocation53_spill] sm:$0xff] %v5780_v24  ;;  %v2415_v60 = vsub.f32 %v5533_v52, %v6355_v43  ;;  %v6360_v13 = vand.u32 4294901760, %v5575_v10  ;;  %v3142_v43 = vsub.f32 %v5665_v16, %v3141_v34  ;;  %4308 = vmatprep.subr.bf16.mxu1 %v6262_v29  ;;  %3915 = vmatmul.mubr.f32.vlgmr.msra.gmra.mrb[2].mxu1 %v5591_v44  ;;  %v6364_v44 = vand.u32 4294901760, %v5565_v35 }
 0x316   : > { %v5774_v33 = vpack.c.bf16 %v6347_v62, %v6346_v41  ;;  %v4174_v31 = vpack.c.bf16 %v6353_v55, %v6352_v3  ;;  %v2404_v41 = vand.u32 4294901760, %v2403_v8  ;;  %v6354_v62 = vand.u32 4294901760, %v5365_v46  ;;  %3943 = vmatprep.mubr.msk.f32.mxu1 %vm6363_vm14, %v6340_v40 }
 0x317   : > { %v6357_v8 = vand.u32 4294901760, %v5715_v38  ;;  %v4309_v36 = vpack.c.bf16 %v6360_v13, %v6359_v32  ;;  %v2392_v55 = vand.u32 4294901760, %v2391_v0  ;;  %v2433_v24 = vsub.f32 %v5677_v12, %v2432_v2 }
 0x318   : > { %6348 = vst [vmem:[#allocation52_spill] sm:$0xff] %v5774_v33  ;;  %v3121_v33 = vsub.f32 %v5365_v46, %v6354_v62  ;;  %4175 = vmatprep.subr.bf16.mxu0 %v4174_v31  ;;  %v3129_v62 = vand.u32 4294901760, %v5643_v25  ;;  %v2410_v31 = vand.u32 4294901760, %v2409_v51  ;;  %v6362_v0 = vand.u32 4294901760, %v5632_v23 }
 0x319   : > { %v5805_v3 = vpack.c.bf16 %v6357_v8, %v6356_v19  ;;  %v6361_v19 = vand.u32 4294901760, %v5616_v61  ;;  %4310 = vmatpush3.bf16.msra.mxu1 %v4309_v36  ;;  %v4178_v58 = vpack.c.bf16 %v2404_v41, %v2392_v55  ;;  %v2451_v34 = vsub.f32 %v5682_v18, %v2450_v27 }
 0x31a   : > { %v3122_v10 = vand.u32 4294901760, %v3121_v33  ;;  %v3135_v25 = vsub.f32 %v5632_v23, %v6362_v0  ;;  %v5828_v61 = vsub.f32 %v5565_v35, %v6364_v44  ;;  %4311 = vmatprep.subr.bf16.mxu1 %v6262_v29  ;;  %v2416_v51 = vand.u32 4294901760, %v2415_v60 }
 0x31b   : > { %6358 = vst [vmem:[#allocation54_spill] sm:$0xff] %v5805_v3  ;;  %v4176_v8 = vpack.c.bf16 %v6361_v19, %v2374_v47  ;;  %v2428_v3 = vand.u32 4294901760, %v2427_v50  ;;  %v2398_v50 = vand.u32 4294901760, %v2397_v9  ;;  %v2421_v33 = vsub.f32 %v5692_v17, %v2420_v53 }
 0x31c   : > { %v6365_v2 = vand.u32 4294901760, %v5697_v7  ;;  %v4312_v27 = vpack.c.bf16 %v3129_v62, %v3122_v10  ;;  %v3143_v47 = vand.u32 4294901760, %v3142_v43  ;;  %v2439_v32 = vsub.f32 %v5703_v45, %v2438_v28 }
 0x31d   : > { %4177 = vmatpush1.bf16.msra.mxu0 %v4176_v8  ;;  %v4180_v13 = vpack.c.bf16 %v2410_v31, %v2398_v50  ;;  %v4182_v35 = vpack.c.bf16 %v2428_v3, %v2416_v51  ;;  %v2434_v36 = vand.u32 4294901760, %v2433_v24  ;;  %v6366_v55 = vand.u32 4294901760, %v5684_v1 }
 0x31e   : > { %v5835_v41 = vsub.f32 %v5697_v7, %v6365_v2  ;;  %4179 = vmatprep.subr.bf16.mxu0 %v4178_v58  ;;  %4313 = vmatpush3.bf16.msra.mxu1 %v4312_v27  ;;  %v3136_v60 = vand.u32 4294901760, %v3135_v25  ;;  %v2452_v53 = vand.u32 4294901760, %v2451_v34  ;;  %v6367_v19 = vand.u32 4294901760, %v5694_v4 }
 0x31f   : > { %v2457_v9 = vsub.f32 %v5684_v1, %v6366_v55  ;;  %v5846_v62 = vsub.f32 %v5732_v20, %v5741_v54  ;;  %4314 = vmatprep.subr.bf16.mxu1 %v6262_v29  ;;  %v2422_v28 = vand.u32 4294901760, %v2421_v33  ;;  %v6368_v24 = vand.u32 4294901760, %v5708_v30 }
 0x320   : > { %v2475_v7 = vsub.f32 %v5694_v4, %v6367_v19  ;;  %v6369_v43 = vand.u32 4294901760, %v5170_v37  ;;  %v6370_v31 = vand.u32 4294901760, %v5177_v39  ;;  %v4315_v10 = vpack.c.bf16 %v3143_v47, %v3136_v60 }
 0x321   : > { %4181 = vmatpush1.bf16.msra.mxu0 %v4180_v13  ;;  %v2445_v3 = vsub.f32 %v5708_v30, %v6368_v24  ;;  %v2440_v20 = vand.u32 4294901760, %v2439_v32  ;;  %v6371_v0 = vand.u32 4294901760, %v5713_v15  ;;  %v3183_v34 = vand.u32 4294901760, %v5835_v41 }
 0x322   : > { %v3163_v8 = vsub.f32 %v5170_v37, %v6369_v43  ;;  %v3170_v58 = vsub.f32 %v5177_v39, %v6370_v31  ;;  %4183 = vmatprep.subr.bf16.mxu0 %v4182_v35  ;;  %v5864_v44 = vsub.f32 %v5725_v21, %v5747_v42  ;;  %v4184_v50 = vpack.c.bf16 %v2434_v36, %v2422_v28 }
 0x323   : > { %v2463_v25 = vsub.f32 %v5713_v15, %v6371_v0  ;;  %v2458_v51 = vand.u32 4294901760, %v2457_v9  ;;  %v6372_v33 = vand.u32 4294901760, %v5715_v38  ;;  %4316 = vmatpush3.bf16.msra.mxu1 %v4315_v10  ;;  %v4186_v27 = vpack.c.bf16 %v2452_v53, %v2440_v20 }
 0x324   : > { %v2476_v47 = vand.u32 4294901760, %v2475_v7  ;;  %v2486_v32 = vand.u32 4294901760, %v5846_v62  ;;  %v3176_v13 = vand.u32 4294901760, %v5828_v61  ;;  %4317 = vmatprep.subr.bf16.mxu1 %v6262_v29  ;;  %v6373_v35 = vand.u32 4294901760, %v5476_v57 }
 0x325   : > { %v2481_v2 = vsub.f32 %v5715_v38, %v6372_v33  ;;  %4185 = vmatpush1.bf16.msra.mxu0 %v4184_v50  ;;  %v6374_v21 = vand.u32 4294901760, %v5501_v5  ;;  %v2446_v55 = vand.u32 4294901760, %v2445_v3  ;;  %v6375_v9 = vand.u32 4294901760, %v5730_v22 }
 0x326   : > { %v5881_v53 = vsub.f32 %v5765_v48, %v5789_v63  ;;  %4187 = vmatprep.subr.bf16.mxu0 %v4186_v27  ;;  %v2464_v19 = vand.u32 4294901760, %v2463_v25  ;;  %v3171_v7 = vand.u32 4294901760, %v3170_v58  ;;  %v3184_v28 = vsub.f32 %v5835_v41, %v3183_v34 }
 0x327   : > { %v4318_v36 = vpack.c.bf16 %v6374_v21, %v6373_v35  ;;  %v2469_v60 = vsub.f32 %v5730_v22, %v6375_v9  ;;  %v4188_v57 = vpack.c.bf16 %v2458_v51, %v2446_v55  ;;  %v2482_v24 = vand.u32 4294901760, %v2481_v2  ;;  %v6376_v21 = vld [vmem:[#allocation20_spill] sm:$0xff]  ;;  %v6377_v9 = vld [vmem:[#allocation11_spill] sm:$0xff] }
 0x328   : > { %v2492_v5 = vand.u32 4294901760, %v5864_v44  ;;  %v4190_v3 = vpack.c.bf16 %v2476_v47, %v2464_v19  ;;  %v3164_v43 = vand.u32 4294901760, %v3163_v8  ;;  %v2487_v31 = vsub.f32 %v5846_v62, %v2486_v32  ;;  %v6381_v19 = vld [vmem:[#allocation40_spill] sm:$0xff] }
 0x329   : > { %4319 = vmatpush3.bf16.msra.mxu1 %v4318_v36  ;;  %v3177_v48 = vsub.f32 %v5828_v61, %v3176_v13  ;;  %4189 = vmatpush1.bf16.msra.mxu0 %v4188_v57  ;;  %v2470_v58 = vand.u32 4294901760, %v2469_v60  ;;  %v3185_v20 = vand.u32 4294901760, %v3184_v28  ;;  %v3190_v0 = vand.u32 4294901760, %v5881_v53  ;;  %v6383_v28 = vld [vmem:[#allocation22_spill] sm:$0xff] }
 0x32a   : > { %4320 = vmatprep.subr.bf16.mxu1 %v6262_v29  ;;  %4191 = vmatprep.subr.bf16.mxu0 %v4190_v3  ;;  %v4321_v10 = vpack.c.bf16 %v3171_v7, %v3164_v43  ;;  %v2493_v8 = vsub.f32 %v5864_v44, %v2492_v5  ;;  %v2488_v50 = vand.u32 4294901760, %v2487_v31  ;;  %v4194_v47 = vpack.c.bf16 %v5287_v59, %v5281_v56  ;;  %v6378_v56 = vld [vmem:[#allocation14_spill] sm:$0xff]  ;;  %v6382_v7 = vld [vmem:[#allocation41_spill] sm:$0xff] }
 0x32b   : > { %v4192_v25 = vpack.c.bf16 %v2482_v24, %v2470_v58  ;;  %v3178_v51 = vand.u32 4294901760, %v3177_v48  ;;  %v3191_v2 = vsub.f32 %v5881_v53, %v3190_v0  ;;  %v4196_v35 = vpack.c.bf16 %v5332_v49, %v5324_v14  ;;  %v6379_v49 = vld [vmem:[#allocation24_spill] sm:$0xff]  ;;  %v6380_v14 = vld [vmem:[#allocation27_spill] sm:$0xff]  ;;  %v6385_v43 = vld [vmem:[#allocation42_spill] sm:$0xff] }
 0x32c   : > { %v2494_v27 = vand.u32 4294901760, %v2493_v8  ;;  %v4198_v36 = vpack.c.bf16 %v6376_v21, %v5349_v11  ;;  %v4327_v59 = vpack.c.bf16 %v6378_v56, %v6377_v9  ;;  %v4200_v60 = vpack.c.bf16 %v6380_v14, %v6379_v49  ;;  %v6384_v24 = vld [vmem:[#allocation43_spill] sm:$0xff]  ;;  %v6398_v8 = vld [vmem:[#allocation30_spill] sm:$0xff]  ;;  %v6412_v49 = vld [vmem:[#allocation28_spill] sm:$0xff] }
 0x32d   : > { %4322 = vmatpush3.bf16.msra.mxu1 %v4321_v10  ;;  %4193 = vmatpush1.bf16.msra.mxu0 %v4192_v25  ;;  %v4324_v33 = vpack.c.bf16 %v3185_v20, %v3178_v51  ;;  %v3192_v55 = vand.u32 4294901760, %v3191_v2  ;;  %v4202_v11 = vpack.c.bf16 %v6382_v7, %v6381_v19  ;;  %v4330_v57 = vpack.c.bf16 %v6383_v28, %v5365_v46  ;;  %v6387_v10 = vld [vmem:[#allocation8_spill] sm:$0xff]  ;;  %v6400_v51 = vld [vmem:[#allocation38_spill] sm:$0xff]  ;;  %v6402_v2 = vld [vmem:[#allocation39_spill] sm:$0xff] }
 0x32e   : > { %4323 = vmatprep.subr.bf16.mxu1 %v6262_v29  ;;  %2489 = vmatprep.subr.mxu0 %v2488_v50  ;;  %v4204_v3 = vpack.c.bf16 %v6384_v24, %v5670_v26  ;;  %v4206_v31 = vpack.c.bf16 %v6385_v43, %v5533_v52  ;;  %v4333_v48 = vpack.c.bf16 %v5665_v16, %v5632_v23  ;;  %v6386_v26 = vld [vmem:[#allocation7_spill] sm:$0xff]  ;;  %v6388_v23 = vld [vmem:[#allocation12_spill] sm:$0xff]  ;;  %v6399_v50 = vld [vmem:[#allocation37_spill] sm:$0xff]  ;;  %v6415_v19 = vand.u32 4294901760, %v5533_v52 }
 0x32f   : > { %v4208_v58 = vpack.c.bf16 %v5677_v12, %v5692_v17  ;;  %v4210_v46 = vpack.c.bf16 %v5682_v18, %v5703_v45  ;;  %v4336_v20 = vpack.c.bf16 %v6387_v10, %v6386_v26  ;;  %v4212_v25 = vpack.c.bf16 %v5684_v1, %v5708_v30  ;;  %v6391_v17 = vld [vmem:[#allocation19_spill] sm:$0xff]  ;;  %v6393_v1 = vld [vmem:[#allocation26_spill] sm:$0xff]  ;;  %v6394_v45 = vld [vmem:[#allocation29_spill] sm:$0xff] }
 0x330   : > { %v4214_v16 = vpack.c.bf16 %v5694_v4, %v5713_v15  ;;  %v4339_v12 = vpack.c.bf16 %v5177_v39, %v5170_v37  ;;  %v4216_v18 = vpack.c.bf16 %v5715_v38, %v5730_v22  ;;  %v4342_v30 = vpack.c.bf16 %v5835_v41, %v5828_v61  ;;  %v6389_v37 = vld [vmem:[#allocation31_spill] sm:$0xff]  ;;  %v6390_v39 = vld [vmem:[#allocation17_spill] sm:$0xff]  ;;  %v6396_v38 = vld [vmem:[#allocation34_spill] sm:$0xff] }
 0x331   : > { %4325 = vmatpush3.bf16.msra.mxu1 %v4324_v33  ;;  %2495 = vmatpush1.msra.mxu0 %v2494_v27  ;;  %v6392_v4 = vld [vmem:[#allocation13_spill] sm:$0xff]  ;;  %v6397_v22 = vld [vmem:[#allocation36_spill] sm:$0xff]  ;;  %v6406_v21 = vld [vmem:[#allocation46_spill] sm:$0xff]  ;;  %v6416_v7 = vand.u32 4294901760, %v6385_v43  ;;  %v6426_v61 = vlaneseq }
 0x332   : > { %3941 = vmatprep.subr.mxu1 %v6340_v40  ;;  %4195 = vmatprep.subr.bf16.mxu0 %v4194_v47  ;;  %v6395_v15 = vld [vmem:[#allocation21_spill] sm:$0xff]  ;;  %v6401_v33 = vld [vmem:[#allocation32_spill] sm:$0xff]  ;;  %v6404_v47 = vld [vmem:[#allocation35_spill] sm:$0xff] }
 0x333   : > { %2536 = vmatmul.mubr.f32.vlgmr.msra.gmra.mrb[2].mxu0 %v5417_v6  ;;  %v6403_v27 = vld [vmem:[#allocation44_spill] sm:$0xff]  ;;  %v6409_v9 = vld [vmem:[#allocation18_spill] sm:$0xff]  ;;  %v6410_v56 = vld [vmem:[#allocation23_spill] sm:$0xff]  ;;  %v2232_v41 = vshrl.u32 %v6426_v61, 7 }
 0x334   : > { %4197 = vmatpush1.bf16.msra.mxu0 %v4196_v35  ;;  %2658 = vmatprep.mubr.f32.mxu0 %v6340_v40  ;;  %v6405_v35 = vld [vmem:[#allocation45_spill] sm:$0xff]  ;;  %v6413_v14 = vld [vmem:[#allocation47_spill] sm:$0xff]  ;;  %v6417_v28 = vld [vmem:[#allocation48_spill] sm:$0xff] }
 0x335   : > { %4199 = vmatprep.subr.bf16.mxu0 %v4198_v36  ;;  %3942 = vmatpush3.msra.mxu1 %v3192_v55  ;;  %v6407_v36 = vld [vmem:[#allocation15_spill] sm:$0xff]  ;;  %v6408_v55 = vld [vmem:[#allocation33_spill] sm:$0xff]  ;;  %v6419_v24 = vld [vmem:[#allocation50_spill] sm:$0xff] }
 0x336   : > { %4326 = vmatprep.subr.bf16.mxu1 %v6262_v29  ;;  %3944 = vmatmul.mubr.f32.vlgmr.msra.gmra.mrb[2].mxu1 %v5417_v6  ;;  %v6423_v52 = vld [vmem:[#allocation53_spill] sm:$0xff]  ;;  %v6424_v43 = vld [vmem:[#allocation10_spill] sm:$0xff] }
 0x337   : > { %4328 = vmatpush3.bf16.msra.mxu1 %v4327_v59  ;;  %3972 = vmatprep.mubr.msk.f32.mxu1 %vm6363_vm14, %v6340_v40  ;;  %v6411_v59 = vld [vmem:[#allocation16_spill] sm:$0xff] }
 0x338   : > { %4201 = vmatpush1.bf16.msra.mxu0 %v4200_v60  ;;  %4329 = vmatprep.subr.bf16.mxu1 %v6262_v29  ;;  %v6414_v60 = vld [vmem:[#allocation25_spill] sm:$0xff] }
 0x339   : > { %4203 = vmatprep.subr.bf16.mxu0 %v4202_v11  ;;  %v4254_v11 = vpack.c.bf16 %v6416_v7, %v6415_v19 }
 0x33b   : > { %4331 = vmatpush3.bf16.msra.mxu1 %v4330_v57  ;;  %v6418_v57 = vld [vmem:[#allocation49_spill] sm:$0xff] }
 0x33c   : > { %4205 = vmatpush1.bf16.msra.mxu0 %v4204_v3  ;;  %4332 = vmatprep.subr.bf16.mxu1 %v6262_v29  ;;  %v6420_v3 = vld [vmem:[#allocation51_spill] sm:$0xff] }
 0x33d   : > { %4207 = vmatprep.subr.bf16.mxu0 %v4206_v31  ;;  %v6421_v31 = vld [vmem:[#allocation9_spill] sm:$0xff] }
 0x33f   : > { %4334 = vmatpush3.bf16.msra.mxu1 %v4333_v48  ;;  %v6422_v48 = vld [vmem:[#allocation52_spill] sm:$0xff] }
 0x340   : > { %4209 = vmatpush1.bf16.msra.mxu0 %v4208_v58  ;;  %4335 = vmatprep.subr.bf16.mxu1 %v6262_v29  ;;  %v6425_v58 = vld [vmem:[#allocation54_spill] sm:$0xff] }
 0x341   : > { %4211 = vmatprep.subr.bf16.mxu0 %v4210_v46  ;;  %v4378_v46 = vpack.c.bf16 %v3183_v34, %v3176_v13  ;;  %v4534_v34 = vmov 1966171168  }
 0x343   : > { %4337 = vmatpush3.bf16.msra.mxu1 %v4336_v20 }
 0x344   : > { %4213 = vmatpush1.bf16.msra.mxu0 %v4212_v25  ;;  %4338 = vmatprep.subr.bf16.mxu1 %v6262_v29 }
 0x345   : > { %4215 = vmatprep.subr.bf16.mxu0 %v4214_v16 }
 0x347   : > { %4340 = vmatpush3.bf16.msra.mxu1 %v4339_v12 }
 0x348   : > { %4217 = vmatpush1.bf16.msra.mxu0 %v4216_v18  ;;  %4341 = vmatprep.subr.bf16.mxu1 %v6262_v29 }
 0x349   : > { %2616 = vmatprep.subr.mxu0 %v5846_v62  ;;  %v2233_v62 = vsub.s32 0, %v2232_v41 }
 0x34b   : > { %4343 = vmatpush3.bf16.msra.mxu1 %v4342_v30 }
 0x34c   : > { %2619 = vmatpush1.msra.mxu0 %v5864_v44  ;;  %3970 = vmatprep.subr.mxu1 %v6340_v40  ;;  %v3625_v44 = vunpack.c.l.s4 %v4534_v34 }
 0x34d   : > { %4219 = vmatprep.subr.bf16.mxu0 %v6388_v23  ;;  %2661 = vmatmul.mubr.f32.vlgmr.msra.gmra.mrb[2].mxu0 %v6389_v37 }
 0x34e   : > { %4221 = vmatpush1.bf16.msra.mxu0 %v6390_v39  ;;  %2757 = vmatprep.mubr.f32.mxu0 %v6340_v40 }
 0x34f   : > { %4223 = vmatprep.subr.bf16.mxu0 %v6391_v17  ;;  %3971 = vmatpush3.msra.mxu1 %v5881_v53 }
 0x350   : > { %4344 = vmatprep.subr.bf16.mxu1 %v6262_v29  ;;  %3973 = vmatmul.mubr.f32.vlgmr.msra.gmra.mrb[2].mxu1 %v6389_v37 }
 0x351   : > { %4346 = vmatpush3.bf16.msra.mxu1 %v6392_v4  ;;  %4001 = vmatprep.mubr.msk.f32.mxu1 %vm6363_vm14, %v6340_v40 }
 0x352   : > { %4225 = vmatpush1.bf16.msra.mxu0 %v6393_v1  ;;  %4347 = vmatprep.subr.bf16.mxu1 %v6262_v29 }
 0x353   : > { %4227 = vmatprep.subr.bf16.mxu0 %v6394_v45 }
 0x355   : > { %4349 = vmatpush3.bf16.msra.mxu1 %v6395_v15 }
 0x356   : > { %4229 = vmatpush1.bf16.msra.mxu0 %v6396_v38  ;;  %4350 = vmatprep.subr.bf16.mxu1 %v6262_v29 }
 0x357   : > { %4231 = vmatprep.subr.bf16.mxu0 %v6397_v22 }
 0x359   : > { %4352 = vmatpush3.bf16.msra.mxu1 %v6398_v8 }
 0x35a   : > { %4233 = vmatpush1.bf16.msra.mxu0 %v6399_v50  ;;  %4353 = vmatprep.subr.bf16.mxu1 %v6262_v29 }
 0x35b   : > { %4235 = vmatprep.subr.bf16.mxu0 %v6400_v51 }
 0x35d   : > { %4355 = vmatpush3.bf16.msra.mxu1 %v6401_v33 }
 0x35e   : > { %4237 = vmatpush1.bf16.msra.mxu0 %v6402_v2  ;;  %4356 = vmatprep.subr.bf16.mxu1 %v6262_v29 }
 0x35f   : > { %4239 = vmatprep.subr.bf16.mxu0 %v6403_v27 }
 0x361   : > { %4358 = vmatpush3.bf16.msra.mxu1 %v6404_v47 }
 0x362   : > { %4241 = vmatpush1.bf16.msra.mxu0 %v6405_v35  ;;  %4359 = vmatprep.subr.bf16.mxu1 %v6262_v29 }
 0x363   : > { %2716 = vmatprep.subr.mxu0 %v5741_v54 }
 0x365   : > { %4361 = vmatpush3.bf16.msra.mxu1 %v6406_v21 }
 0x366   : > { %2718 = vmatpush1.msra.mxu0 %v5747_v42  ;;  %3999 = vmatprep.subr.mxu1 %v6340_v40 }
 0x367   : > { %4243 = vmatprep.subr.bf16.mxu0 %v6407_v36  ;;  %2761 = vmatmul.mubr.f32.vlgmr.msra.gmra.mrb[2].mxu0 %v6408_v55 }
 0x368   : > { %4245 = vmatpush1.bf16.msra.mxu0 %v6409_v9  ;;  %2909 = vmatprep.mubr.f32.mxu0 %v6340_v40 }
 0x369   : > { %4247 = vmatprep.subr.bf16.mxu0 %v6410_v56  ;;  %4000 = vmatpush3.msra.mxu1 %v5789_v63 }
 0x36a   : > { %4362 = vmatprep.subr.bf16.mxu1 %v6262_v29  ;;  %4002 = vmatmul.mubr.f32.vlgmr.msra.gmra.mrb[2].mxu1 %v6408_v55 }
 0x36b   : > { %4364 = vmatpush3.bf16.msra.mxu1 %v6411_v59  ;;  %4030 = vmatprep.mubr.msk.f32.mxu1 %vm6363_vm14, %v6340_v40 }
 0x36c   : > { %4249 = vmatpush1.bf16.msra.mxu0 %v6412_v49  ;;  %4365 = vmatprep.subr.bf16.mxu1 %v6262_v29 }
 0x36d   : > { %4251 = vmatprep.subr.bf16.mxu0 %v6413_v14 }
 0x36f   : > { %4367 = vmatpush3.bf16.msra.mxu1 %v6414_v60 }
 0x370   : > { %4253 = vmatpush1.bf16.msra.mxu0 %v6417_v28  ;;  %4368 = vmatprep.subr.bf16.mxu1 %v6262_v29 }
 0x371   : > { %4255 = vmatprep.subr.bf16.mxu0 %v4254_v11 }
 0x373   : > { %4370 = vmatpush3.bf16.msra.mxu1 %v6418_v57 }
 0x374   : > { %4257 = vmatpush1.bf16.msra.mxu0 %v6419_v24  ;;  %4371 = vmatprep.subr.bf16.mxu1 %v6262_v29 }
 0x375   : > { %4259 = vmatprep.subr.bf16.mxu0 %v6420_v3 }
 0x377   : > { %4373 = vmatpush3.bf16.msra.mxu1 %v6421_v31 }
 0x378   : > { %4261 = vmatpush1.bf16.msra.mxu0 %v6422_v48  ;;  %4374 = vmatprep.subr.bf16.mxu1 %v6262_v29 }
 0x379   : > { %4263 = vmatprep.subr.bf16.mxu0 %v6423_v52 }
 0x37b   : > { %4376 = vmatpush3.bf16.msra.mxu1 %v6424_v43 }
 0x37c   : > { %4265 = vmatpush1.bf16.msra.mxu0 %v6425_v58  ;;  %4377 = vmatprep.subr.bf16.mxu1 %v6262_v29 }
 0x37d   : > { %2866 = vmatprep.subr.mxu0 %v2486_v32  ;;  %v3626_v32 = vunpack.c.0.s8 %v3625_v44 }
 0x37f   : > { %4379 = vmatpush3.bf16.msra.mxu1 %v4378_v46  ;;  %v3629_v26 = vsub.s32 %v3626_v32, %v2232_v41 }
 0x380   : > { %2870 = vmatpush1.msra.mxu0 %v2492_v5  ;;  %4028 = vmatprep.subr.mxu1 %v6340_v40 }
 0x381   : > { %4267 = vmatprep.subr.bf16.mxu0 %v6388_v23  ;;  %2911 = vmatmul.mubr.f32.vlgmr.msra.gmra.mrb[2].mxu0 %v5417_v6 }
 0x382   : > { %4269 = vmatpush1.bf16.msra.mxu0 %v6390_v39  ;;  %3007 = vmatprep.mubr.f32.mxu0 %v6340_v40 }
 0x383   : > { %4271 = vmatprep.subr.bf16.mxu0 %v6391_v17  ;;  %4029 = vmatpush3.msra.mxu1 %v3190_v0 }
 0x384   : > { %4380 = vmatprep.subr.bf16.mxu1 %v6262_v29  ;;  %4031 = vmatmul.mubr.f32.vlgmr.msra.gmra.mrb[2].mxu1 %v5417_v6 }
 0x385   : > { %4382 = vmatpush3.bf16.msra.mxu1 %v6392_v4  ;;  %4059 = vmatprep.mubr.msk.f32.mxu1 %vm6363_vm14, %v6340_v40 }
 0x386   : > { %4273 = vmatpush1.bf16.msra.mxu0 %v6393_v1  ;;  %4383 = vmatprep.subr.bf16.mxu1 %v6262_v29 }
 0x387   : > { %4275 = vmatprep.subr.bf16.mxu0 %v6394_v45 }
 0x389   : > { %4385 = vmatpush3.bf16.msra.mxu1 %v6395_v15 }
 0x38a   : > { %4277 = vmatpush1.bf16.msra.mxu0 %v6396_v38  ;;  %4386 = vmatprep.subr.bf16.mxu1 %v6262_v29 }
 0x38b   : > { %4279 = vmatprep.subr.bf16.mxu0 %v6397_v22 }
 0x38d   : > { %4388 = vmatpush3.bf16.msra.mxu1 %v6398_v8 }
 0x38e   : > { %4281 = vmatpush1.bf16.msra.mxu0 %v6399_v50  ;;  %4389 = vmatprep.subr.bf16.mxu1 %v6262_v29 }
 0x38f   : > { %4283 = vmatprep.subr.bf16.mxu0 %v6400_v51 }
 0x391   : > { %4391 = vmatpush3.bf16.msra.mxu1 %v6401_v33 }
 0x392   : > { %4285 = vmatpush1.bf16.msra.mxu0 %v6402_v2  ;;  %4392 = vmatprep.subr.bf16.mxu1 %v6262_v29 }
 0x393   : > { %4287 = vmatprep.subr.bf16.mxu0 %v6403_v27 }
 0x395   : > { %4394 = vmatpush3.bf16.msra.mxu1 %v6404_v47 }
 0x396   : > { %4289 = vmatpush1.bf16.msra.mxu0 %v6405_v35  ;;  %4395 = vmatprep.subr.bf16.mxu1 %v6262_v29  ;;  %v2229_v29 = vpop.permute.xlu0 %2228 }
 0x397   : > { %2966 = vmatprep.subr.mxu0 %v5741_v54  ;;  %v2234_v54 = vrot.slane %v2229_v29, %v2233_v62 }
 0x399   : > { %4397 = vmatpush3.bf16.msra.mxu1 %v6406_v21 }
 0x39a   : > { %2968 = vmatpush1.msra.mxu0 %v5747_v42  ;;  %4057 = vmatprep.subr.mxu1 %v6340_v40 }
 0x39b   : > { %3009 = vmatmul.mubr.f32.vlgmr.msra.gmra.mrb[2].mxu0 %v5417_v6 }
 0x39d   : > { %4058 = vmatpush3.msra.mxu1 %v5789_v63 }
 0x39e   : > { %4060 = vmatmul.mubr.f32.vlgmr.msra.gmra.mrb[2].mxu1 %v5417_v6 }
 0x46e   : > { %v3010_v13 = vpop.f32.mrb[2].mxu0 }
 0x46f   : > { %v4401_v53 = vadd.f32 %v3010_v13, %v2234_v54  ;;  %v3012_v42 = vpop.f32.mrb[3].mxu0 }
 0x470   : > { %v4402_v5 = vadd.f32 %v3012_v42, %v2234_v54 }
 0x471   : > { %v3617_v40 = vmax.f32 %v4401_v53, 0.0  ;;  %v3613_v0 = vpop.f32.mrb[2].mxu1 }
 0x472   : > { %v3618_v10 = vmax.f32 %v4402_v5, 0.0  ;;  %v4403_v63 = vadd.f32 %v3613_v0, %v2234_v54  ;;  %v4061_v20 = vpop.f32.mrb[3].mxu1 }
 0x474   : > { %v3623_v6 = vcombine.low %v3617_v40, %v3618_v10  ;;  %v3619_v25 = vmax.f32 %v4403_v63, 0.0 }
 0x476   : > { %v3630_v16 = vrot.slane %v3623_v6, %v3629_v26  ;;  %v3637_v12 = vrot.slane %v3619_v25, %v3629_v26 }
 0x478   : > { %v3638_v18 = vcombine.low %v3630_v16, %v3637_v12 }
 0x47a   : > { %v3645_v30 = vrot.slane %v3638_v18, %v3629_v26 }
 0x47c   : > { %3647 = vst.msk [vmem:[%s221_s30] sm:$0x7] %vm4606_vm0, %v3645_v30 }
 0x47d PF: > { %s17_s20 = sadd.s32 1, %s4504_s20  }
 0x47e   : > { %p14_p4 = scmp.ge.s32.totalorder %s17_s20, 4  }
 0x480   :  { %16 = sbr.rel (!%p14_p4) target bundleno = 3 (0x3), region = 94 }

</bundles_post_ra>
